<compile_context>
chip_gen: v7x
topology: tpu7x:2x2x1
jax: 0.10.0
libtpu: 0.0.40
codegen_flags: <defaults>
</compile_context>

<pallas_src>
import jax
import jax.numpy as jnp
from jax import lax
from jax.experimental import pallas as pl
from jax.experimental.pallas import tpu as pltpu

# ----------------------------- configuration --------------------------------
N, CIN, H, W = 2, 16, 16, 16
COUT = 32
STRIDE = 2
LEVEL_ROOT = True
ROOT_RESIDUAL = False
DILATION = 1
ROOT_DIM = 2 * COUT + (CIN if LEVEL_ROOT else 0)   # 80
EPS = 1e-5


# ------------------------------ Pallas kernel --------------------------------
def _tree_kernel(xp00, xp01, xp10, xp11,
                 w11_ref, w12_ref, w21_ref, w22_ref, wproj_ref, wroot_ref,
                 bias_ref, o_ref, pad_ref):
    """Whole Tree forward.  Inputs:
      xp{py}{px}: parity-split padded input, (n, H/2+1, W/2+1, CIN)
                  element [n,qy,qx,c] == xpad[n, 2*qy+py, 2*qx+px, c]
      w11: (9*CIN, COUT)  tree1.conv1 (BN scale folded)
      w12/w21/w22: (9*COUT, COUT)     stride-1 convs (BN scale folded)
      wproj: (CIN, COUT), wroot: (ROOT_DIM, COUT)
      bias_ref: (6, COUT) rows = [t1.bn1, t1.bn2, t2.bn1, t2.bn2, proj, root]
      o_ref: (n*Ho*Wo, COUT)
      pad_ref: VMEM scratch (n, Ho+2, Wo+2, COUT), zero border shared by the
               three stride-1 convs.
    """
    f32 = jnp.float32
    n, hq, wq, cin = xp00.shape
    ho, wo = hq - 1, wq - 1
    cout = o_ref.shape[-1]
    m = n * ho * wo
    xp = ((xp00, xp01), (xp10, xp11))        # xp[parity_y][parity_x]

    def bias(i):
        return bias_ref[pl.ds(i, 1), :]      # (1, cout), broadcasts over rows

    # ---------------- bottom = MaxPool2d(2, 2)(x) -----------------------------
    # original row 2*oy+dy == padded row 2*oy+dy+1  ->  parity/offset below.
    def pool_win(dy, dx):
        py, qy0 = (1, 0) if dy == 0 else (0, 1)
        px, qx0 = (1, 0) if dx == 0 else (0, 1)
        return xp[py][px][:, pl.ds(qy0, ho), pl.ds(qx0, wo), :]

    bottom = jnp.maximum(jnp.maximum(pool_win(0, 0), pool_win(0, 1)),
                         jnp.maximum(pool_win(1, 0), pool_win(1, 1)))
    bottom2d = bottom.reshape(m, cin)

    # ---------------- residual = project(bottom): 1x1 conv + BN ---------------
    residual = jnp.dot(bottom2d, wproj_ref[...],
                       preferred_element_type=f32) + bias(4)

    # ---------------- stride-2 3x3 conv (tree1.conv1), pad=1 ------------------
    # padded row needed for tap ky at output oy is 2*oy+ky -> parity ky%2,
    # offset ky//2 in the parity tensor.
    def conv3x3_s2(w_ref):
        acc = None
        for ky in range(3):
            for kx in range(3):
                win = xp[ky % 2][kx % 2][:, pl.ds(ky // 2, ho),
                                         pl.ds(kx // 2, wo), :]
                part = jnp.dot(win.reshape(m, cin),
                               w_ref[pl.ds((ky * 3 + kx) * cin, cin), :],
                               preferred_element_type=f32)
                acc = part if acc is None else acc + part
        return acc

    # ---------------- stride-1 3x3 conv, pad=1, via VMEM scratch --------------
    def conv3x3_s1(y2d, w_ref):
        pad_ref[:, pl.ds(1, ho), pl.ds(1, wo), :] = y2d.reshape(n, ho, wo, cout)
        acc = None
        for ky in range(3):
            for kx in range(3):
                win = pad_ref[:, pl.ds(ky, ho), pl.ds(kx, wo), :]
                part = jnp.dot(win.reshape(m, cout),
                               w_ref[pl.ds((ky * 3 + kx) * cout, cout), :],
                               preferred_element_type=f32)
                acc = part if acc is None else acc + part
        return acc

    # zero the padded scratch once; every conv only rewrites the interior so
    # the zero border is shared by all three stride-1 convs.
    pad_ref[...] = jnp.zeros_like(pad_ref)

    # ---------------- tree1: BasicBlock(CIN->COUT, stride 2) ------------------
    y = jnp.maximum(conv3x3_s2(w11_ref) + bias(0), 0.0)   # relu(bn1(conv1(x)))
    y = conv3x3_s1(y, w12_ref) + bias(1)                   # bn2(conv2(.))
    x1 = jnp.maximum(y + residual, 0.0)

    # ---------------- tree2: BasicBlock(COUT->COUT, stride 1), res = x1 -------
    y = jnp.maximum(conv3x3_s1(x1, w21_ref) + bias(2), 0.0)
    y = conv3x3_s1(y, w22_ref) + bias(3)
    x2 = jnp.maximum(y + x1, 0.0)

    # ---------------- root: 1x1 conv over concat([x2, x1, bottom]) + BN + relu
    out = (jnp.dot(x2, wroot_ref[pl.ds(0, cout), :], preferred_element_type=f32)
           + jnp.dot(x1, wroot_ref[pl.ds(cout, cout), :],
                     preferred_element_type=f32)
           + jnp.dot(bottom2d, wroot_ref[pl.ds(2 * cout, cin), :],
                     preferred_element_type=f32)
           + bias(5))
    # ROOT_RESIDUAL is False for this instantiation (would be: out += x2).
    o_ref[...] = jnp.maximum(out, 0.0).astype(o_ref.dtype)


# ------------------------------- JAX wrapper ----------------------------------
def bn_fold(bn):
    scale = bn["gamma"] / jnp.sqrt(bn["var"] + EPS)
    bias = bn["beta"] - bn["mean"] * scale
    return scale, bias


def _fold3x3(w_t, bn):        # (Cout,Cin,3,3) -> (9*Cin, Cout) with BN scale
    s, b = bn_fold(bn)
    wf = jnp.transpose(w_t, (2, 3, 1, 0)).reshape(-1, w_t.shape[0])
    return wf * s[None, :], b


def _fold1x1(w_t, bn):        # (Cout,Cin,1,1) -> (Cin, Cout) with BN scale
    s, b = bn_fold(bn)
    wf = jnp.transpose(w_t[:, :, 0, 0], (1, 0))
    return wf * s[None, :], b


def tree_forward_pallas(x_nchw, params):
    x = jnp.transpose(x_nchw, (0, 2, 3, 1)).astype(jnp.float32)   # NCHW -> NHWC
    n, h, w, cin = x.shape
    ho, wo = h // STRIDE, w // STRIDE
    cout = COUT

    # Parity-split (space-to-depth) view of the zero-padded input: cheap XLA
    # rearrangement (same byte count as the input), consumed by maxpool and
    # the stride-2 conv inside the kernel with only contiguous slices.
    xpad = jnp.pad(x, ((0, 0), (1, 1), (1, 1), (0, 0)))
    xr = xpad.reshape(n, ho + 1, 2, wo + 1, 2, cin)
    xpar = [xr[:, :, py, :, px, :] for py in (0, 1) for px in (0, 1)]

    # Fold inference BN into weights + per-channel bias.
    w11, b11 = _fold3x3(params["tree1"]["w1"], params["tree1"]["bn1"])
    w12, b12 = _fold3x3(params["tree1"]["w2"], params["tree1"]["bn2"])
    w21, b21 = _fold3x3(params["tree2"]["w1"], params["tree2"]["bn1"])
    w22, b22 = _fold3x3(params["tree2"]["w2"], params["tree2"]["bn2"])
    wpj, bpj = _fold1x1(params["project"]["w"], params["project"]["bn"])
    wrt, brt = _fold1x1(params["root"]["w"], params["root"]["bn"])
    biases = jnp.stack([b11, b12, b21, b22, bpj, brt], axis=0)    # (6, COUT)

    out2d = pl.pallas_call(
        _tree_kernel,
        out_shape=jax.ShapeDtypeStruct((n * ho * wo, cout), jnp.float32),
        scratch_shapes=[pltpu.VMEM((n, ho + 2, wo + 2, cout), jnp.float32)],
    )(*xpar, w11, w12, w21, w22, wpj, wrt, biases)

    out = out2d.reshape(n, ho, wo, cout)
    return jnp.transpose(out, (0, 3, 1, 2))                       # NHWC -> NCHW


# --------------------------- pure-JAX reference -------------------------------
def bn_ref(x, bn):
    return (x - bn["mean"]) / jnp.sqrt(bn["var"] + EPS) * bn["gamma"] + bn["beta"]


def conv_ref(x, w_t, stride, dilation, k):
    w = jnp.transpose(w_t, (2, 3, 1, 0))             # HWIO
    pad = dilation * (k - 1) // 2
    return lax.conv_general_dilated(
        x, w, (stride, stride), [(pad, pad), (pad, pad)],
        rhs_dilation=(dilation, dilation),
        dimension_numbers=("NHWC", "HWIO", "NHWC"),
        precision=lax.Precision.HIGHEST)


def basic_block_ref(x, p, residual, stride, dilation):
    out = jnp.maximum(bn_ref(conv_ref(x, p["w1"], stride, dilation, 3), p["bn1"]), 0.0)
    out = bn_ref(conv_ref(out, p["w2"], 1, dilation, 3), p["bn2"])
    return jnp.maximum(out + residual, 0.0)


def tree_forward_ref(x_nchw, params):
    x = jnp.transpose(x_nchw, (0, 2, 3, 1))
    bottom = lax.reduce_window(x, -jnp.inf, lax.max, (1, 2, 2, 1), (1, 2, 2, 1),
                               "VALID") if STRIDE > 1 else x
    residual = (bn_ref(conv_ref(bottom, params["project"]["w"], 1, 1, 1),
                       params["project"]["bn"]) if CIN != COUT else bottom)
    children = [bottom] if LEVEL_ROOT else []
    x1 = basic_block_ref(x, params["tree1"], residual, STRIDE, DILATION)
    x2 = basic_block_ref(x1, params["tree2"], x1, 1, DILATION)
    cat = jnp.concatenate([x2, x1] + children, axis=-1)
    out = bn_ref(conv_ref(cat, params["root"]["w"], 1, 1, 1), params["root"]["bn"])
    if ROOT_RESIDUAL:
        out = out + x2
    out = jnp.maximum(out, 0.0)
    return jnp.transpose(out, (0, 3, 1, 2))


# ------------------------------ param init -----------------------------------
def init_params(key):
    ks = iter(jax.random.split(key, 32))

    def conv_w(cout, cin, kh, kw):
        fan = cin * kh * kw
        return jax.random.normal(next(ks), (cout, cin, kh, kw), jnp.float32) * (2.0 / fan) ** 0.5

    def bn(c):
        return dict(
            gamma=jax.random.uniform(next(ks), (c,), jnp.float32, 0.5, 1.5),
            beta=0.1 * jax.random.normal(next(ks), (c,), jnp.float32),
            mean=0.1 * jax.random.normal(next(ks), (c,), jnp.float32),
            var=jax.random.uniform(next(ks), (c,), jnp.float32, 0.5, 1.5),
        )

    return {
        "project": {"w": conv_w(COUT, CIN, 1, 1), "bn": bn(COUT)},
        "tree1": {"w1": conv_w(COUT, CIN, 3, 3), "bn1": bn(COUT),
                  "w2": conv_w(COUT, COUT, 3, 3), "bn2": bn(COUT)},
        "tree2": {"w1": conv_w(COUT, COUT, 3, 3), "bn1": bn(COUT),
                  "w2": conv_w(COUT, COUT, 3, 3), "bn2": bn(COUT)},
        "root": {"w": conv_w(COUT, ROOT_DIM, 1, 1), "bn": bn(COUT)},
    }


# --------------------------------- main ---------------------------------------
if __name__ == "__main__":
    key = jax.random.PRNGKey(0)
    kx, kp = jax.random.split(key)
    x = jax.random.normal(kx, (N, CIN, H, W), jnp.float32)
    params = init_params(kp)

    out = jax.jit(tree_forward_pallas)(x, params)
    out = jax.block_until_ready(out)

    ref = tree_forward_ref(x, params)
    assert out.shape == (N, COUT, H // STRIDE, W // STRIDE), out.shape
    max_err = float(jnp.max(jnp.abs(out - ref)))
    assert max_err < 5e-2, f"max abs error too large: {max_err}"

    print("KERNEL_OK")
</pallas_src>

<mosaic_0001>
module attributes {stable_mosaic.version = 11 : i64} {
  func.func @_tree_kernel(%arg0: memref<2x9x9x16xf32, #tpu.memory_space<vmem>>, %arg1: memref<2x9x9x16xf32, #tpu.memory_space<vmem>>, %arg2: memref<2x9x9x16xf32, #tpu.memory_space<vmem>>, %arg3: memref<2x9x9x16xf32, #tpu.memory_space<vmem>>, %arg4: memref<144x32xf32, #tpu.memory_space<vmem>>, %arg5: memref<288x32xf32, #tpu.memory_space<vmem>>, %arg6: memref<288x32xf32, #tpu.memory_space<vmem>>, %arg7: memref<288x32xf32, #tpu.memory_space<vmem>>, %arg8: memref<16x32xf32, #tpu.memory_space<vmem>>, %arg9: memref<80x32xf32, #tpu.memory_space<vmem>>, %arg10: memref<6x32xf32, #tpu.memory_space<vmem>>, %arg11: memref<128x32xf32, #tpu.memory_space<vmem>>, %arg12: memref<2x10x10x32xf32, #tpu.memory_space<vmem>>) attributes {dimension_semantics = [], scalar_prefetch = 0 : i64, scratch_operands = 1 : i64, tpu.core_type = #tpu.core_type<tc>} {
    %c0 = arith.constant 0 : index
    %c0_0 = arith.constant 0 : index
    %c0_1 = arith.constant 0 : index
    %c0_2 = arith.constant 0 : index
    %0 = vector.load %arg3[%c0, %c0_0, %c0_1, %c0_2] : memref<2x9x9x16xf32, #tpu.memory_space<vmem>>, vector<2x8x8x16xf32>
    %c0_3 = arith.constant 0 : index
    %c0_4 = arith.constant 0 : index
    %c1 = arith.constant 1 : index
    %c0_5 = arith.constant 0 : index
    %1 = vector.load %arg2[%c0_3, %c0_4, %c1, %c0_5] : memref<2x9x9x16xf32, #tpu.memory_space<vmem>>, vector<2x8x8x16xf32>
    %2 = arith.maximumf %0, %1 : vector<2x8x8x16xf32>
    %c0_6 = arith.constant 0 : index
    %c1_7 = arith.constant 1 : index
    %c0_8 = arith.constant 0 : index
    %c0_9 = arith.constant 0 : index
    %3 = vector.load %arg1[%c0_6, %c1_7, %c0_8, %c0_9] : memref<2x9x9x16xf32, #tpu.memory_space<vmem>>, vector<2x8x8x16xf32>
    %c0_10 = arith.constant 0 : index
    %c1_11 = arith.constant 1 : index
    %c1_12 = arith.constant 1 : index
    %c0_13 = arith.constant 0 : index
    %4 = vector.load %arg0[%c0_10, %c1_11, %c1_12, %c0_13] : memref<2x9x9x16xf32, #tpu.memory_space<vmem>>, vector<2x8x8x16xf32>
    %5 = arith.maximumf %3, %4 : vector<2x8x8x16xf32>
    %6 = arith.maximumf %2, %5 : vector<2x8x8x16xf32>
    %7 = vector.shape_cast %6 : vector<2x8x8x16xf32> to vector<128x16xf32>
    %c0_14 = arith.constant 0 : index
    %c0_15 = arith.constant 0 : index
    %8 = vector.load %arg8[%c0_14, %c0_15] : memref<16x32xf32, #tpu.memory_space<vmem>>, vector<16x32xf32>
    %cst = arith.constant dense<0.000000e+00> : vector<128x32xf32>
    %9 = tpu.matmul %7, %8, %cst {dimension_numbers = #tpu.dot_dimension_numbers<[1], [0], [0], [1], [0, 0, 1, 1], [], []>} : vector<128x16xf32>, vector<16x32xf32>, vector<128x32xf32> -> vector<128x32xf32>
    %c4 = arith.constant 4 : index
    %c0_16 = arith.constant 0 : index
    %10 = vector.load %arg10[%c4, %c0_16] : memref<6x32xf32, #tpu.memory_space<vmem>>, vector<1x32xf32>
    %11 = vector.broadcast %10 : vector<1x32xf32> to vector<128x32xf32>
    %12 = arith.addf %9, %11 : vector<128x32xf32>
    %cst_17 = arith.constant 0.000000e+00 : f32
    %13 = vector.broadcast %cst_17 : f32 to vector<2x10x10x32xf32>
    %c0_18 = arith.constant 0 : index
    %c0_19 = arith.constant 0 : index
    %c0_20 = arith.constant 0 : index
    %c0_21 = arith.constant 0 : index
    %14 = vector.load %arg12[%c0_18, %c0_19, %c0_20, %c0_21] : memref<2x10x10x32xf32, #tpu.memory_space<vmem>>, vector<2x10x10x32xf32>
    tpu.vector_store %arg12[%c0_18, %c0_19, %c0_20, %c0_21], %13 {strides = array<i32>} : memref<2x10x10x32xf32, #tpu.memory_space<vmem>>, vector<2x10x10x32xf32>,
    %c0_22 = arith.constant 0 : index
    %c0_23 = arith.constant 0 : index
    %c0_24 = arith.constant 0 : index
    %c0_25 = arith.constant 0 : index
    %15 = vector.load %arg0[%c0_22, %c0_23, %c0_24, %c0_25] : memref<2x9x9x16xf32, #tpu.memory_space<vmem>>, vector<2x8x8x16xf32>
    %16 = vector.shape_cast %15 : vector<2x8x8x16xf32> to vector<128x16xf32>
    %c0_26 = arith.constant 0 : index
    %c0_27 = arith.constant 0 : index
    %17 = vector.load %arg4[%c0_26, %c0_27] : memref<144x32xf32, #tpu.memory_space<vmem>>, vector<16x32xf32>
    %cst_28 = arith.constant dense<0.000000e+00> : vector<128x32xf32>
    %18 = tpu.matmul %16, %17, %cst_28 {dimension_numbers = #tpu.dot_dimension_numbers<[1], [0], [0], [1], [0, 0, 1, 1], [], []>} : vector<128x16xf32>, vector<16x32xf32>, vector<128x32xf32> -> vector<128x32xf32>
    %c0_29 = arith.constant 0 : index
    %c0_30 = arith.constant 0 : index
    %c0_31 = arith.constant 0 : index
    %c0_32 = arith.constant 0 : index
    %19 = vector.load %arg1[%c0_29, %c0_30, %c0_31, %c0_32] : memref<2x9x9x16xf32, #tpu.memory_space<vmem>>, vector<2x8x8x16xf32>
    %20 = vector.shape_cast %19 : vector<2x8x8x16xf32> to vector<128x16xf32>
    %c16 = arith.constant 16 : index
    %c0_33 = arith.constant 0 : index
    %21 = vector.load %arg4[%c16, %c0_33] : memref<144x32xf32, #tpu.memory_space<vmem>>, vector<16x32xf32>
    %cst_34 = arith.constant dense<0.000000e+00> : vector<128x32xf32>
    %22 = tpu.matmul %20, %21, %cst_34 {dimension_numbers = #tpu.dot_dimension_numbers<[1], [0], [0], [1], [0, 0, 1, 1], [], []>} : vector<128x16xf32>, vector<16x32xf32>, vector<128x32xf32> -> vector<128x32xf32>
    %23 = arith.addf %18, %22 : vector<128x32xf32>
    %c0_35 = arith.constant 0 : index
    %c0_36 = arith.constant 0 : index
    %c1_37 = arith.constant 1 : index
    %c0_38 = arith.constant 0 : index
    %24 = vector.load %arg0[%c0_35, %c0_36, %c1_37, %c0_38] : memref<2x9x9x16xf32, #tpu.memory_space<vmem>>, vector<2x8x8x16xf32>
    %25 = vector.shape_cast %24 : vector<2x8x8x16xf32> to vector<128x16xf32>
    %c32 = arith.constant 32 : index
    %c0_39 = arith.constant 0 : index
    %26 = vector.load %arg4[%c32, %c0_39] : memref<144x32xf32, #tpu.memory_space<vmem>>, vector<16x32xf32>
    %cst_40 = arith.constant dense<0.000000e+00> : vector<128x32xf32>
    %27 = tpu.matmul %25, %26, %cst_40 {dimension_numbers = #tpu.dot_dimension_numbers<[1], [0], [0], [1], [0, 0, 1, 1], [], []>} : vector<128x16xf32>, vector<16x32xf32>, vector<128x32xf32> -> vector<128x32xf32>
    %28 = arith.addf %23, %27 : vector<128x32xf32>
    %c0_41 = arith.constant 0 : index
    %c0_42 = arith.constant 0 : index
    %c0_43 = arith.constant 0 : index
    %c0_44 = arith.constant 0 : index
    %29 = vector.load %arg2[%c0_41, %c0_42, %c0_43, %c0_44] : memref<2x9x9x16xf32, #tpu.memory_space<vmem>>, vector<2x8x8x16xf32>
    %30 = vector.shape_cast %29 : vector<2x8x8x16xf32> to vector<128x16xf32>
    %c48 = arith.constant 48 : index
    %c0_45 = arith.constant 0 : index
    %31 = vector.load %arg4[%c48, %c0_45] : memref<144x32xf32, #tpu.memory_space<vmem>>, vector<16x32xf32>
    %cst_46 = arith.constant dense<0.000000e+00> : vector<128x32xf32>
    %32 = tpu.matmul %30, %31, %cst_46 {dimension_numbers = #tpu.dot_dimension_numbers<[1], [0], [0], [1], [0, 0, 1, 1], [], []>} : vector<128x16xf32>, vector<16x32xf32>, vector<128x32xf32> -> vector<128x32xf32>
    %33 = arith.addf %28, %32 : vector<128x32xf32>
    %c0_47 = arith.constant 0 : index
    %c0_48 = arith.constant 0 : index
    %c0_49 = arith.constant 0 : index
    %c0_50 = arith.constant 0 : index
    %34 = vector.load %arg3[%c0_47, %c0_48, %c0_49, %c0_50] : memref<2x9x9x16xf32, #tpu.memory_space<vmem>>, vector<2x8x8x16xf32>
    %35 = vector.shape_cast %34 : vector<2x8x8x16xf32> to vector<128x16xf32>
    %c64 = arith.constant 64 : index
    %c0_51 = arith.constant 0 : index
    %36 = vector.load %arg4[%c64, %c0_51] : memref<144x32xf32, #tpu.memory_space<vmem>>, vector<16x32xf32>
    %cst_52 = arith.constant dense<0.000000e+00> : vector<128x32xf32>
    %37 = tpu.matmul %35, %36, %cst_52 {dimension_numbers = #tpu.dot_dimension_numbers<[1], [0], [0], [1], [0, 0, 1, 1], [], []>} : vector<128x16xf32>, vector<16x32xf32>, vector<128x32xf32> -> vector<128x32xf32>
    %38 = arith.addf %33, %37 : vector<128x32xf32>
    %c0_53 = arith.constant 0 : index
    %c0_54 = arith.constant 0 : index
    %c1_55 = arith.constant 1 : index
    %c0_56 = arith.constant 0 : index
    %39 = vector.load %arg2[%c0_53, %c0_54, %c1_55, %c0_56] : memref<2x9x9x16xf32, #tpu.memory_space<vmem>>, vector<2x8x8x16xf32>
    %40 = vector.shape_cast %39 : vector<2x8x8x16xf32> to vector<128x16xf32>
    %c80 = arith.constant 80 : index
    %c0_57 = arith.constant 0 : index
    %41 = vector.load %arg4[%c80, %c0_57] : memref<144x32xf32, #tpu.memory_space<vmem>>, vector<16x32xf32>
    %cst_58 = arith.constant dense<0.000000e+00> : vector<128x32xf32>
    %42 = tpu.matmul %40, %41, %cst_58 {dimension_numbers = #tpu.dot_dimension_numbers<[1], [0], [0], [1], [0, 0, 1, 1], [], []>} : vector<128x16xf32>, vector<16x32xf32>, vector<128x32xf32> -> vector<128x32xf32>
    %43 = arith.addf %38, %42 : vector<128x32xf32>
    %c0_59 = arith.constant 0 : index
    %c1_60 = arith.constant 1 : index
    %c0_61 = arith.constant 0 : index
    %c0_62 = arith.constant 0 : index
    %44 = vector.load %arg0[%c0_59, %c1_60, %c0_61, %c0_62] : memref<2x9x9x16xf32, #tpu.memory_space<vmem>>, vector<2x8x8x16xf32>
    %45 = vector.shape_cast %44 : vector<2x8x8x16xf32> to vector<128x16xf32>
    %c96 = arith.constant 96 : index
    %c0_63 = arith.constant 0 : index
    %46 = vector.load %arg4[%c96, %c0_63] : memref<144x32xf32, #tpu.memory_space<vmem>>, vector<16x32xf32>
    %cst_64 = arith.constant dense<0.000000e+00> : vector<128x32xf32>
    %47 = tpu.matmul %45, %46, %cst_64 {dimension_numbers = #tpu.dot_dimension_numbers<[1], [0], [0], [1], [0, 0, 1, 1], [], []>} : vector<128x16xf32>, vector<16x32xf32>, vector<128x32xf32> -> vector<128x32xf32>
    %48 = arith.addf %43, %47 : vector<128x32xf32>
    %c0_65 = arith.constant 0 : index
    %c1_66 = arith.constant 1 : index
    %c0_67 = arith.constant 0 : index
    %c0_68 = arith.constant 0 : index
    %49 = vector.load %arg1[%c0_65, %c1_66, %c0_67, %c0_68] : memref<2x9x9x16xf32, #tpu.memory_space<vmem>>, vector<2x8x8x16xf32>
    %50 = vector.shape_cast %49 : vector<2x8x8x16xf32> to vector<128x16xf32>
    %c112 = arith.constant 112 : index
    %c0_69 = arith.constant 0 : index
    %51 = vector.load %arg4[%c112, %c0_69] : memref<144x32xf32, #tpu.memory_space<vmem>>, vector<16x32xf32>
    %cst_70 = arith.constant dense<0.000000e+00> : vector<128x32xf32>
    %52 = tpu.matmul %50, %51, %cst_70 {dimension_numbers = #tpu.dot_dimension_numbers<[1], [0], [0], [1], [0, 0, 1, 1], [], []>} : vector<128x16xf32>, vector<16x32xf32>, vector<128x32xf32> -> vector<128x32xf32>
    %53 = arith.addf %48, %52 : vector<128x32xf32>
    %c0_71 = arith.constant 0 : index
    %c1_72 = arith.constant 1 : index
    %c1_73 = arith.constant 1 : index
    %c0_74 = arith.constant 0 : index
    %54 = vector.load %arg0[%c0_71, %c1_72, %c1_73, %c0_74] : memref<2x9x9x16xf32, #tpu.memory_space<vmem>>, vector<2x8x8x16xf32>
    %55 = vector.shape_cast %54 : vector<2x8x8x16xf32> to vector<128x16xf32>
    %c128 = arith.constant 128 : index
    %c0_75 = arith.constant 0 : index
    %56 = vector.load %arg4[%c128, %c0_75] : memref<144x32xf32, #tpu.memory_space<vmem>>, vector<16x32xf32>
    %cst_76 = arith.constant dense<0.000000e+00> : vector<128x32xf32>
    %57 = tpu.matmul %55, %56, %cst_76 {dimension_numbers = #tpu.dot_dimension_numbers<[1], [0], [0], [1], [0, 0, 1, 1], [], []>} : vector<128x16xf32>, vector<16x32xf32>, vector<128x32xf32> -> vector<128x32xf32>
    %58 = arith.addf %53, %57 : vector<128x32xf32>
    %c0_77 = arith.constant 0 : index
    %c0_78 = arith.constant 0 : index
    %59 = vector.load %arg10[%c0_77, %c0_78] : memref<6x32xf32, #tpu.memory_space<vmem>>, vector<1x32xf32>
    %60 = vector.broadcast %59 : vector<1x32xf32> to vector<128x32xf32>
    %61 = arith.addf %58, %60 : vector<128x32xf32>
    %cst_79 = arith.constant 0.000000e+00 : f32
    %62 = vector.broadcast %cst_79 : f32 to vector<128x32xf32>
    %63 = arith.maximumf %61, %62 : vector<128x32xf32>
    %64 = vector.shape_cast %63 : vector<128x32xf32> to vector<2x8x8x32xf32>
    %c0_80 = arith.constant 0 : index
    %c1_81 = arith.constant 1 : index
    %c1_82 = arith.constant 1 : index
    %c0_83 = arith.constant 0 : index
    %65 = vector.load %arg12[%c0_80, %c1_81, %c1_82, %c0_83] : memref<2x10x10x32xf32, #tpu.memory_space<vmem>>, vector<2x8x8x32xf32>
    tpu.vector_store %arg12[%c0_80, %c1_81, %c1_82, %c0_83], %64 {strides = array<i32>} : memref<2x10x10x32xf32, #tpu.memory_space<vmem>>, vector<2x8x8x32xf32>,
    %c0_84 = arith.constant 0 : index
    %c0_85 = arith.constant 0 : index
    %c0_86 = arith.constant 0 : index
    %c0_87 = arith.constant 0 : index
    %66 = vector.load %arg12[%c0_84, %c0_85, %c0_86, %c0_87] : memref<2x10x10x32xf32, #tpu.memory_space<vmem>>, vector<2x8x8x32xf32>
    %67 = vector.shape_cast %66 : vector<2x8x8x32xf32> to vector<128x32xf32>
    %c0_88 = arith.constant 0 : index
    %c0_89 = arith.constant 0 : index
    %68 = vector.load %arg5[%c0_88, %c0_89] : memref<288x32xf32, #tpu.memory_space<vmem>>, vector<32x32xf32>
    %cst_90 = arith.constant dense<0.000000e+00> : vector<128x32xf32>
    %69 = tpu.matmul %67, %68, %cst_90 {dimension_numbers = #tpu.dot_dimension_numbers<[1], [0], [0], [1], [0, 0, 1, 1], [], []>} : vector<128x32xf32>, vector<32x32xf32>, vector<128x32xf32> -> vector<128x32xf32>
    %c0_91 = arith.constant 0 : index
    %c0_92 = arith.constant 0 : index
    %c1_93 = arith.constant 1 : index
    %c0_94 = arith.constant 0 : index
    %70 = vector.load %arg12[%c0_91, %c0_92, %c1_93, %c0_94] : memref<2x10x10x32xf32, #tpu.memory_space<vmem>>, vector<2x8x8x32xf32>
    %71 = vector.shape_cast %70 : vector<2x8x8x32xf32> to vector<128x32xf32>
    %c32_95 = arith.constant 32 : index
    %c0_96 = arith.constant 0 : index
    %72 = vector.load %arg5[%c32_95, %c0_96] : memref<288x32xf32, #tpu.memory_space<vmem>>, vector<32x32xf32>
    %cst_97 = arith.constant dense<0.000000e+00> : vector<128x32xf32>
    %73 = tpu.matmul %71, %72, %cst_97 {dimension_numbers = #tpu.dot_dimension_numbers<[1], [0], [0], [1], [0, 0, 1, 1], [], []>} : vector<128x32xf32>, vector<32x32xf32>, vector<128x32xf32> -> vector<128x32xf32>
    %74 = arith.addf %69, %73 : vector<128x32xf32>
    %c0_98 = arith.constant 0 : index
    %c0_99 = arith.constant 0 : index
    %c2 = arith.constant 2 : index
    %c0_100 = arith.constant 0 : index
    %75 = vector.load %arg12[%c0_98, %c0_99, %c2, %c0_100] : memref<2x10x10x32xf32, #tpu.memory_space<vmem>>, vector<2x8x8x32xf32>
    %76 = vector.shape_cast %75 : vector<2x8x8x32xf32> to vector<128x32xf32>
    %c64_101 = arith.constant 64 : index
    %c0_102 = arith.constant 0 : index
    %77 = vector.load %arg5[%c64_101, %c0_102] : memref<288x32xf32, #tpu.memory_space<vmem>>, vector<32x32xf32>
    %cst_103 = arith.constant dense<0.000000e+00> : vector<128x32xf32>
    %78 = tpu.matmul %76, %77, %cst_103 {dimension_numbers = #tpu.dot_dimension_numbers<[1], [0], [0], [1], [0, 0, 1, 1], [], []>} : vector<128x32xf32>, vector<32x32xf32>, vector<128x32xf32> -> vector<128x32xf32>
    %79 = arith.addf %74, %78 : vector<128x32xf32>
    %c0_104 = arith.constant 0 : index
    %c1_105 = arith.constant 1 : index
    %c0_106 = arith.constant 0 : index
    %c0_107 = arith.constant 0 : index
    %80 = vector.load %arg12[%c0_104, %c1_105, %c0_106, %c0_107] : memref<2x10x10x32xf32, #tpu.memory_space<vmem>>, vector<2x8x8x32xf32>
    %81 = vector.shape_cast %80 : vector<2x8x8x32xf32> to vector<128x32xf32>
    %c96_108 = arith.constant 96 : index
    %c0_109 = arith.constant 0 : index
    %82 = vector.load %arg5[%c96_108, %c0_109] : memref<288x32xf32, #tpu.memory_space<vmem>>, vector<32x32xf32>
    %cst_110 = arith.constant dense<0.000000e+00> : vector<128x32xf32>
    %83 = tpu.matmul %81, %82, %cst_110 {dimension_numbers = #tpu.dot_dimension_numbers<[1], [0], [0], [1], [0, 0, 1, 1], [], []>} : vector<128x32xf32>, vector<32x32xf32>, vector<128x32xf32> -> vector<128x32xf32>
    %84 = arith.addf %79, %83 : vector<128x32xf32>
    %c0_111 = arith.constant 0 : index
    %c1_112 = arith.constant 1 : index
    %c1_113 = arith.constant 1 : index
    %c0_114 = arith.constant 0 : index
    %85 = vector.load %arg12[%c0_111, %c1_112, %c1_113, %c0_114] : memref<2x10x10x32xf32, #tpu.memory_space<vmem>>, vector<2x8x8x32xf32>
    %86 = vector.shape_cast %85 : vector<2x8x8x32xf32> to vector<128x32xf32>
    %c128_115 = arith.constant 128 : index
    %c0_116 = arith.constant 0 : index
    %87 = vector.load %arg5[%c128_115, %c0_116] : memref<288x32xf32, #tpu.memory_space<vmem>>, vector<32x32xf32>
    %cst_117 = arith.constant dense<0.000000e+00> : vector<128x32xf32>
    %88 = tpu.matmul %86, %87, %cst_117 {dimension_numbers = #tpu.dot_dimension_numbers<[1], [0], [0], [1], [0, 0, 1, 1], [], []>} : vector<128x32xf32>, vector<32x32xf32>, vector<128x32xf32> -> vector<128x32xf32>
    %89 = arith.addf %84, %88 : vector<128x32xf32>
    %c0_118 = arith.constant 0 : index
    %c1_119 = arith.constant 1 : index
    %c2_120 = arith.constant 2 : index
    %c0_121 = arith.constant 0 : index
    %90 = vector.load %arg12[%c0_118, %c1_119, %c2_120, %c0_121] : memref<2x10x10x32xf32, #tpu.memory_space<vmem>>, vector<2x8x8x32xf32>
    %91 = vector.shape_cast %90 : vector<2x8x8x32xf32> to vector<128x32xf32>
    %c160 = arith.constant 160 : index
    %c0_122 = arith.constant 0 : index
    %92 = vector.load %arg5[%c160, %c0_122] : memref<288x32xf32, #tpu.memory_space<vmem>>, vector<32x32xf32>
    %cst_123 = arith.constant dense<0.000000e+00> : vector<128x32xf32>
    %93 = tpu.matmul %91, %92, %cst_123 {dimension_numbers = #tpu.dot_dimension_numbers<[1], [0], [0], [1], [0, 0, 1, 1], [], []>} : vector<128x32xf32>, vector<32x32xf32>, vector<128x32xf32> -> vector<128x32xf32>
    %94 = arith.addf %89, %93 : vector<128x32xf32>
    %c0_124 = arith.constant 0 : index
    %c2_125 = arith.constant 2 : index
    %c0_126 = arith.constant 0 : index
    %c0_127 = arith.constant 0 : index
    %95 = vector.load %arg12[%c0_124, %c2_125, %c0_126, %c0_127] : memref<2x10x10x32xf32, #tpu.memory_space<vmem>>, vector<2x8x8x32xf32>
    %96 = vector.shape_cast %95 : vector<2x8x8x32xf32> to vector<128x32xf32>
    %c192 = arith.constant 192 : index
    %c0_128 = arith.constant 0 : index
    %97 = vector.load %arg5[%c192, %c0_128] : memref<288x32xf32, #tpu.memory_space<vmem>>, vector<32x32xf32>
    %cst_129 = arith.constant dense<0.000000e+00> : vector<128x32xf32>
    %98 = tpu.matmul %96, %97, %cst_129 {dimension_numbers = #tpu.dot_dimension_numbers<[1], [0], [0], [1], [0, 0, 1, 1], [], []>} : vector<128x32xf32>, vector<32x32xf32>, vector<128x32xf32> -> vector<128x32xf32>
    %99 = arith.addf %94, %98 : vector<128x32xf32>
    %c0_130 = arith.constant 0 : index
    %c2_131 = arith.constant 2 : index
    %c1_132 = arith.constant 1 : index
    %c0_133 = arith.constant 0 : index
    %100 = vector.load %arg12[%c0_130, %c2_131, %c1_132, %c0_133] : memref<2x10x10x32xf32, #tpu.memory_space<vmem>>, vector<2x8x8x32xf32>
    %101 = vector.shape_cast %100 : vector<2x8x8x32xf32> to vector<128x32xf32>
    %c224 = arith.constant 224 : index
    %c0_134 = arith.constant 0 : index
    %102 = vector.load %arg5[%c224, %c0_134] : memref<288x32xf32, #tpu.memory_space<vmem>>, vector<32x32xf32>
    %cst_135 = arith.constant dense<0.000000e+00> : vector<128x32xf32>
    %103 = tpu.matmul %101, %102, %cst_135 {dimension_numbers = #tpu.dot_dimension_numbers<[1], [0], [0], [1], [0, 0, 1, 1], [], []>} : vector<128x32xf32>, vector<32x32xf32>, vector<128x32xf32> -> vector<128x32xf32>
    %104 = arith.addf %99, %103 : vector<128x32xf32>
    %c0_136 = arith.constant 0 : index
    %c2_137 = arith.constant 2 : index
    %c2_138 = arith.constant 2 : index
    %c0_139 = arith.constant 0 : index
    %105 = vector.load %arg12[%c0_136, %c2_137, %c2_138, %c0_139] : memref<2x10x10x32xf32, #tpu.memory_space<vmem>>, vector<2x8x8x32xf32>
    %106 = vector.shape_cast %105 : vector<2x8x8x32xf32> to vector<128x32xf32>
    %c256 = arith.constant 256 : index
    %c0_140 = arith.constant 0 : index
    %107 = vector.load %arg5[%c256, %c0_140] : memref<288x32xf32, #tpu.memory_space<vmem>>, vector<32x32xf32>
    %cst_141 = arith.constant dense<0.000000e+00> : vector<128x32xf32>
    %108 = tpu.matmul %106, %107, %cst_141 {dimension_numbers = #tpu.dot_dimension_numbers<[1], [0], [0], [1], [0, 0, 1, 1], [], []>} : vector<128x32xf32>, vector<32x32xf32>, vector<128x32xf32> -> vector<128x32xf32>
    %109 = arith.addf %104, %108 : vector<128x32xf32>
    %c1_142 = arith.constant 1 : index
    %c0_143 = arith.constant 0 : index
    %110 = vector.load %arg10[%c1_142, %c0_143] : memref<6x32xf32, #tpu.memory_space<vmem>>, vector<1x32xf32>
    %111 = vector.broadcast %110 : vector<1x32xf32> to vector<128x32xf32>
    %112 = arith.addf %109, %111 : vector<128x32xf32>
    %113 = arith.addf %112, %12 : vector<128x32xf32>
    %cst_144 = arith.constant 0.000000e+00 : f32
    %114 = vector.broadcast %cst_144 : f32 to vector<128x32xf32>
    %115 = arith.maximumf %113, %114 : vector<128x32xf32>
    %116 = vector.shape_cast %115 : vector<128x32xf32> to vector<2x8x8x32xf32>
    %c0_145 = arith.constant 0 : index
    %c1_146 = arith.constant 1 : index
    %c1_147 = arith.constant 1 : index
    %c0_148 = arith.constant 0 : index
    %117 = vector.load %arg12[%c0_145, %c1_146, %c1_147, %c0_148] : memref<2x10x10x32xf32, #tpu.memory_space<vmem>>, vector<2x8x8x32xf32>
    tpu.vector_store %arg12[%c0_145, %c1_146, %c1_147, %c0_148], %116 {strides = array<i32>} : memref<2x10x10x32xf32, #tpu.memory_space<vmem>>, vector<2x8x8x32xf32>,
    %c0_149 = arith.constant 0 : index
    %c0_150 = arith.constant 0 : index
    %c0_151 = arith.constant 0 : index
    %c0_152 = arith.constant 0 : index
    %118 = vector.load %arg12[%c0_149, %c0_150, %c0_151, %c0_152] : memref<2x10x10x32xf32, #tpu.memory_space<vmem>>, vector<2x8x8x32xf32>
    %119 = vector.shape_cast %118 : vector<2x8x8x32xf32> to vector<128x32xf32>
    %c0_153 = arith.constant 0 : index
    %c0_154 = arith.constant 0 : index
    %120 = vector.load %arg6[%c0_153, %c0_154] : memref<288x32xf32, #tpu.memory_space<vmem>>, vector<32x32xf32>
    %cst_155 = arith.constant dense<0.000000e+00> : vector<128x32xf32>
    %121 = tpu.matmul %119, %120, %cst_155 {dimension_numbers = #tpu.dot_dimension_numbers<[1], [0], [0], [1], [0, 0, 1, 1], [], []>} : vector<128x32xf32>, vector<32x32xf32>, vector<128x32xf32> -> vector<128x32xf32>
    %c0_156 = arith.constant 0 : index
    %c0_157 = arith.constant 0 : index
    %c1_158 = arith.constant 1 : index
    %c0_159 = arith.constant 0 : index
    %122 = vector.load %arg12[%c0_156, %c0_157, %c1_158, %c0_159] : memref<2x10x10x32xf32, #tpu.memory_space<vmem>>, vector<2x8x8x32xf32>
    %123 = vector.shape_cast %122 : vector<2x8x8x32xf32> to vector<128x32xf32>
    %c32_160 = arith.constant 32 : index
    %c0_161 = arith.constant 0 : index
    %124 = vector.load %arg6[%c32_160, %c0_161] : memref<288x32xf32, #tpu.memory_space<vmem>>, vector<32x32xf32>
    %cst_162 = arith.constant dense<0.000000e+00> : vector<128x32xf32>
    %125 = tpu.matmul %123, %124, %cst_162 {dimension_numbers = #tpu.dot_dimension_numbers<[1], [0], [0], [1], [0, 0, 1, 1], [], []>} : vector<128x32xf32>, vector<32x32xf32>, vector<128x32xf32> -> vector<128x32xf32>
    %126 = arith.addf %121, %125 : vector<128x32xf32>
    %c0_163 = arith.constant 0 : index
    %c0_164 = arith.constant 0 : index
    %c2_165 = arith.constant 2 : index
    %c0_166 = arith.constant 0 : index
    %127 = vector.load %arg12[%c0_163, %c0_164, %c2_165, %c0_166] : memref<2x10x10x32xf32, #tpu.memory_space<vmem>>, vector<2x8x8x32xf32>
    %128 = vector.shape_cast %127 : vector<2x8x8x32xf32> to vector<128x32xf32>
    %c64_167 = arith.constant 64 : index
    %c0_168 = arith.constant 0 : index
    %129 = vector.load %arg6[%c64_167, %c0_168] : memref<288x32xf32, #tpu.memory_space<vmem>>, vector<32x32xf32>
    %cst_169 = arith.constant dense<0.000000e+00> : vector<128x32xf32>
    %130 = tpu.matmul %128, %129, %cst_169 {dimension_numbers = #tpu.dot_dimension_numbers<[1], [0], [0], [1], [0, 0, 1, 1], [], []>} : vector<128x32xf32>, vector<32x32xf32>, vector<128x32xf32> -> vector<128x32xf32>
    %131 = arith.addf %126, %130 : vector<128x32xf32>
    %c0_170 = arith.constant 0 : index
    %c1_171 = arith.constant 1 : index
    %c0_172 = arith.constant 0 : index
    %c0_173 = arith.constant 0 : index
    %132 = vector.load %arg12[%c0_170, %c1_171, %c0_172, %c0_173] : memref<2x10x10x32xf32, #tpu.memory_space<vmem>>, vector<2x8x8x32xf32>
    %133 = vector.shape_cast %132 : vector<2x8x8x32xf32> to vector<128x32xf32>
    %c96_174 = arith.constant 96 : index
    %c0_175 = arith.constant 0 : index
    %134 = vector.load %arg6[%c96_174, %c0_175] : memref<288x32xf32, #tpu.memory_space<vmem>>, vector<32x32xf32>
    %cst_176 = arith.constant dense<0.000000e+00> : vector<128x32xf32>
    %135 = tpu.matmul %133, %134, %cst_176 {dimension_numbers = #tpu.dot_dimension_numbers<[1], [0], [0], [1], [0, 0, 1, 1], [], []>} : vector<128x32xf32>, vector<32x32xf32>, vector<128x32xf32> -> vector<128x32xf32>
    %136 = arith.addf %131, %135 : vector<128x32xf32>
    %c0_177 = arith.constant 0 : index
    %c1_178 = arith.constant 1 : index
    %c1_179 = arith.constant 1 : index
    %c0_180 = arith.constant 0 : index
    %137 = vector.load %arg12[%c0_177, %c1_178, %c1_179, %c0_180] : memref<2x10x10x32xf32, #tpu.memory_space<vmem>>, vector<2x8x8x32xf32>
    %138 = vector.shape_cast %137 : vector<2x8x8x32xf32> to vector<128x32xf32>
    %c128_181 = arith.constant 128 : index
    %c0_182 = arith.constant 0 : index
    %139 = vector.load %arg6[%c128_181, %c0_182] : memref<288x32xf32, #tpu.memory_space<vmem>>, vector<32x32xf32>
    %cst_183 = arith.constant dense<0.000000e+00> : vector<128x32xf32>
    %140 = tpu.matmul %138, %139, %cst_183 {dimension_numbers = #tpu.dot_dimension_numbers<[1], [0], [0], [1], [0, 0, 1, 1], [], []>} : vector<128x32xf32>, vector<32x32xf32>, vector<128x32xf32> -> vector<128x32xf32>
    %141 = arith.addf %136, %140 : vector<128x32xf32>
    %c0_184 = arith.constant 0 : index
    %c1_185 = arith.constant 1 : index
    %c2_186 = arith.constant 2 : index
    %c0_187 = arith.constant 0 : index
    %142 = vector.load %arg12[%c0_184, %c1_185, %c2_186, %c0_187] : memref<2x10x10x32xf32, #tpu.memory_space<vmem>>, vector<2x8x8x32xf32>
    %143 = vector.shape_cast %142 : vector<2x8x8x32xf32> to vector<128x32xf32>
    %c160_188 = arith.constant 160 : index
    %c0_189 = arith.constant 0 : index
    %144 = vector.load %arg6[%c160_188, %c0_189] : memref<288x32xf32, #tpu.memory_space<vmem>>, vector<32x32xf32>
    %cst_190 = arith.constant dense<0.000000e+00> : vector<128x32xf32>
    %145 = tpu.matmul %143, %144, %cst_190 {dimension_numbers = #tpu.dot_dimension_numbers<[1], [0], [0], [1], [0, 0, 1, 1], [], []>} : vector<128x32xf32>, vector<32x32xf32>, vector<128x32xf32> -> vector<128x32xf32>
    %146 = arith.addf %141, %145 : vector<128x32xf32>
    %c0_191 = arith.constant 0 : index
    %c2_192 = arith.constant 2 : index
    %c0_193 = arith.constant 0 : index
    %c0_194 = arith.constant 0 : index
    %147 = vector.load %arg12[%c0_191, %c2_192, %c0_193, %c0_194] : memref<2x10x10x32xf32, #tpu.memory_space<vmem>>, vector<2x8x8x32xf32>
    %148 = vector.shape_cast %147 : vector<2x8x8x32xf32> to vector<128x32xf32>
    %c192_195 = arith.constant 192 : index
    %c0_196 = arith.constant 0 : index
    %149 = vector.load %arg6[%c192_195, %c0_196] : memref<288x32xf32, #tpu.memory_space<vmem>>, vector<32x32xf32>
    %cst_197 = arith.constant dense<0.000000e+00> : vector<128x32xf32>
    %150 = tpu.matmul %148, %149, %cst_197 {dimension_numbers = #tpu.dot_dimension_numbers<[1], [0], [0], [1], [0, 0, 1, 1], [], []>} : vector<128x32xf32>, vector<32x32xf32>, vector<128x32xf32> -> vector<128x32xf32>
    %151 = arith.addf %146, %150 : vector<128x32xf32>
    %c0_198 = arith.constant 0 : index
    %c2_199 = arith.constant 2 : index
    %c1_200 = arith.constant 1 : index
    %c0_201 = arith.constant 0 : index
    %152 = vector.load %arg12[%c0_198, %c2_199, %c1_200, %c0_201] : memref<2x10x10x32xf32, #tpu.memory_space<vmem>>, vector<2x8x8x32xf32>
    %153 = vector.shape_cast %152 : vector<2x8x8x32xf32> to vector<128x32xf32>
    %c224_202 = arith.constant 224 : index
    %c0_203 = arith.constant 0 : index
    %154 = vector.load %arg6[%c224_202, %c0_203] : memref<288x32xf32, #tpu.memory_space<vmem>>, vector<32x32xf32>
    %cst_204 = arith.constant dense<0.000000e+00> : vector<128x32xf32>
    %155 = tpu.matmul %153, %154, %cst_204 {dimension_numbers = #tpu.dot_dimension_numbers<[1], [0], [0], [1], [0, 0, 1, 1], [], []>} : vector<128x32xf32>, vector<32x32xf32>, vector<128x32xf32> -> vector<128x32xf32>
    %156 = arith.addf %151, %155 : vector<128x32xf32>
    %c0_205 = arith.constant 0 : index
    %c2_206 = arith.constant 2 : index
    %c2_207 = arith.constant 2 : index
    %c0_208 = arith.constant 0 : index
    %157 = vector.load %arg12[%c0_205, %c2_206, %c2_207, %c0_208] : memref<2x10x10x32xf32, #tpu.memory_space<vmem>>, vector<2x8x8x32xf32>
    %158 = vector.shape_cast %157 : vector<2x8x8x32xf32> to vector<128x32xf32>
    %c256_209 = arith.constant 256 : index
    %c0_210 = arith.constant 0 : index
    %159 = vector.load %arg6[%c256_209, %c0_210] : memref<288x32xf32, #tpu.memory_space<vmem>>, vector<32x32xf32>
    %cst_211 = arith.constant dense<0.000000e+00> : vector<128x32xf32>
    %160 = tpu.matmul %158, %159, %cst_211 {dimension_numbers = #tpu.dot_dimension_numbers<[1], [0], [0], [1], [0, 0, 1, 1], [], []>} : vector<128x32xf32>, vector<32x32xf32>, vector<128x32xf32> -> vector<128x32xf32>
    %161 = arith.addf %156, %160 : vector<128x32xf32>
    %c2_212 = arith.constant 2 : index
    %c0_213 = arith.constant 0 : index
    %162 = vector.load %arg10[%c2_212, %c0_213] : memref<6x32xf32, #tpu.memory_space<vmem>>, vector<1x32xf32>
    %163 = vector.broadcast %162 : vector<1x32xf32> to vector<128x32xf32>
    %164 = arith.addf %161, %163 : vector<128x32xf32>
    %cst_214 = arith.constant 0.000000e+00 : f32
    %165 = vector.broadcast %cst_214 : f32 to vector<128x32xf32>
    %166 = arith.maximumf %164, %165 : vector<128x32xf32>
    %167 = vector.shape_cast %166 : vector<128x32xf32> to vector<2x8x8x32xf32>
    %c0_215 = arith.constant 0 : index
    %c1_216 = arith.constant 1 : index
    %c1_217 = arith.constant 1 : index
    %c0_218 = arith.constant 0 : index
    %168 = vector.load %arg12[%c0_215, %c1_216, %c1_217, %c0_218] : memref<2x10x10x32xf32, #tpu.memory_space<vmem>>, vector<2x8x8x32xf32>
    tpu.vector_store %arg12[%c0_215, %c1_216, %c1_217, %c0_218], %167 {strides = array<i32>} : memref<2x10x10x32xf32, #tpu.memory_space<vmem>>, vector<2x8x8x32xf32>,
    %c0_219 = arith.constant 0 : index
    %c0_220 = arith.constant 0 : index
    %c0_221 = arith.constant 0 : index
    %c0_222 = arith.constant 0 : index
    %169 = vector.load %arg12[%c0_219, %c0_220, %c0_221, %c0_222] : memref<2x10x10x32xf32, #tpu.memory_space<vmem>>, vector<2x8x8x32xf32>
    %170 = vector.shape_cast %169 : vector<2x8x8x32xf32> to vector<128x32xf32>
    %c0_223 = arith.constant 0 : index
    %c0_224 = arith.constant 0 : index
    %171 = vector.load %arg7[%c0_223, %c0_224] : memref<288x32xf32, #tpu.memory_space<vmem>>, vector<32x32xf32>
    %cst_225 = arith.constant dense<0.000000e+00> : vector<128x32xf32>
    %172 = tpu.matmul %170, %171, %cst_225 {dimension_numbers = #tpu.dot_dimension_numbers<[1], [0], [0], [1], [0, 0, 1, 1], [], []>} : vector<128x32xf32>, vector<32x32xf32>, vector<128x32xf32> -> vector<128x32xf32>
    %c0_226 = arith.constant 0 : index
    %c0_227 = arith.constant 0 : index
    %c1_228 = arith.constant 1 : index
    %c0_229 = arith.constant 0 : index
    %173 = vector.load %arg12[%c0_226, %c0_227, %c1_228, %c0_229] : memref<2x10x10x32xf32, #tpu.memory_space<vmem>>, vector<2x8x8x32xf32>
    %174 = vector.shape_cast %173 : vector<2x8x8x32xf32> to vector<128x32xf32>
    %c32_230 = arith.constant 32 : index
    %c0_231 = arith.constant 0 : index
    %175 = vector.load %arg7[%c32_230, %c0_231] : memref<288x32xf32, #tpu.memory_space<vmem>>, vector<32x32xf32>
    %cst_232 = arith.constant dense<0.000000e+00> : vector<128x32xf32>
    %176 = tpu.matmul %174, %175, %cst_232 {dimension_numbers = #tpu.dot_dimension_numbers<[1], [0], [0], [1], [0, 0, 1, 1], [], []>} : vector<128x32xf32>, vector<32x32xf32>, vector<128x32xf32> -> vector<128x32xf32>
    %177 = arith.addf %172, %176 : vector<128x32xf32>
    %c0_233 = arith.constant 0 : index
    %c0_234 = arith.constant 0 : index
    %c2_235 = arith.constant 2 : index
    %c0_236 = arith.constant 0 : index
    %178 = vector.load %arg12[%c0_233, %c0_234, %c2_235, %c0_236] : memref<2x10x10x32xf32, #tpu.memory_space<vmem>>, vector<2x8x8x32xf32>
    %179 = vector.shape_cast %178 : vector<2x8x8x32xf32> to vector<128x32xf32>
    %c64_237 = arith.constant 64 : index
    %c0_238 = arith.constant 0 : index
    %180 = vector.load %arg7[%c64_237, %c0_238] : memref<288x32xf32, #tpu.memory_space<vmem>>, vector<32x32xf32>
    %cst_239 = arith.constant dense<0.000000e+00> : vector<128x32xf32>
    %181 = tpu.matmul %179, %180, %cst_239 {dimension_numbers = #tpu.dot_dimension_numbers<[1], [0], [0], [1], [0, 0, 1, 1], [], []>} : vector<128x32xf32>, vector<32x32xf32>, vector<128x32xf32> -> vector<128x32xf32>
    %182 = arith.addf %177, %181 : vector<128x32xf32>
    %c0_240 = arith.constant 0 : index
    %c1_241 = arith.constant 1 : index
    %c0_242 = arith.constant 0 : index
    %c0_243 = arith.constant 0 : index
    %183 = vector.load %arg12[%c0_240, %c1_241, %c0_242, %c0_243] : memref<2x10x10x32xf32, #tpu.memory_space<vmem>>, vector<2x8x8x32xf32>
    %184 = vector.shape_cast %183 : vector<2x8x8x32xf32> to vector<128x32xf32>
    %c96_244 = arith.constant 96 : index
    %c0_245 = arith.constant 0 : index
    %185 = vector.load %arg7[%c96_244, %c0_245] : memref<288x32xf32, #tpu.memory_space<vmem>>, vector<32x32xf32>
    %cst_246 = arith.constant dense<0.000000e+00> : vector<128x32xf32>
    %186 = tpu.matmul %184, %185, %cst_246 {dimension_numbers = #tpu.dot_dimension_numbers<[1], [0], [0], [1], [0, 0, 1, 1], [], []>} : vector<128x32xf32>, vector<32x32xf32>, vector<128x32xf32> -> vector<128x32xf32>
    %187 = arith.addf %182, %186 : vector<128x32xf32>
    %c0_247 = arith.constant 0 : index
    %c1_248 = arith.constant 1 : index
    %c1_249 = arith.constant 1 : index
    %c0_250 = arith.constant 0 : index
    %188 = vector.load %arg12[%c0_247, %c1_248, %c1_249, %c0_250] : memref<2x10x10x32xf32, #tpu.memory_space<vmem>>, vector<2x8x8x32xf32>
    %189 = vector.shape_cast %188 : vector<2x8x8x32xf32> to vector<128x32xf32>
    %c128_251 = arith.constant 128 : index
    %c0_252 = arith.constant 0 : index
    %190 = vector.load %arg7[%c128_251, %c0_252] : memref<288x32xf32, #tpu.memory_space<vmem>>, vector<32x32xf32>
    %cst_253 = arith.constant dense<0.000000e+00> : vector<128x32xf32>
    %191 = tpu.matmul %189, %190, %cst_253 {dimension_numbers = #tpu.dot_dimension_numbers<[1], [0], [0], [1], [0, 0, 1, 1], [], []>} : vector<128x32xf32>, vector<32x32xf32>, vector<128x32xf32> -> vector<128x32xf32>
    %192 = arith.addf %187, %191 : vector<128x32xf32>
    %c0_254 = arith.constant 0 : index
    %c1_255 = arith.constant 1 : index
    %c2_256 = arith.constant 2 : index
    %c0_257 = arith.constant 0 : index
    %193 = vector.load %arg12[%c0_254, %c1_255, %c2_256, %c0_257] : memref<2x10x10x32xf32, #tpu.memory_space<vmem>>, vector<2x8x8x32xf32>
    %194 = vector.shape_cast %193 : vector<2x8x8x32xf32> to vector<128x32xf32>
    %c160_258 = arith.constant 160 : index
    %c0_259 = arith.constant 0 : index
    %195 = vector.load %arg7[%c160_258, %c0_259] : memref<288x32xf32, #tpu.memory_space<vmem>>, vector<32x32xf32>
    %cst_260 = arith.constant dense<0.000000e+00> : vector<128x32xf32>
    %196 = tpu.matmul %194, %195, %cst_260 {dimension_numbers = #tpu.dot_dimension_numbers<[1], [0], [0], [1], [0, 0, 1, 1], [], []>} : vector<128x32xf32>, vector<32x32xf32>, vector<128x32xf32> -> vector<128x32xf32>
    %197 = arith.addf %192, %196 : vector<128x32xf32>
    %c0_261 = arith.constant 0 : index
    %c2_262 = arith.constant 2 : index
    %c0_263 = arith.constant 0 : index
    %c0_264 = arith.constant 0 : index
    %198 = vector.load %arg12[%c0_261, %c2_262, %c0_263, %c0_264] : memref<2x10x10x32xf32, #tpu.memory_space<vmem>>, vector<2x8x8x32xf32>
    %199 = vector.shape_cast %198 : vector<2x8x8x32xf32> to vector<128x32xf32>
    %c192_265 = arith.constant 192 : index
    %c0_266 = arith.constant 0 : index
    %200 = vector.load %arg7[%c192_265, %c0_266] : memref<288x32xf32, #tpu.memory_space<vmem>>, vector<32x32xf32>
    %cst_267 = arith.constant dense<0.000000e+00> : vector<128x32xf32>
    %201 = tpu.matmul %199, %200, %cst_267 {dimension_numbers = #tpu.dot_dimension_numbers<[1], [0], [0], [1], [0, 0, 1, 1], [], []>} : vector<128x32xf32>, vector<32x32xf32>, vector<128x32xf32> -> vector<128x32xf32>
    %202 = arith.addf %197, %201 : vector<128x32xf32>
    %c0_268 = arith.constant 0 : index
    %c2_269 = arith.constant 2 : index
    %c1_270 = arith.constant 1 : index
    %c0_271 = arith.constant 0 : index
    %203 = vector.load %arg12[%c0_268, %c2_269, %c1_270, %c0_271] : memref<2x10x10x32xf32, #tpu.memory_space<vmem>>, vector<2x8x8x32xf32>
    %204 = vector.shape_cast %203 : vector<2x8x8x32xf32> to vector<128x32xf32>
    %c224_272 = arith.constant 224 : index
    %c0_273 = arith.constant 0 : index
    %205 = vector.load %arg7[%c224_272, %c0_273] : memref<288x32xf32, #tpu.memory_space<vmem>>, vector<32x32xf32>
    %cst_274 = arith.constant dense<0.000000e+00> : vector<128x32xf32>
    %206 = tpu.matmul %204, %205, %cst_274 {dimension_numbers = #tpu.dot_dimension_numbers<[1], [0], [0], [1], [0, 0, 1, 1], [], []>} : vector<128x32xf32>, vector<32x32xf32>, vector<128x32xf32> -> vector<128x32xf32>
    %207 = arith.addf %202, %206 : vector<128x32xf32>
    %c0_275 = arith.constant 0 : index
    %c2_276 = arith.constant 2 : index
    %c2_277 = arith.constant 2 : index
    %c0_278 = arith.constant 0 : index
    %208 = vector.load %arg12[%c0_275, %c2_276, %c2_277, %c0_278] : memref<2x10x10x32xf32, #tpu.memory_space<vmem>>, vector<2x8x8x32xf32>
    %209 = vector.shape_cast %208 : vector<2x8x8x32xf32> to vector<128x32xf32>
    %c256_279 = arith.constant 256 : index
    %c0_280 = arith.constant 0 : index
    %210 = vector.load %arg7[%c256_279, %c0_280] : memref<288x32xf32, #tpu.memory_space<vmem>>, vector<32x32xf32>
    %cst_281 = arith.constant dense<0.000000e+00> : vector<128x32xf32>
    %211 = tpu.matmul %209, %210, %cst_281 {dimension_numbers = #tpu.dot_dimension_numbers<[1], [0], [0], [1], [0, 0, 1, 1], [], []>} : vector<128x32xf32>, vector<32x32xf32>, vector<128x32xf32> -> vector<128x32xf32>
    %212 = arith.addf %207, %211 : vector<128x32xf32>
    %c3 = arith.constant 3 : index
    %c0_282 = arith.constant 0 : index
    %213 = vector.load %arg10[%c3, %c0_282] : memref<6x32xf32, #tpu.memory_space<vmem>>, vector<1x32xf32>
    %214 = vector.broadcast %213 : vector<1x32xf32> to vector<128x32xf32>
    %215 = arith.addf %212, %214 : vector<128x32xf32>
    %216 = arith.addf %215, %115 : vector<128x32xf32>
    %cst_283 = arith.constant 0.000000e+00 : f32
    %217 = vector.broadcast %cst_283 : f32 to vector<128x32xf32>
    %218 = arith.maximumf %216, %217 : vector<128x32xf32>
    %c0_284 = arith.constant 0 : index
    %c0_285 = arith.constant 0 : index
    %219 = vector.load %arg9[%c0_284, %c0_285] : memref<80x32xf32, #tpu.memory_space<vmem>>, vector<32x32xf32>
    %cst_286 = arith.constant dense<0.000000e+00> : vector<128x32xf32>
    %220 = tpu.matmul %218, %219, %cst_286 {dimension_numbers = #tpu.dot_dimension_numbers<[1], [0], [0], [1], [0, 0, 1, 1], [], []>} : vector<128x32xf32>, vector<32x32xf32>, vector<128x32xf32> -> vector<128x32xf32>
    %c32_287 = arith.constant 32 : index
    %c0_288 = arith.constant 0 : index
    %221 = vector.load %arg9[%c32_287, %c0_288] : memref<80x32xf32, #tpu.memory_space<vmem>>, vector<32x32xf32>
    %cst_289 = arith.constant dense<0.000000e+00> : vector<128x32xf32>
    %222 = tpu.matmul %115, %221, %cst_289 {dimension_numbers = #tpu.dot_dimension_numbers<[1], [0], [0], [1], [0, 0, 1, 1], [], []>} : vector<128x32xf32>, vector<32x32xf32>, vector<128x32xf32> -> vector<128x32xf32>
    %223 = arith.addf %220, %222 : vector<128x32xf32>
    %c64_290 = arith.constant 64 : index
    %c0_291 = arith.constant 0 : index
    %224 = vector.load %arg9[%c64_290, %c0_291] : memref<80x32xf32, #tpu.memory_space<vmem>>, vector<16x32xf32>
    %cst_292 = arith.constant dense<0.000000e+00> : vector<128x32xf32>
    %225 = tpu.matmul %7, %224, %cst_292 {dimension_numbers = #tpu.dot_dimension_numbers<[1], [0], [0], [1], [0, 0, 1, 1], [], []>} : vector<128x16xf32>, vector<16x32xf32>, vector<128x32xf32> -> vector<128x32xf32>
    %226 = arith.addf %223, %225 : vector<128x32xf32>
    %c5 = arith.constant 5 : index
    %c0_293 = arith.constant 0 : index
    %227 = vector.load %arg10[%c5, %c0_293] : memref<6x32xf32, #tpu.memory_space<vmem>>, vector<1x32xf32>
    %228 = vector.broadcast %227 : vector<1x32xf32> to vector<128x32xf32>
    %229 = arith.addf %226, %228 : vector<128x32xf32>
    %cst_294 = arith.constant 0.000000e+00 : f32
    %230 = vector.broadcast %cst_294 : f32 to vector<128x32xf32>
    %231 = arith.maximumf %229, %230 : vector<128x32xf32>
    %c0_295 = arith.constant 0 : index
    %c0_296 = arith.constant 0 : index
    %232 = vector.load %arg11[%c0_295, %c0_296] : memref<128x32xf32, #tpu.memory_space<vmem>>, vector<128x32xf32>
    tpu.vector_store %arg11[%c0_295, %c0_296], %231 {strides = array<i32>} : memref<128x32xf32, #tpu.memory_space<vmem>>, vector<128x32xf32>,
    return
  }
}

</mosaic_0001>

<bundles_post_ra>
// kernel: tree_forward_pallas.1
= control target key start
LH: loop header
LB: loop body
LE: loop exit
PB: predicated region body
PF: predicated region fallthrough
CT: control target
= control target key end

     0   :  { %vm160_vm0 = vcmask 130048   ;;  %s15883_s0 = inlined_call_operand.vmem [shape: f32[2,9,9,16], index: 0, kind: input, shape index: {}]   ;;  %s15884_s1 = inlined_call_operand.vmem [shape: f32[2,9,9,16], index: 1, kind: input, shape index: {}]   ;;  %s15885_s2 = inlined_call_operand.vmem [shape: f32[2,9,9,16], index: 2, kind: input, shape index: {}]   ;;  %s15886_s3 = inlined_call_operand.vmem [shape: f32[2,9,9,16], index: 3, kind: input, shape index: {}]   ;;  %s15887_s4 = inlined_call_operand.vmem [shape: f32[144,32], index: 4, kind: input, shape index: {}]   ;;  %s15888_s5 = inlined_call_operand.vmem [shape: f32[288,32], index: 5, kind: input, shape index: {}]   ;;  %s15889_s6 = inlined_call_operand.vmem [shape: f32[288,32], index: 6, kind: input, shape index: {}]   ;;  %s15890_s7 = inlined_call_operand.vmem [shape: f32[288,32], index: 7, kind: input, shape index: {}]   ;;  %s15891_s8 = inlined_call_operand.vmem [shape: f32[16,32], index: 8, kind: input, shape index: {}]   ;;  %s15892_s9 = inlined_call_operand.vmem [shape: f32[80,32], index: 9, kind: input, shape index: {}]   ;;  %s15893_s10 = inlined_call_operand.vmem [shape: f32[6,32], index: 10, kind: input, shape index: {}]   ;;  %s15894_s11 = inlined_call_operand.hbm [shape: f32[128,32], index: 11, kind: output, shape index: {}]  }
   0x1   :  { %v412_v0 = vld [vmem:[%s15887_s4] sm:$0xff]  ;;  %v413_v1 = vld [vmem:[%s15887_s4 + $0x8] sm:$0xff]  ;;  %v13069_v7 = vld [vmem:[%s15883_s0 + $0x10] sm:$0xff] }
   0x2   :  { %v396_v2 = vld [vmem:[%s15883_s0] sm:$0xff]  ;;  %v12098_v3 = vpack.c.bf16 %v413_v1, %v412_v0  ;;  %v835_v5 = vld [vmem:[%s15887_s4 + $0x28] sm:$0xff]  ;;  %v1061_v9 = vld [vmem:[%s15887_s4 + $0x30] sm:$0xff] }
   0x3   :  { %10914 = vmatprep.mubr.msk.f32.mxu1 %vm160_vm0, %v396_v2  ;;  %v834_v4 = vld [vmem:[%s15887_s4 + $0x20] sm:$0xff]  ;;  %v1062_v10 = vld [vmem:[%s15887_s4 + $0x38] sm:$0xff]  ;;  %v13089_v11 = vld [vmem:[%s15883_s0 + $0x30] sm:$0xff] }
   0x4   :  { %v12102_v6 = vpack.c.bf16 %v835_v5, %v834_v4  ;;  %12099 = vmatprep.subr.bf16.mxu1 %v12098_v3  ;;  %v13074_v8 = vld [vmem:[%s15883_s0 + $0x20] sm:$0xff]  ;;  %v12106_v12 = vpack.c.bf16 %v1062_v10, %v1061_v9  ;;  %v13103_v14 = vld [vmem:[%s15883_s0 + $0x50] sm:$0xff] }
   0x5   :  { %12101 = vmatpush3.bf16.msra.mxu1 %v12098_v3  ;;  %v13094_v13 = vld [vmem:[%s15883_s0 + $0x40] sm:$0xff]  ;;  %v13117_v16 = vld [vmem:[%s15883_s0 + $0x70] sm:$0xff] }
   0x6   :  { %12103 = vmatprep.subr.bf16.mxu1 %v12102_v6  ;;  %v13108_v15 = vld [vmem:[%s15883_s0 + $0x60] sm:$0xff]  ;;  %15961 = vst [vmem:[#allocation7_spill] sm:$0xff] %v13117_v16  ;;  %v404_v17 = vld [vmem:[%s15883_s0 + $0x90] sm:$0xff] }
   0x7   :  { %15960 = vst [vmem:[#allocation6_spill] sm:$0xff] %v13108_v15  ;;  %v13128_v18 = vld [vmem:[%s15883_s0 + $0xa0] sm:$0xff]  ;;  %v13133_v19 = vld [vmem:[%s15883_s0 + $0xb0] sm:$0xff] }
   0x8   :  { %10915 = vmatmul.mubr.msk.f32.vlgmr.msra.gmra.mrb[0].mxu1 %vm160_vm0, %v13069_v7  ;;  %15962 = vst [vmem:[#allocation8_spill] sm:$0xff] %v13128_v18  ;;  %15963 = vst [vmem:[#allocation9_spill] sm:$0xff] %v13133_v19  ;;  %v13142_v20 = vld [vmem:[%s15883_s0 + $0xc0] sm:$0xff]  ;;  %v13147_v21 = vld [vmem:[%s15883_s0 + $0xd0] sm:$0xff] }
   0x9   :  { %12105 = vmatpush3.bf16.msra.mxu1 %v12102_v6  ;;  %10917 = vmatprep.mubr.msk.f32.mxu1 %vm160_vm0, %v13074_v8  ;;  %15964 = vst [vmem:[#allocation10_spill] sm:$0xff] %v13142_v20  ;;  %15965 = vst [vmem:[#allocation11_spill] sm:$0xff] %v13147_v21  ;;  %v13156_v22 = vld [vmem:[%s15883_s0 + $0xe0] sm:$0xff]  ;;  %v13161_v23 = vld [vmem:[%s15883_s0 + $0xf0] sm:$0xff] }
   0xa   :  { %12107 = vmatprep.subr.bf16.mxu1 %v12106_v12  ;;  %15966 = vst [vmem:[#allocation12_spill] sm:$0xff] %v13156_v22  ;;  %15967 = vst [vmem:[#allocation13_spill] sm:$0xff] %v13161_v23 }
   0xc   :  { %10918 = vmatmul.mubr.msk.f32.gmra.mrb[2].mxu1 %vm160_vm0, %v13089_v11 }
   0xd   :  { %10920 = vmatprep.mubr.msk.f32.mxu1 %vm160_vm0, %v13094_v13 }
  0x10   :  { %10921 = vmatmul.mubr.msk.f32.gmra.mrb[4].mxu1 %vm160_vm0, %v13103_v14 }
  0x11   :  { %10923 = vmatprep.mubr.msk.f32.mxu1 %vm160_vm0, %v13108_v15 }
  0x14   :  { %10924 = vmatmul.mubr.msk.f32.gmra.mrb[6].mxu1 %vm160_vm0, %v13117_v16 }
  0x15   :  { %10926 = vmatprep.mubr.msk.f32.mxu1 %vm160_vm0, %v404_v17 }
  0x18   :  { %10927 = vmatmul.mubr.msk.f32.gmra.mrb[8].mxu1 %vm160_vm0, %v13128_v18 }
  0x19   :  { %10929 = vmatprep.mubr.msk.f32.mxu1 %vm160_vm0, %v13133_v19 }
  0x1c   :  { %10930 = vmatmul.mubr.msk.f32.gmra.mrb[10].mxu1 %vm160_vm0, %v13142_v20 }
  0x1d   :  { %10932 = vmatprep.mubr.msk.f32.mxu1 %vm160_vm0, %v13147_v21 }
  0x1e   :  { %16 = vsyncpa [#allocation4], 0  ;;  %v13170_v24 = vld [vmem:[%s15883_s0 + $0x100] sm:$0xff]  ;;  %v1289_v27 = vld [vmem:[%s15887_s4 + $0x48] sm:$0xff]  ;;  %vm354_vm1 = vcmask 261120   ;;  %vm356_vm2 = vcmask 254976  }
  0x1f   :  { %15968 = vst [vmem:[#allocation14_spill] sm:$0xff] %v13170_v24  ;;  %v818_v25 = vld [vmem:[%s15883_s0 + $0x1] sm:$0xff]  ;;  %v13187_v28 = vld [vmem:[%s15883_s0 + $0x11] sm:$0xff] }
  0x20   :  { %10933 = vmatmul.mubr.msk.f32.gmra.mrb[12].mxu1 %vm160_vm0, %v13156_v22  ;;  %v1288_v26 = vld [vmem:[%s15887_s4 + $0x40] sm:$0xff]  ;;  %15969 = vst [vmem:[#allocation15_spill] sm:$0xff] %v13187_v28  ;;  %v13203_v31 = vld [vmem:[%s15883_s0 + $0x31] sm:$0xff]  ;;  %v154_v46 = vld [vmem:[%s15891_s8 + $0x8] sm:$0xff] }
  0x21   :  { %10935 = vmatprep.mubr.msk.f32.mxu1 %vm160_vm0, %v13161_v23  ;;  %v13192_v29 = vld [vmem:[%s15883_s0 + $0x21] sm:$0xff]  ;;  %v13194_v30 = vpack.c.bf16 %v1289_v27, %v1288_v26  ;;  %15971 = vst [vmem:[#allocation17_spill] sm:$0xff] %v13203_v31  ;;  %v13218_v33 = vld [vmem:[%s15883_s0 + $0x51] sm:$0xff] }
  0x22   :  { %15970 = vst [vmem:[#allocation16_spill] sm:$0xff] %v13192_v29  ;;  %v13208_v32 = vld [vmem:[%s15883_s0 + $0x41] sm:$0xff]  ;;  %15973 = vst [vmem:[#allocation19_spill] sm:$0xff] %v13218_v33  ;;  %v13232_v35 = vld [vmem:[%s15883_s0 + $0x71] sm:$0xff] }
  0x23   :  { %15972 = vst [vmem:[#allocation18_spill] sm:$0xff] %v13208_v32  ;;  %v13223_v34 = vld [vmem:[%s15883_s0 + $0x61] sm:$0xff]  ;;  %15975 = vst [vmem:[#allocation21_spill] sm:$0xff] %v13232_v35  ;;  %v826_v36 = vld [vmem:[%s15883_s0 + $0x91] sm:$0xff] }
  0x24   :  { %10936 = vmatmul.mubr.msk.f32.gmra.mrb[14].mxu1 %vm160_vm0, %v13170_v24  ;;  %15974 = vst [vmem:[#allocation20_spill] sm:$0xff] %v13223_v34  ;;  %v13243_v37 = vld [vmem:[%s15883_s0 + $0xa1] sm:$0xff]  ;;  %v13248_v38 = vld [vmem:[%s15883_s0 + $0xb1] sm:$0xff] }
  0x25   :  { %10942 = vmatprep.mubr.msk.f32.mxu1 %vm160_vm0, %v818_v25  ;;  %15976 = vst [vmem:[#allocation22_spill] sm:$0xff] %v13243_v37  ;;  %15977 = vst [vmem:[#allocation23_spill] sm:$0xff] %v13248_v38  ;;  %v13257_v39 = vld [vmem:[%s15883_s0 + $0xc1] sm:$0xff]  ;;  %v13262_v40 = vld [vmem:[%s15883_s0 + $0xd1] sm:$0xff] }
  0x26   :  { %15978 = vst [vmem:[#allocation24_spill] sm:$0xff] %v13257_v39  ;;  %15979 = vst [vmem:[#allocation25_spill] sm:$0xff] %v13262_v40  ;;  %v13271_v41 = vld [vmem:[%s15883_s0 + $0xe1] sm:$0xff]  ;;  %v13276_v42 = vld [vmem:[%s15883_s0 + $0xf1] sm:$0xff] }
  0x27   :  { %15980 = vst [vmem:[#allocation26_spill] sm:$0xff] %v13271_v41  ;;  %15981 = vst [vmem:[#allocation27_spill] sm:$0xff] %v13276_v42  ;;  %v13281_v43 = vld [vmem:[%s15883_s0 + $0x101] sm:$0xff]  ;;  %v13309_v50 = vld [vmem:[%s15884_s1 + $0x10] sm:$0xff] }
  0x28   :  { %10943 = vmatmul.mubr.msk.f32.vlgmr.msra.gmra.mrb[0].mxu1 %vm160_vm0, %v13187_v28  ;;  %15982 = vst [vmem:[#allocation28_spill] sm:$0xff] %v13281_v43  ;;  %v1045_v44 = vld [vmem:[%s15885_s2] sm:$0xff]  ;;  %v13314_v51 = vld [vmem:[%s15886_s3 + $0x10] sm:$0xff]  ;;  %v121_v54 = vmax.f32 %v13309_v50, %v13187_v28  ;;  %v1516_v58 = vld [vmem:[%s15887_s4 + $0x58] sm:$0xff] }
  0x29   :  { %12109 = vmatpush3.bf16.msra.mxu1 %v12106_v12  ;;  %10945 = vmatprep.mubr.msk.f32.mxu1 %vm160_vm0, %v13192_v29  ;;  %v153_v45 = vld [vmem:[%s15891_s8] sm:$0xff]  ;;  %v13319_v52 = vld [vmem:[%s15885_s2 + $0x11] sm:$0xff] }
  0x2a   :  { %12111 = vmatprep.subr.bf16.mxu1 %v13194_v30  ;;  %v13299_v47 = vld [vmem:[%s15886_s3] sm:$0xff]  ;;  %v12090_v49 = vpack.c.bf16 %v154_v46, %v153_v45  ;;  %v1046_v56 = vld [vmem:[%s15885_s2 + $0x10] sm:$0xff]  ;;  %v72_v59 = vmax.f32 %v13314_v51, %v13319_v52  ;;  %v431_v3 = vld [vmem:[%s15887_s4 + $0x18] sm:$0xff] }
  0x2b   :  { %v13304_v48 = vld [vmem:[%s15885_s2 + $0x1] sm:$0xff]  ;;  %v1515_v57 = vld [vmem:[%s15887_s4 + $0x50] sm:$0xff] }
  0x2c   :  { %10946 = vmatmul.mubr.msk.f32.gmra.mrb[2].mxu1 %vm160_vm0, %v13203_v31  ;;  %v71_v53 = vmax.f32 %v13299_v47, %v13304_v48  ;;  %v13328_v55 = vld [vmem:[%s15884_s1 + $0x20] sm:$0xff]  ;;  %12091 = vmatprep.subr.bf16.mxu0 %v12090_v49  ;;  %v430_v2 = vld [vmem:[%s15887_s4 + $0x10] sm:$0xff]  ;;  %v13374_v5 = vpack.c.bf16 %v1516_v58, %v1515_v57 }
  0x2d   :  { %10948 = vmatprep.mubr.msk.f32.mxu1 %vm160_vm0, %v13208_v32  ;;  %v122_v60 = vmax.f32 %v13328_v55, %v13192_v29  ;;  %v1047_v61 = vld [vmem:[%s15885_s2 + $0x20] sm:$0xff]  ;;  %12093 = vmatpush3.bf16.msra.mxu0 %v12090_v49  ;;  %v13372_v4 = vld [vmem:[%s15884_s1 + $0x30] sm:$0xff]  ;;  %v12094_v10 = vpack.c.bf16 %v431_v3, %v430_v2 }
  0x2e   :  { %v13351_v62 = vld [vmem:[%s15886_s3 + $0x20] sm:$0xff]  ;;  %v13358_v0 = vmax.f32 %v71_v53, %v121_v54  ;;  %v13379_v6 = vld [vmem:[%s15886_s3 + $0x30] sm:$0xff]  ;;  %v123_v17 = vmax.f32 %v13372_v4, %v13203_v31 }
  0x2f   :  { %v13356_v63 = vld [vmem:[%s15885_s2 + $0x21] sm:$0xff]  ;;  %v13361_v1 = vmax.f32 %v72_v59, %v122_v60  ;;  %v13384_v9 = vld [vmem:[%s15885_s2 + $0x31] sm:$0xff]  ;;  %12095 = vmatprep.subr.bf16.mxu0 %v12094_v10 }
  0x30   :  { %10949 = vmatmul.mubr.msk.f32.gmra.mrb[4].mxu1 %vm160_vm0, %v13218_v33  ;;  %15983 = vst [vmem:[#allocation29_spill] sm:$0xff] %v13358_v0  ;;  %10858 = vmatprep.mubr.msk.f32.mxu0 %vm160_vm0, %v13358_v0  ;;  %v73_v12 = vmax.f32 %v13351_v62, %v13356_v63  ;;  %v13395_v25 = vld [vmem:[%s15884_s1 + $0x40] sm:$0xff]  ;;  %v74_v26 = vmax.f32 %v13379_v6, %v13384_v9  ;;  %v13429_v54 = vld [vmem:[%s15884_s1 + $0x50] sm:$0xff] }
  0x31   :  { %10951 = vmatprep.mubr.msk.f32.mxu1 %vm160_vm0, %v13223_v34  ;;  %15984 = vst [vmem:[#allocation30_spill] sm:$0xff] %v13361_v1  ;;  %10859 = vmatmul.mubr.msk.f32.vlgmr.msra.gmra.mrb[0].mxu0 %vm160_vm0, %v13361_v1  ;;  %v124_v27 = vmax.f32 %v13395_v25, %v13208_v32  ;;  %v13417_v46 = vld [vmem:[%s15886_s3 + $0x40] sm:$0xff]  ;;  %v125_v58 = vmax.f32 %v13429_v54, %v13218_v33  ;;  %v1050_v2 = vld [vmem:[%s15885_s2 + $0x50] sm:$0xff] }
  0x32   :  { %v13410_v45 = vmax.f32 %v73_v12, %v123_v17  ;;  %v13422_v49 = vld [vmem:[%s15885_s2 + $0x41] sm:$0xff]  ;;  %12097 = vmatpush3.bf16.msra.mxu0 %v12094_v10  ;;  %v13477_v17 = vld [vmem:[%s15886_s3 + $0x70] sm:$0xff] }
  0x33   :  { %v13424_v53 = vmax.f32 %v74_v26, %v124_v27  ;;  %v75_v57 = vmax.f32 %v13417_v46, %v13422_v49  ;;  %v13449_v59 = vld [vmem:[%s15884_s1 + $0x60] sm:$0xff]  ;;  %v1053_v1 = vld [vmem:[%s15885_s2 + $0x90] sm:$0xff] }
  0x34   :  { %10952 = vmatmul.mubr.msk.f32.gmra.mrb[6].mxu1 %vm160_vm0, %v13232_v35  ;;  %15985 = vst [vmem:[#allocation31_spill] sm:$0xff] %v13410_v45  ;;  %10861 = vmatprep.mubr.msk.f32.mxu0 %vm160_vm0, %v13410_v45  ;;  %v1051_v3 = vld [vmem:[%s15885_s2 + $0x60] sm:$0xff]  ;;  %v1052_v45 = vld [vmem:[%s15885_s2 + $0x70] sm:$0xff] }
  0x35   :  { %10954 = vmatprep.mubr.msk.f32.mxu1 %vm160_vm0, %v826_v36  ;;  %v1048_v36 = vld [vmem:[%s15885_s2 + $0x30] sm:$0xff]  ;;  %15986 = vst [vmem:[#allocation32_spill] sm:$0xff] %v13424_v53  ;;  %v13467_v10 = vld [vmem:[%s15886_s3 + $0x60] sm:$0xff]  ;;  %10862 = vmatmul.mubr.msk.f32.gmra.mrb[2].mxu0 %vm160_vm0, %v13424_v53  ;;  %v13471_v12 = vmax.f32 %v75_v57, %v125_v58 }
  0x36   :  { %v13482_v26 = vld [vmem:[%s15885_s2 + $0x61] sm:$0xff]  ;;  %v1286_v21 = vld [vmem:[%s15886_s3 + $0xf0] sm:$0xff] }
  0x37   :  { %15987 = vst [vmem:[#allocation33_spill] sm:$0xff] %v13471_v12  ;;  %10864 = vmatprep.mubr.msk.f32.mxu0 %vm160_vm0, %v13471_v12  ;;  %v77_v57 = vmax.f32 %v13467_v10, %v13482_v26  ;;  %v13706_v18 = vld [vmem:[%s15884_s1 + $0x100] sm:$0xff] }
  0x38   :  { %10955 = vmatmul.mubr.msk.f32.gmra.mrb[8].mxu1 %vm160_vm0, %v13243_v37  ;;  %v1060_v16 = vld [vmem:[%s15885_s2 + $0x100] sm:$0xff] }
  0x39   :  { %10957 = vmatprep.mubr.msk.f32.mxu1 %vm160_vm0, %v13248_v38 }
  0x3c   :  { %10958 = vmatmul.mubr.msk.f32.gmra.mrb[10].mxu1 %vm160_vm0, %v13257_v39 }
  0x3d   :  { %10960 = vmatprep.mubr.msk.f32.mxu1 %vm160_vm0, %v13262_v40 }
  0x40   :  { %10961 = vmatmul.mubr.msk.f32.gmra.mrb[12].mxu1 %vm160_vm0, %v13271_v41 }
  0x41   :  { %10963 = vmatprep.mubr.msk.f32.mxu1 %vm160_vm0, %v13276_v42 }
  0x44   :  { %10964 = vmatmul.mubr.msk.f32.gmra.mrb[14].mxu1 %vm160_vm0, %v13281_v43 }
  0x45   :  { %10970 = vmatprep.mubr.msk.f32.mxu1 %vm160_vm0, %v1045_v44  ;;  %v1049_v44 = vld [vmem:[%s15885_s2 + $0x40] sm:$0xff] }
  0x48   :  { %10971 = vmatmul.mubr.msk.f32.vlgmr.msra.gmra.mrb[0].mxu1 %vm160_vm0, %v1046_v56  ;;  %v13440_v56 = vld [vmem:[%s15885_s2 + $0x51] sm:$0xff] }
  0x49   :  { %12113 = vmatpush3.bf16.msra.mxu1 %v13194_v30  ;;  %10973 = vmatprep.mubr.msk.f32.mxu1 %vm160_vm0, %v1047_v61  ;;  %v13435_v30 = vld [vmem:[%s15886_s3 + $0x50] sm:$0xff]  ;;  %v126_v61 = vmax.f32 %v13449_v59, %v13223_v34 }
  0x4a   :  { %12115 = vmatprep.subr.bf16.mxu1 %v13374_v5  ;;  %v76_v60 = vmax.f32 %v13435_v30, %v13440_v56 }
  0x4c   :  { %10974 = vmatmul.mubr.msk.f32.gmra.mrb[2].mxu1 %vm160_vm0, %v1048_v36  ;;  %v13484_v27 = vmax.f32 %v76_v60, %v126_v61  ;;  %v13489_v36 = vld [vmem:[%s15884_s1 + $0x70] sm:$0xff]  ;;  %v13505_v60 = vld [vmem:[%s15884_s1 + $0x80] sm:$0xff] }
  0x4d   :  { %10976 = vmatprep.mubr.msk.f32.mxu1 %vm160_vm0, %v1049_v44  ;;  %v13494_v44 = vld [vmem:[%s15885_s2 + $0x71] sm:$0xff]  ;;  %v127_v58 = vmax.f32 %v13489_v36, %v13232_v35  ;;  %15989 = vst [vmem:[#allocation35_spill] sm:$0xff] %v13505_v60  ;;  %v13510_v61 = vld [vmem:[%s15883_s0 + $0x81] sm:$0xff] }
  0x4e   :  { %15988 = vst [vmem:[#allocation34_spill] sm:$0xff] %v13484_v27  ;;  %15990 = vst [vmem:[#allocation36_spill] sm:$0xff] %v13510_v61  ;;  %v78_v53 = vmax.f32 %v13477_v17, %v13494_v44  ;;  %v128_v12 = vmax.f32 %v13505_v60, %v13510_v61  ;;  %10865 = vmatmul.mubr.msk.f32.gmra.mrb[4].mxu0 %vm160_vm0, %v13484_v27  ;;  %v13531_v61 = vld [vmem:[%s15886_s3 + $0x90] sm:$0xff]  ;;  %v13543_v27 = vld [vmem:[%s15884_s1 + $0xa0] sm:$0xff] }
  0x4f   :  { %v13525_v0 = vmax.f32 %v77_v57, %v127_v58  ;;  %v13553_v57 = vld [vmem:[%s15885_s2 + $0xa1] sm:$0xff]  ;;  %v13564_v58 = vld [vmem:[%s15884_s1 + $0xb0] sm:$0xff] }
  0x50   :  { %10977 = vmatmul.mubr.msk.f32.gmra.mrb[4].mxu1 %vm160_vm0, %v1050_v2  ;;  %v13536_v2 = vld [vmem:[%s15885_s2 + $0x91] sm:$0xff]  ;;  %v13538_v35 = vmax.f32 %v78_v53, %v128_v12  ;;  %v129_v12 = vmax.f32 %v13543_v27, %v13243_v37  ;;  %v130_v33 = vmax.f32 %v13564_v58, %v13248_v38 }
  0x51   :  { %15991 = vst [vmem:[#allocation37_spill] sm:$0xff] %v13525_v0  ;;  %10979 = vmatprep.mubr.msk.f32.mxu1 %vm160_vm0, %v1051_v3  ;;  %v13548_v3 = vld [vmem:[%s15886_s3 + $0xa0] sm:$0xff]  ;;  %10867 = vmatprep.mubr.msk.f32.mxu0 %vm160_vm0, %v13525_v0  ;;  %v79_v53 = vmax.f32 %v13531_v61, %v13536_v2  ;;  %v1055_v37 = vld [vmem:[%s15885_s2 + $0xb0] sm:$0xff] }
  0x52   :  { %15992 = vst [vmem:[#allocation38_spill] sm:$0xff] %v13538_v35  ;;  %v80_v34 = vmax.f32 %v13548_v3, %v13553_v57  ;;  %v1054_v0 = vld [vmem:[%s15885_s2 + $0xa0] sm:$0xff]  ;;  %10868 = vmatmul.mubr.msk.f32.gmra.mrb[6].mxu0 %vm160_vm0, %v13538_v35  ;;  %v13585_v38 = vld [vmem:[%s15886_s3 + $0xb0] sm:$0xff] }
  0x53   :  { %v13579_v32 = vmax.f32 %v79_v53, %v129_v12  ;;  %v13597_v35 = vld [vmem:[%s15884_s1 + $0xc0] sm:$0xff]  ;;  %v13618_v12 = vld [vmem:[%s15884_s1 + $0xd0] sm:$0xff] }
  0x54   :  { %10980 = vmatmul.mubr.msk.f32.gmra.mrb[6].mxu1 %vm160_vm0, %v1052_v45  ;;  %v13590_v45 = vld [vmem:[%s15885_s2 + $0xb1] sm:$0xff]  ;;  %v13592_v31 = vmax.f32 %v80_v34, %v130_v33  ;;  %v13607_v53 = vld [vmem:[%s15885_s2 + $0xc1] sm:$0xff]  ;;  %v131_v34 = vmax.f32 %v13597_v35, %v13257_v39  ;;  %v132_v28 = vmax.f32 %v13618_v12, %v13262_v40 }
  0x55   :  { %15993 = vst [vmem:[#allocation39_spill] sm:$0xff] %v13579_v32  ;;  %10982 = vmatprep.mubr.msk.f32.mxu1 %vm160_vm0, %v1053_v1  ;;  %v13602_v1 = vld [vmem:[%s15886_s3 + $0xc0] sm:$0xff]  ;;  %10870 = vmatprep.mubr.msk.f32.mxu0 %vm160_vm0, %v13579_v32  ;;  %v81_v33 = vmax.f32 %v13585_v38, %v13590_v45  ;;  %v1057_v39 = vld [vmem:[%s15885_s2 + $0xd0] sm:$0xff] }
  0x56   :  { %15994 = vst [vmem:[#allocation40_spill] sm:$0xff] %v13592_v31  ;;  %v82_v29 = vmax.f32 %v13602_v1, %v13607_v53  ;;  %v1056_v32 = vld [vmem:[%s15885_s2 + $0xc0] sm:$0xff]  ;;  %10871 = vmatmul.mubr.msk.f32.gmra.mrb[8].mxu0 %vm160_vm0, %v13592_v31  ;;  %v13639_v40 = vld [vmem:[%s15886_s3 + $0xd0] sm:$0xff] }
  0x57   :  { %v13633_v60 = vmax.f32 %v81_v33, %v131_v34  ;;  %v13651_v31 = vld [vmem:[%s15884_s1 + $0xe0] sm:$0xff]  ;;  %v13672_v34 = vld [vmem:[%s15884_s1 + $0xf0] sm:$0xff] }
  0x58   :  { %10983 = vmatmul.mubr.msk.f32.gmra.mrb[8].mxu1 %vm160_vm0, %v1054_v0  ;;  %v13644_v0 = vld [vmem:[%s15885_s2 + $0xd1] sm:$0xff]  ;;  %v13646_v24 = vmax.f32 %v82_v29, %v132_v28  ;;  %v13661_v33 = vld [vmem:[%s15885_s2 + $0xe1] sm:$0xff]  ;;  %v133_v29 = vmax.f32 %v13651_v31, %v13271_v41  ;;  %v134_v22 = vmax.f32 %v13672_v34, %v13276_v42 }
  0x59   :  { %15995 = vst [vmem:[#allocation41_spill] sm:$0xff] %v13633_v60  ;;  %10985 = vmatprep.mubr.msk.f32.mxu1 %vm160_vm0, %v1055_v37  ;;  %v13656_v37 = vld [vmem:[%s15886_s3 + $0xe0] sm:$0xff]  ;;  %10873 = vmatprep.mubr.msk.f32.mxu0 %vm160_vm0, %v13633_v60  ;;  %v83_v28 = vmax.f32 %v13639_v40, %v13644_v0  ;;  %v1059_v41 = vld [vmem:[%s15885_s2 + $0xf0] sm:$0xff] }
  0x5a   :  { %15996 = vst [vmem:[#allocation42_spill] sm:$0xff] %v13646_v24  ;;  %v84_v23 = vmax.f32 %v13656_v37, %v13661_v33  ;;  %v1058_v60 = vld [vmem:[%s15885_s2 + $0xe0] sm:$0xff]  ;;  %10874 = vmatmul.mubr.msk.f32.gmra.mrb[10].mxu0 %vm160_vm0, %v13646_v24  ;;  %v13699_v42 = vld [vmem:[%s15885_s2 + $0xf1] sm:$0xff] }
  0x5b   :  { %v13690_v20 = vmax.f32 %v83_v28, %v133_v29  ;;  %v85_v28 = vmax.f32 %v1286_v21, %v13699_v42  ;;  %v135_v29 = vmax.f32 %v13706_v18, %v13281_v43 }
  0x5c   :  { %10986 = vmatmul.mubr.msk.f32.gmra.mrb[10].mxu1 %vm160_vm0, %v1056_v32  ;;  %v1287_v32 = vld [vmem:[%s15886_s3 + $0x100] sm:$0xff]  ;;  %v13701_v19 = vmax.f32 %v84_v23, %v134_v22  ;;  %v13721_v22 = vld [vmem:[%s15884_s1 + $0x110] sm:$0xff] }
  0x5d   :  { %15997 = vst [vmem:[#allocation43_spill] sm:$0xff] %v13690_v20  ;;  %10988 = vmatprep.mubr.msk.f32.mxu1 %vm160_vm0, %v1057_v39  ;;  %v13711_v39 = vld [vmem:[%s15885_s2 + $0x101] sm:$0xff]  ;;  %10876 = vmatprep.mubr.msk.f32.mxu0 %vm160_vm0, %v13690_v20  ;;  %v13726_v23 = vld [vmem:[%s15883_s0 + $0x111] sm:$0xff]  ;;  %v13734_v43 = vmax.f32 %v85_v28, %v135_v29 }
  0x5e   :  { %15998 = vst [vmem:[#allocation44_spill] sm:$0xff] %v13701_v19  ;;  %v86_v24 = vmax.f32 %v1287_v32, %v13711_v39  ;;  %v136_v20 = vmax.f32 %v13721_v22, %v13726_v23  ;;  %10877 = vmatmul.mubr.msk.f32.gmra.mrb[12].mxu0 %vm160_vm0, %v13701_v19  ;;  %v1743_v28 = vld [vmem:[%s15887_s4 + $0x68] sm:$0xff]  ;;  %v2477_v29 = vld [vmem:[%s15888_s5] sm:$0xff] }
  0x5f   :  { %15999 = vst [vmem:[#allocation45_spill] sm:$0xff] %v13734_v43  ;;  %10879 = vmatprep.mubr.msk.f32.mxu0 %vm160_vm0, %v13734_v43 }
  0x60   :  { %10989 = vmatmul.mubr.msk.f32.gmra.mrb[12].mxu1 %vm160_vm0, %v1058_v60  ;;  %v13740_v15 = vmax.f32 %v86_v24, %v136_v20  ;;  %v1742_v60 = vld [vmem:[%s15887_s4 + $0x60] sm:$0xff] }
  0x61   :  { %10991 = vmatprep.mubr.msk.f32.mxu1 %vm160_vm0, %v1059_v41  ;;  %v414_v20 = vld [vmem:[%s15884_s1] sm:$0xff]  ;;  %v12118_v24 = vpack.c.bf16 %v1743_v28, %v1742_v60  ;;  %v2498_v41 = vld [vmem:[%s15888_s5 + $0x28] sm:$0xff] }
  0x62   :  { %16000 = vst [vmem:[#allocation46_spill] sm:$0xff] %v13740_v15  ;;  %10880 = vmatmul.mubr.msk.f32.gmra.mrb[14].mxu0 %vm160_vm0, %v13740_v15 }
  0x63   :  { %10886 = vmatprep.mubr.msk.f32.mxu0 %vm160_vm0, %v414_v20 }
  0x64   :  { %10992 = vmatmul.mubr.msk.f32.gmra.mrb[14].mxu1 %vm160_vm0, %v1060_v16  ;;  %v422_v16 = vld [vmem:[%s15884_s1 + $0x90] sm:$0xff] }
  0x65   :  { %10998 = vmatprep.mubr.msk.f32.mxu1 %vm160_vm0, %v13299_v47 }
  0x66   :  { %10887 = vmatmul.mubr.msk.f32.vlgmr.msra.gmra.mrb[16].mxu0 %vm160_vm0, %v13309_v50 }
  0x67   :  { %10889 = vmatprep.mubr.msk.f32.mxu0 %vm160_vm0, %v13328_v55 }
  0x68   :  { %10999 = vmatmul.mubr.msk.f32.vlgmr.msra.gmra.mrb[0].mxu1 %vm160_vm0, %v13314_v51 }
  0x69   :  { %12117 = vmatpush3.bf16.msra.mxu1 %v13374_v5  ;;  %11001 = vmatprep.mubr.msk.f32.mxu1 %vm160_vm0, %v13351_v62  ;;  %v12986_v5 = vmov 0.0  }
  0x6a   :  { %12119 = vmatprep.subr.bf16.mxu1 %v12118_v24  ;;  %10890 = vmatmul.mubr.msk.f32.gmra.mrb[18].mxu0 %vm160_vm0, %v13372_v4  ;;  %360 = vst.msk [vmem:[#allocation2 + $0x20] sm:$0xff] %vm354_vm1, %v12986_v5  ;;  %355 = vst.msk [vmem:[#allocation2] sm:$0xff] %vm354_vm1, %v12986_v5 }
  0x6b   :  { %10892 = vmatprep.mubr.msk.f32.mxu0 %vm160_vm0, %v13395_v25  ;;  %361 = vst.msk [vmem:[#allocation2 + $0x28] sm:$0x3] %vm356_vm2, %v12986_v5  ;;  %357 = vst.msk [vmem:[#allocation2 + $0x8] sm:$0x3] %vm356_vm2, %v12986_v5 }
  0x6c   :  { %11002 = vmatmul.mubr.msk.f32.gmra.mrb[2].mxu1 %vm160_vm0, %v13379_v6  ;;  %358 = vst.msk [vmem:[#allocation2 + $0x10] sm:$0xff] %vm354_vm1, %v12986_v5  ;;  %362 = vst.msk [vmem:[#allocation2 + $0x30] sm:$0xff] %vm354_vm1, %v12986_v5  ;;  %v16007_v6 = vld [vmem:[#allocation12_spill] sm:$0xff] }
  0x6d   :  { %11004 = vmatprep.mubr.msk.f32.mxu1 %vm160_vm0, %v13417_v46  ;;  %359 = vst.msk [vmem:[#allocation2 + $0x18] sm:$0x3] %vm356_vm2, %v12986_v5  ;;  %363 = vst.msk [vmem:[#allocation2 + $0x38] sm:$0x3] %vm356_vm2, %v12986_v5  ;;  %v16009_v46 = vld [vmem:[#allocation14_spill] sm:$0xff] }
  0x6e   :  { %10893 = vmatmul.mubr.msk.f32.gmra.mrb[20].mxu0 %vm160_vm0, %v13429_v54  ;;  %364 = vst.msk [vmem:[#allocation2 + $0x40] sm:$0xff] %vm354_vm1, %v12986_v5  ;;  %366 = vst.msk [vmem:[#allocation2 + $0x50] sm:$0xff] %vm354_vm1, %v12986_v5 }
  0x6f   :  { %10895 = vmatprep.mubr.msk.f32.mxu0 %vm160_vm0, %v13449_v59  ;;  %365 = vst.msk [vmem:[#allocation2 + $0x48] sm:$0x3] %vm356_vm2, %v12986_v5  ;;  %367 = vst.msk [vmem:[#allocation2 + $0x58] sm:$0x3] %vm356_vm2, %v12986_v5 }
  0x70   :  { %11005 = vmatmul.mubr.msk.f32.gmra.mrb[4].mxu1 %vm160_vm0, %v13435_v30  ;;  %368 = vst.msk [vmem:[#allocation2 + $0x60] sm:$0xff] %vm354_vm1, %v12986_v5  ;;  %370 = vst.msk [vmem:[#allocation2 + $0x70] sm:$0xff] %vm354_vm1, %v12986_v5  ;;  %v16018_v30 = vld [vmem:[#allocation36_spill] sm:$0xff] }
  0x71   :  { %11007 = vmatprep.mubr.msk.f32.mxu1 %vm160_vm0, %v13467_v10  ;;  %369 = vst.msk [vmem:[#allocation2 + $0x68] sm:$0x3] %vm356_vm2, %v12986_v5  ;;  %371 = vst.msk [vmem:[#allocation2 + $0x78] sm:$0x3] %vm356_vm2, %v12986_v5  ;;  %v16021_v10 = vld [vmem:[#allocation24_spill] sm:$0xff] }
  0x72   :  { %10896 = vmatmul.mubr.msk.f32.gmra.mrb[22].mxu0 %vm160_vm0, %v13489_v36  ;;  %372 = vst.msk [vmem:[#allocation2 + $0x80] sm:$0xff] %vm354_vm1, %v12986_v5  ;;  %374 = vst.msk [vmem:[#allocation2 + $0x90] sm:$0xff] %vm354_vm1, %v12986_v5 }
  0x73   :  { %10898 = vmatprep.mubr.msk.f32.mxu0 %vm160_vm0, %v422_v16  ;;  %373 = vst.msk [vmem:[#allocation2 + $0x88] sm:$0x3] %vm356_vm2, %v12986_v5  ;;  %375 = vst.msk [vmem:[#allocation2 + $0x98] sm:$0x3] %vm356_vm2, %v12986_v5 }
  0x74   :  { %11008 = vmatmul.mubr.msk.f32.gmra.mrb[6].mxu1 %vm160_vm0, %v13477_v17  ;;  %376 = vst.msk [vmem:[#allocation2 + $0xa0] sm:$0xff] %vm354_vm1, %v12986_v5  ;;  %378 = vst.msk [vmem:[#allocation2 + $0xb0] sm:$0xff] %vm354_vm1, %v12986_v5  ;;  %v16022_v17 = vld [vmem:[#allocation25_spill] sm:$0xff] }
  0x75   :  { %11010 = vmatprep.mubr.msk.f32.mxu1 %vm160_vm0, %v13531_v61  ;;  %377 = vst.msk [vmem:[#allocation2 + $0xa8] sm:$0x3] %vm356_vm2, %v12986_v5  ;;  %379 = vst.msk [vmem:[#allocation2 + $0xb8] sm:$0x3] %vm356_vm2, %v12986_v5 }
  0x76   :  { %10899 = vmatmul.mubr.msk.f32.gmra.mrb[24].mxu0 %vm160_vm0, %v13543_v27  ;;  %380 = vst.msk [vmem:[#allocation2 + $0xc0] sm:$0xff] %vm354_vm1, %v12986_v5  ;;  %382 = vst.msk [vmem:[#allocation2 + $0xd0] sm:$0xff] %vm354_vm1, %v12986_v5 }
  0x77   :  { %10901 = vmatprep.mubr.msk.f32.mxu0 %vm160_vm0, %v13564_v58  ;;  %381 = vst.msk [vmem:[#allocation2 + $0xc8] sm:$0x3] %vm356_vm2, %v12986_v5  ;;  %383 = vst.msk [vmem:[#allocation2 + $0xd8] sm:$0x3] %vm356_vm2, %v12986_v5 }
  0x78   :  { %11011 = vmatmul.mubr.msk.f32.gmra.mrb[8].mxu1 %vm160_vm0, %v13548_v3  ;;  %384 = vst.msk [vmem:[#allocation2 + $0xe0] sm:$0xff] %vm354_vm1, %v12986_v5  ;;  %386 = vst.msk [vmem:[#allocation2 + $0xf0] sm:$0xff] %vm354_vm1, %v12986_v5 }
  0x79   :  { %11013 = vmatprep.mubr.msk.f32.mxu1 %vm160_vm0, %v13585_v38  ;;  %v1969_v38 = vld [vmem:[%s15887_s4 + $0x70] sm:$0xff]  ;;  %385 = vst.msk [vmem:[#allocation2 + $0xe8] sm:$0x3] %vm356_vm2, %v12986_v5  ;;  %387 = vst.msk [vmem:[#allocation2 + $0xf8] sm:$0x3] %vm356_vm2, %v12986_v5 }
  0x7a   :  { %10902 = vmatmul.mubr.msk.f32.gmra.mrb[26].mxu0 %vm160_vm0, %v13597_v35  ;;  %388 = vst.msk [vmem:[#allocation2 + $0x100] sm:$0xff] %vm354_vm1, %v12986_v5  ;;  %390 = vst.msk [vmem:[#allocation2 + $0x110] sm:$0xff] %vm354_vm1, %v12986_v5 }
  0x7b   :  { %10904 = vmatprep.mubr.msk.f32.mxu0 %vm160_vm0, %v13618_v12  ;;  %389 = vst.msk [vmem:[#allocation2 + $0x108] sm:$0x3] %vm356_vm2, %v12986_v5  ;;  %391 = vst.msk [vmem:[#allocation2 + $0x118] sm:$0x3] %vm356_vm2, %v12986_v5 }
  0x7c   :  { %11014 = vmatmul.mubr.msk.f32.gmra.mrb[10].mxu1 %vm160_vm0, %v13602_v1  ;;  %392 = vst.msk [vmem:[#allocation2 + $0x120] sm:$0xff] %vm354_vm1, %v12986_v5  ;;  %394 = vst.msk [vmem:[#allocation2 + $0x130] sm:$0xff] %vm354_vm1, %v12986_v5 }
  0x7d   :  { %11016 = vmatprep.mubr.msk.f32.mxu1 %vm160_vm0, %v13639_v40  ;;  %v1970_v40 = vld [vmem:[%s15887_s4 + $0x78] sm:$0xff]  ;;  %393 = vst.msk [vmem:[#allocation2 + $0x128] sm:$0x3] %vm356_vm2, %v12986_v5  ;;  %395 = vst.msk [vmem:[#allocation2 + $0x138] sm:$0x3] %vm356_vm2, %v12986_v5 }
  0x7e   :  { %10905 = vmatmul.mubr.msk.f32.gmra.mrb[28].mxu0 %vm160_vm0, %v13651_v31  ;;  %v12122_v51 = vpack.c.bf16 %v1970_v40, %v1969_v38  ;;  %v14045_v38 = vld [vmem:[%s15893_s10] ss:$0 sm:$0xff] }
  0x7f   :  { %10907 = vmatprep.mubr.msk.f32.mxu0 %vm160_vm0, %v13672_v34 }
  0x80   :  { %11017 = vmatmul.mubr.msk.f32.gmra.mrb[12].mxu1 %vm160_vm0, %v13656_v37  ;;  %v2481_v37 = vld [vmem:[#allocation2 + $0x1] sm:$0xff] }
  0x81   :  { %11019 = vmatprep.mubr.msk.f32.mxu1 %vm160_vm0, %v1286_v21  ;;  %v2497_v21 = vld [vmem:[%s15888_s5 + $0x20] sm:$0xff] }
  0x82   :  { %10908 = vmatmul.mubr.msk.f32.gmra.mrb[30].mxu0 %vm160_vm0, %v13706_v18  ;;  %v12130_v47 = vpack.c.bf16 %v2498_v41, %v2497_v21 }
  0x83   :  { %11142 = vmatprep.mubr.msk.f32.mxu0 %vm354_vm1, %v2481_v37 }
  0x84   :  { %11020 = vmatmul.mubr.msk.f32.gmra.mrb[14].mxu1 %vm160_vm0, %v1287_v32  ;;  %12131 = vmatprep.subr.bf16.mxu0 %v12130_v47 }
  0x85   :  { %11026 = vmatprep.mubr.msk.f32.mxu1 %vm160_vm0, %v13304_v48  ;;  %12133 = vmatpush3.bf16.msra.mxu0 %v12130_v47  ;;  %v2196_v48 = vld [vmem:[%s15887_s4 + $0x80] sm:$0xff] }
  0x88   :  { %11027 = vmatmul.mubr.msk.f32.vlgmr.msra.gmra.mrb[0].mxu1 %vm160_vm0, %v13319_v52  ;;  %v2197_v52 = vld [vmem:[%s15887_s4 + $0x88] sm:$0xff] }
  0x89   :  { %12121 = vmatpush3.bf16.msra.mxu1 %v12118_v24  ;;  %11029 = vmatprep.mubr.msk.f32.mxu1 %vm160_vm0, %v13356_v63  ;;  %v13872_v62 = vpack.c.bf16 %v2197_v52, %v2196_v48  ;;  %v16004_v63 = vld [vmem:[#allocation9_spill] sm:$0xff] }
  0x8a   :  { %12123 = vmatprep.subr.bf16.mxu1 %v12122_v51 }
  0x8c   :  { %11030 = vmatmul.mubr.msk.f32.gmra.mrb[2].mxu1 %vm160_vm0, %v13384_v9  ;;  %v16008_v9 = vld [vmem:[#allocation13_spill] sm:$0xff] }
  0x8d   :  { %11032 = vmatprep.mubr.msk.f32.mxu1 %vm160_vm0, %v13422_v49  ;;  %v9510_v49 = vld [vmem:[%s15883_s0 + $0x110] sm:$0xff] }
  0x90   :  { %11033 = vmatmul.mubr.msk.f32.gmra.mrb[4].mxu1 %vm160_vm0, %v13440_v56  ;;  %v16019_v56 = vld [vmem:[#allocation22_spill] sm:$0xff] }
  0x91   :  { %11035 = vmatprep.mubr.msk.f32.mxu1 %vm160_vm0, %v13482_v26  ;;  %v16023_v26 = vld [vmem:[#allocation26_spill] sm:$0xff] }
  0x94   :  { %11036 = vmatmul.mubr.msk.f32.gmra.mrb[6].mxu1 %vm160_vm0, %v13494_v44 }
  0x95   :  { %11038 = vmatprep.mubr.msk.f32.mxu1 %vm160_vm0, %v13536_v2 }
  0x98   :  { %11039 = vmatmul.mubr.msk.f32.gmra.mrb[8].mxu1 %vm160_vm0, %v13553_v57  ;;  %v2499_v57 = vld [vmem:[%s15888_s5 + $0x30] sm:$0xff] }
  0x99   :  { %11041 = vmatprep.mubr.msk.f32.mxu1 %vm160_vm0, %v13590_v45 }
  0x9c   :  { %11042 = vmatmul.mubr.msk.f32.gmra.mrb[10].mxu1 %vm160_vm0, %v13607_v53 }
  0x9d   :  { %11044 = vmatprep.mubr.msk.f32.mxu1 %vm160_vm0, %v13644_v0 }
  0xa0   :  { %11045 = vmatmul.mubr.msk.f32.gmra.mrb[12].mxu1 %vm160_vm0, %v13661_v33 }
  0xa1   :  { %11047 = vmatprep.mubr.msk.f32.mxu1 %vm160_vm0, %v13699_v42  ;;  %v16001_v42 = vld [vmem:[#allocation6_spill] sm:$0xff] }
  0xa4   :  { %11048 = vmatmul.mubr.msk.f32.gmra.mrb[14].mxu1 %vm160_vm0, %v13711_v39 }
  0xa5   :  { %11054 = vmatprep.mubr.msk.f32.mxu1 %vm160_vm0, %v13069_v7  ;;  %v16002_v7 = vld [vmem:[#allocation7_spill] sm:$0xff] }
  0xa8   :  { %11055 = vmatmul.mubr.msk.f32.vlgmr.msra.gmra.mrb[0].mxu1 %vm160_vm0, %v13074_v8  ;;  %v9502_v8 = vld [vmem:[%s15883_s0 + $0x80] sm:$0xff] }
  0xa9   :  { %12125 = vmatpush3.bf16.msra.mxu1 %v12122_v51  ;;  %11057 = vmatprep.mubr.msk.f32.mxu1 %vm160_vm0, %v13089_v11  ;;  %v16003_v11 = vld [vmem:[#allocation8_spill] sm:$0xff] }
  0xaa   :  { %12127 = vmatprep.subr.bf16.mxu1 %v13872_v62 }
  0xac   :  { %11058 = vmatmul.mubr.msk.f32.gmra.mrb[2].mxu1 %vm160_vm0, %v13094_v13  ;;  %v16005_v13 = vld [vmem:[#allocation10_spill] sm:$0xff] }
  0xad   :  { %11060 = vmatprep.mubr.msk.f32.mxu1 %vm160_vm0, %v13103_v14  ;;  %v16006_v14 = vld [vmem:[#allocation11_spill] sm:$0xff] }
  0xb0   :  { %11061 = vmatmul.mubr.msk.f32.gmra.mrb[4].mxu1 %vm160_vm0, %v16001_v42 }
  0xb1   :  { %11063 = vmatprep.mubr.msk.f32.mxu1 %vm160_vm0, %v16002_v7 }
  0xb4   :  { %11064 = vmatmul.mubr.msk.f32.gmra.mrb[6].mxu1 %vm160_vm0, %v9502_v8 }
  0xb5   :  { %11066 = vmatprep.mubr.msk.f32.mxu1 %vm160_vm0, %v16003_v11 }
  0xb8   :  { %11067 = vmatmul.mubr.msk.f32.gmra.mrb[8].mxu1 %vm160_vm0, %v16004_v63 }
  0xb9   :  { %11069 = vmatprep.mubr.msk.f32.mxu1 %vm160_vm0, %v16005_v13 }
  0xbc   :  { %11070 = vmatmul.mubr.msk.f32.gmra.mrb[10].mxu1 %vm160_vm0, %v16006_v14 }
  0xbd   :  { %11072 = vmatprep.mubr.msk.f32.mxu1 %vm160_vm0, %v16007_v6 }
  0xc0   :  { %11073 = vmatmul.mubr.msk.f32.gmra.mrb[12].mxu1 %vm160_vm0, %v16008_v9 }
  0xc1   :  { %11075 = vmatprep.mubr.msk.f32.mxu1 %vm160_vm0, %v16009_v46 }
  0xc4   :  { %11076 = vmatmul.mubr.msk.f32.gmra.mrb[14].mxu1 %vm160_vm0, %v9510_v49 }
  0xc5   :  { %11082 = vmatprep.mubr.msk.f32.mxu1 %vm160_vm0, %v13309_v50  ;;  %v16010_v50 = vld [vmem:[#allocation35_spill] sm:$0xff] }
  0xc8   :  { %11083 = vmatmul.mubr.msk.f32.vlgmr.msra.gmra.mrb[0].mxu1 %vm160_vm0, %v13328_v55  ;;  %v16011_v55 = vld [vmem:[#allocation15_spill] sm:$0xff] }
  0xc9   :  { %12129 = vmatpush3.bf16.msra.mxu1 %v13872_v62  ;;  %11085 = vmatprep.mubr.msk.f32.mxu1 %vm160_vm0, %v13372_v4  ;;  %v16012_v4 = vld [vmem:[#allocation16_spill] sm:$0xff] }
  0xcc   :  { %11086 = vmatmul.mubr.msk.f32.gmra.mrb[2].mxu1 %vm160_vm0, %v13395_v25  ;;  %v16014_v25 = vld [vmem:[#allocation18_spill] sm:$0xff] }
  0xcd   :  { %11088 = vmatprep.mubr.msk.f32.mxu1 %vm160_vm0, %v13429_v54  ;;  %v16016_v54 = vld [vmem:[#allocation20_spill] sm:$0xff] }
  0xd0   :  { %11089 = vmatmul.mubr.msk.f32.gmra.mrb[4].mxu1 %vm160_vm0, %v13449_v59  ;;  %v16020_v59 = vld [vmem:[#allocation23_spill] sm:$0xff] }
  0xd1   :  { %11091 = vmatprep.mubr.msk.f32.mxu1 %vm160_vm0, %v13489_v36  ;;  %v16025_v36 = vld [vmem:[#allocation28_spill] sm:$0xff] }
  0xd4   :  { %11092 = vmatmul.mubr.msk.f32.gmra.mrb[6].mxu1 %vm160_vm0, %v16010_v50  ;;  %v2479_v50 = vld [vmem:[%s15888_s5 + $0x10] sm:$0xff] }
  0xd5   :  { %11094 = vmatprep.mubr.msk.f32.mxu1 %vm160_vm0, %v13543_v27  ;;  %v16024_v27 = vld [vmem:[#allocation27_spill] sm:$0xff] }
  0xd8   :  { %11095 = vmatmul.mubr.msk.f32.gmra.mrb[8].mxu1 %vm160_vm0, %v13564_v58  ;;  %v2500_v58 = vld [vmem:[%s15888_s5 + $0x38] sm:$0xff] }
  0xd9   :  { %11097 = vmatprep.mubr.msk.f32.mxu1 %vm160_vm0, %v13597_v35  ;;  %v16013_v35 = vld [vmem:[#allocation17_spill] sm:$0xff]  ;;  %v12134_v45 = vpack.c.bf16 %v2500_v58, %v2499_v57 }
  0xdb   :  { %12135 = vmatprep.subr.bf16.mxu0 %v12134_v45 }
  0xdc   :  { %11098 = vmatmul.mubr.msk.f32.gmra.mrb[10].mxu1 %vm160_vm0, %v13618_v12  ;;  %12137 = vmatpush3.bf16.msra.mxu0 %v12134_v45 }
  0xdd   :  { %11100 = vmatprep.mubr.msk.f32.mxu1 %vm160_vm0, %v13651_v31  ;;  %v16015_v31 = vld [vmem:[#allocation19_spill] sm:$0xff] }
  0xe0   :  { %11101 = vmatmul.mubr.msk.f32.gmra.mrb[12].mxu1 %vm160_vm0, %v13672_v34 }
  0xe1   :  { %11103 = vmatprep.mubr.msk.f32.mxu1 %vm160_vm0, %v13706_v18  ;;  %v16017_v18 = vld [vmem:[#allocation21_spill] sm:$0xff] }
  0xe4   :  { %11104 = vmatmul.mubr.msk.f32.gmra.mrb[14].mxu1 %vm160_vm0, %v13721_v22  ;;  %v2478_v22 = vld [vmem:[%s15888_s5 + $0x8] sm:$0xff] }
  0xe5   :  { %11110 = vmatprep.mubr.msk.f32.mxu1 %vm160_vm0, %v16011_v55  ;;  %v2480_v55 = vld [vmem:[%s15888_s5 + $0x18] sm:$0xff] }
  0xe8   :  { %11111 = vmatmul.mubr.msk.f32.vlgmr.msra.gmra.mrb[0].mxu1 %vm160_vm0, %v16012_v4 }
  0xe9   :  { %11113 = vmatprep.mubr.msk.f32.mxu1 %vm160_vm0, %v16013_v35 }
  0xec   :  { %11114 = vmatmul.mubr.msk.f32.gmra.mrb[2].mxu1 %vm160_vm0, %v16014_v25 }
  0xed   :  { %11116 = vmatprep.mubr.msk.f32.mxu1 %vm160_vm0, %v16015_v31 }
  0xf0   :  { %11117 = vmatmul.mubr.msk.f32.gmra.mrb[4].mxu1 %vm160_vm0, %v16016_v54 }
  0xf1   :  { %11119 = vmatprep.mubr.msk.f32.mxu1 %vm160_vm0, %v16017_v18 }
  0xf4   :  { %11120 = vmatmul.mubr.msk.f32.gmra.mrb[6].mxu1 %vm160_vm0, %v16018_v30 }
  0xf5   :  { %11122 = vmatprep.mubr.msk.f32.mxu1 %vm160_vm0, %v16019_v56  ;;  %v12142_v56 = vpack.c.bf16 %v2480_v55, %v2479_v50 }
  0xf8   :  { %11123 = vmatmul.mubr.msk.f32.gmra.mrb[8].mxu1 %vm160_vm0, %v16020_v59 }
  0xf9   :  { %11125 = vmatprep.mubr.msk.f32.mxu1 %vm160_vm0, %v16021_v10 }
  0xfc   :  { %11126 = vmatmul.mubr.msk.f32.gmra.mrb[10].mxu1 %vm160_vm0, %v16022_v17  ;;  %v2903_v17 = vld [vmem:[%s15888_s5 + $0x40] sm:$0xff] }
  0xfd   :  { %11128 = vmatprep.mubr.msk.f32.mxu1 %vm160_vm0, %v16023_v26  ;;  %v2904_v26 = vld [vmem:[%s15888_s5 + $0x48] sm:$0xff] }
  0xfe   :  { %v14082_v45 = vpack.c.bf16 %v2904_v26, %v2903_v17 }
 0x100   :  { %11129 = vmatmul.mubr.msk.f32.gmra.mrb[12].mxu1 %vm160_vm0, %v16024_v27 }
 0x101   :  { %11131 = vmatprep.mubr.msk.f32.mxu1 %vm160_vm0, %v16025_v36 }
 0x104   :  { %11132 = vmatmul.mubr.msk.f32.gmra.mrb[14].mxu1 %vm160_vm0, %v13726_v23  ;;  %v12138_v23 = vpack.c.bf16 %v2478_v22, %v2477_v29 }
 0x105   :  { %11430 = vmatprep.mubr.msk.f32.mxu1 %vm354_vm1, %v2481_v37 }
 0x106   :  { %12139 = vmatprep.subr.bf16.mxu0 %v12138_v23 }
 0x139   :  { %v10888_v44 = vpop.f32.mrb[16].mxu0 }
 0x13a   :  { %v546_v61 = vpop.f32.mrb[17].mxu0 }
 0x13d   :  { %v10891_v2 = vpop.f32.mrb[18].mxu0 }
 0x13e   :  { %v556_v3 = vpop.f32.mrb[19].mxu0 }
 0x141   :  { %v10894_v1 = vpop.f32.mrb[20].mxu0 }
 0x142   :  { %v566_v53 = vpop.f32.mrb[21].mxu0 }
 0x145   :  { %v10897_v12 = vpop.f32.mrb[22].mxu0 }
 0x146   :  { %v576_v0 = vpop.f32.mrb[23].mxu0 }
 0x149   :  { %v10900_v33 = vpop.f32.mrb[24].mxu0 }
 0x14a   :  { %v14022_v34 = vpop.f32.mrb[25].mxu0 }
 0x14d   :  { %v14024_v32 = vpop.f32.mrb[26].mxu0 }
 0x14e   :  { %v14026_v39 = vpop.f32.mrb[27].mxu0 }
 0x151   :  { %v14034_v60 = vpop.f32.mrb[28].mxu0 }
 0x152   :  { %v14036_v28 = vpop.f32.mrb[29].mxu0 }
 0x155   :  { %v14038_v20 = vpop.f32.mrb[30].mxu0 }
 0x156   :  { %v14040_v24 = vpop.f32.mrb[31].mxu0 }
 0x1bb   :  { %v11112_v16 = vpop.f32.mrb[0].mxu1 }
 0x1bc   :  { %v12398_v40 = vadd.f32 %v11112_v16, %v10888_v44  ;;  %v2312_v21 = vpop.f32.mrb[1].mxu1 }
 0x1bd   :  { %v12399_v41 = vadd.f32 %v2312_v21, %v546_v61 }
 0x1be   :  { %v2413_v47 = vadd.f32 %v12398_v40, %v14045_v38 }
 0x1bf   :  { %v2412_v51 = vadd.f32 %v12399_v41, %v14045_v38  ;;  %v11115_v48 = vpop.f32.mrb[2].mxu1 }
 0x1c0   :  { %v2429_v52 = vmax.f32 %v2413_v47, 0.0  ;;  %v12400_v62 = vadd.f32 %v11115_v48, %v10891_v2  ;;  %v2322_v42 = vpop.f32.mrb[3].mxu1 }
 0x1c1   :  { %v2428_v7 = vmax.f32 %v2412_v51, 0.0  ;;  %v12401_v8 = vadd.f32 %v2322_v42, %v556_v3 }
 0x1c2   :  { %2446 = vst.msk [vmem:[#allocation2 + $0x21] sm:$0xff] %vm354_vm1, %v2429_v52  ;;  %v2415_v11 = vadd.f32 %v12400_v62, %v14045_v38  ;;  %v14113_v62 = vld [vmem:[#allocation2 + $0xa1] sm:$0xff] }
 0x1c3   :  { %2445 = vst.msk [vmem:[#allocation2 + $0x11] sm:$0xff] %vm354_vm1, %v2428_v7  ;;  %v2414_v63 = vadd.f32 %v12401_v8, %v14045_v38  ;;  %v11118_v13 = vpop.f32.mrb[4].mxu1 }
 0x1c4   :  { %v2431_v14 = vmax.f32 %v2415_v11, 0.0  ;;  %v12402_v5 = vadd.f32 %v11118_v13, %v10894_v1  ;;  %v2332_v6 = vpop.f32.mrb[5].mxu1 }
 0x1c5   :  { %v2430_v9 = vmax.f32 %v2414_v63, 0.0  ;;  %v12403_v46 = vadd.f32 %v2332_v6, %v566_v53 }
 0x1c6   :  { %2448 = vst.msk [vmem:[#allocation2 + $0x41] sm:$0xff] %vm354_vm1, %v2431_v14  ;;  %v2417_v49 = vadd.f32 %v12402_v5, %v14045_v38 }
 0x1c7   :  { %2447 = vst.msk [vmem:[#allocation2 + $0x31] sm:$0xff] %vm354_vm1, %v2430_v9  ;;  %v2416_v4 = vadd.f32 %v12403_v46, %v14045_v38  ;;  %v11121_v35 = vpop.f32.mrb[6].mxu1 }
 0x1c8   :  { %v2433_v25 = vmax.f32 %v2417_v49, 0.0  ;;  %v12404_v31 = vadd.f32 %v11121_v35, %v10897_v12  ;;  %v2342_v54 = vpop.f32.mrb[7].mxu1 }
 0x1c9   :  { %v2432_v18 = vmax.f32 %v2416_v4, 0.0  ;;  %v12405_v30 = vadd.f32 %v2342_v54, %v576_v0  ;;  %v14077_v44 = vld [vmem:[#allocation2 + $0x21] sm:$0xff] }
 0x1ca   :  { %2450 = vst.msk [vmem:[#allocation2 + $0x61] sm:$0xff] %vm354_vm1, %v2433_v25  ;;  %v2419_v59 = vadd.f32 %v12404_v31, %v14045_v38  ;;  %v14065_v10 = vld [vmem:[#allocation2 + $0x11] sm:$0xff]  ;;  %v14157_v4 = vld [vmem:[#allocation2] sm:$0xff] }
 0x1cb   :  { %2449 = vst.msk [vmem:[#allocation2 + $0x51] sm:$0xff] %vm354_vm1, %v2432_v18  ;;  %v2418_v27 = vadd.f32 %v12405_v30, %v14045_v38  ;;  %v11124_v36 = vpop.f32.mrb[8].mxu1  ;;  %11143 = vmatmul.mubr.msk.f32.vlgmr.msra.gmra.mrb[0].mxu0 %vm354_vm1, %v14065_v10  ;;  %v2905_v25 = vld [vmem:[%s15888_s5 + $0x50] sm:$0xff]  ;;  %v2906_v31 = vld [vmem:[%s15888_s5 + $0x58] sm:$0xff]  ;;  %v3132_v30 = vld [vmem:[%s15888_s5 + $0x60] sm:$0xff] }
 0x1cc   :  { %v2435_v61 = vmax.f32 %v2419_v59, 0.0  ;;  %v12406_v2 = vadd.f32 %v11124_v36, %v10900_v33  ;;  %v2352_v3 = vpop.f32.mrb[9].mxu1  ;;  %11145 = vmatprep.mubr.msk.f32.mxu0 %vm354_vm1, %v14077_v44  ;;  %12141 = vmatpush3.bf16.msra.mxu0 %v12138_v23  ;;  %v12150_v54 = vpack.c.bf16 %v2906_v31, %v2905_v25  ;;  %v14171_v18 = vld [vmem:[#allocation2 + $0x10] sm:$0xff]  ;;  %v14181_v59 = vld [vmem:[#allocation2 + $0x20] sm:$0xff] }
 0x1cd   :  { %v2434_v57 = vmax.f32 %v2418_v27, 0.0  ;;  %v12407_v58 = vadd.f32 %v2352_v3, %v14022_v34  ;;  %12143 = vmatprep.subr.bf16.mxu0 %v12142_v56  ;;  %v14092_v37 = vld [vmem:[#allocation2 + $0x41] sm:$0xff] }
 0x1ce   :  { %2452 = vst.msk [vmem:[#allocation2 + $0x81] sm:$0xff] %vm354_vm1, %v2435_v61  ;;  %v2421_v1 = vadd.f32 %v12406_v2, %v14045_v38  ;;  %v14086_v53 = vld [vmem:[#allocation2 + $0x31] sm:$0xff]  ;;  %v14190_v27 = vld [vmem:[#allocation2 + $0x40] sm:$0xff] }
 0x1cf   :  { %2451 = vst.msk [vmem:[#allocation2 + $0x71] sm:$0xff] %vm354_vm1, %v2434_v57  ;;  %v2420_v12 = vadd.f32 %v12407_v58, %v14045_v38  ;;  %v11127_v0 = vpop.f32.mrb[10].mxu1  ;;  %11146 = vmatmul.mubr.msk.f32.gmra.mrb[2].mxu0 %vm354_vm1, %v14086_v53  ;;  %v14186_v26 = vld [vmem:[#allocation2 + $0x30] sm:$0xff]  ;;  %v14202_v2 = vld [vmem:[#allocation2 + $0xa0] sm:$0xff] }
 0x1d0   :  { %v2437_v33 = vmax.f32 %v2421_v1, 0.0  ;;  %v12408_v34 = vadd.f32 %v11127_v0, %v14024_v32  ;;  %v2362_v29 = vpop.f32.mrb[11].mxu1  ;;  %11148 = vmatprep.mubr.msk.f32.mxu0 %vm354_vm1, %v14092_v37  ;;  %12145 = vmatpush3.bf16.msra.mxu0 %v12142_v56  ;;  %v3133_v56 = vld [vmem:[%s15888_s5 + $0x68] sm:$0xff]  ;;  %v3590_v31 = vld [vmem:[%s15888_s5 + $0xa0] sm:$0xff] }
 0x1d1   :  { %v2436_v22 = vmax.f32 %v2420_v12, 0.0  ;;  %v12409_v23 = vadd.f32 %v2362_v29, %v14026_v39  ;;  %12147 = vmatprep.subr.bf16.mxu0 %v14082_v45  ;;  %v14107_v41 = vld [vmem:[#allocation2 + $0x61] sm:$0xff]  ;;  %v12154_v17 = vpack.c.bf16 %v3133_v56, %v3132_v30  ;;  %v3134_v29 = vld [vmem:[%s15888_s5 + $0x70] sm:$0xff] }
 0x1d2   :  { %2454 = vst.msk [vmem:[#allocation2 + $0xc1] sm:$0xff] %vm354_vm1, %v2437_v33  ;;  %v2423_v16 = vadd.f32 %v12408_v34, %v14045_v38  ;;  %v14101_v40 = vld [vmem:[#allocation2 + $0x51] sm:$0xff]  ;;  %v14198_v61 = vld [vmem:[#allocation2 + $0x60] sm:$0xff] }
 0x1d3   :  { %2453 = vst.msk [vmem:[#allocation2 + $0xb1] sm:$0xff] %vm354_vm1, %v2436_v22  ;;  %v2422_v32 = vadd.f32 %v12409_v23, %v14045_v38  ;;  %v11130_v21 = vpop.f32.mrb[12].mxu1  ;;  %11149 = vmatmul.mubr.msk.f32.gmra.mrb[4].mxu0 %vm354_vm1, %v14101_v40  ;;  %v14194_v36 = vld [vmem:[#allocation2 + $0x50] sm:$0xff]  ;;  %v14234_v33 = vld [vmem:[#allocation2 + $0x2] sm:$0xff]  ;;  %v3135_v22 = vld [vmem:[%s15888_s5 + $0x78] sm:$0xff] }
 0x1d4   :  { %v2439_v47 = vmax.f32 %v2423_v16, 0.0  ;;  %v12410_v39 = vadd.f32 %v11130_v21, %v14034_v60  ;;  %v2372_v51 = vpop.f32.mrb[13].mxu1  ;;  %11151 = vmatprep.mubr.msk.f32.mxu0 %vm354_vm1, %v14107_v41  ;;  %v12158_v23 = vpack.c.bf16 %v3135_v22, %v3134_v29  ;;  %v14248_v16 = vld [vmem:[#allocation2 + $0x12] sm:$0xff]  ;;  %v3362_v21 = vld [vmem:[%s15888_s5 + $0x88] sm:$0xff]  ;;  %v3820_v22 = vld [vmem:[%s15888_s5 + $0xc0] sm:$0xff] }
 0x1d5   :  { %v2438_v48 = vmax.f32 %v2422_v32, 0.0  ;;  %v12411_v52 = vadd.f32 %v2372_v51, %v14036_v28  ;;  %v3361_v32 = vld [vmem:[%s15888_s5 + $0x80] sm:$0xff]  ;;  %v14262_v51 = vld [vmem:[#allocation2 + $0x32] sm:$0xff] }
 0x1d6   :  { %2456 = vst.msk [vmem:[#allocation2 + $0xe1] sm:$0xff] %vm354_vm1, %v2439_v47  ;;  %v2425_v42 = vadd.f32 %v12410_v39, %v14045_v38  ;;  %v14117_v7 = vld [vmem:[#allocation2 + $0x71] sm:$0xff]  ;;  %v14258_v47 = vld [vmem:[#allocation2 + $0x22] sm:$0xff]  ;;  %v12162_v39 = vpack.c.bf16 %v3362_v21, %v3361_v32 }
 0x1d7   :  { %2455 = vst.msk [vmem:[#allocation2 + $0xd1] sm:$0xff] %vm354_vm1, %v2438_v48  ;;  %v2424_v8 = vadd.f32 %v12411_v52, %v14045_v38  ;;  %v11133_v60 = vpop.f32.mrb[14].mxu1  ;;  %11152 = vmatmul.mubr.msk.f32.gmra.mrb[6].mxu0 %vm354_vm1, %v14117_v7  ;;  %v14204_v3 = vld [vmem:[#allocation2 + $0x70] sm:$0xff]  ;;  %v14266_v48 = vld [vmem:[#allocation2 + $0x42] sm:$0xff] }
 0x1d8   :  { %v2441_v11 = vmax.f32 %v2425_v42, 0.0  ;;  %v12412_v63 = vadd.f32 %v11133_v60, %v14038_v20  ;;  %v2382_v28 = vpop.f32.mrb[15].mxu1  ;;  %11154 = vmatprep.mubr.msk.f32.mxu0 %vm354_vm1, %v14113_v62  ;;  %v14270_v52 = vld [vmem:[#allocation2 + $0x52] sm:$0xff]  ;;  %v14274_v42 = vld [vmem:[#allocation2 + $0x62] sm:$0xff] }
 0x1d9   :  { %v2440_v13 = vmax.f32 %v2424_v8, 0.0  ;;  %v12413_v14 = vadd.f32 %v2382_v28, %v14040_v24  ;;  %v14135_v20 = vld [vmem:[#allocation2 + $0xc1] sm:$0xff]  ;;  %v14280_v60 = vld [vmem:[#allocation2 + $0x72] sm:$0xff] }
 0x1da   :  { %2458 = vst.msk [vmem:[#allocation2 + $0x101] sm:$0xff] %vm354_vm1, %v2441_v11  ;;  %v2427_v5 = vadd.f32 %v12412_v63, %v14045_v38  ;;  %v14129_v6 = vld [vmem:[#allocation2 + $0xb1] sm:$0xff]  ;;  %v14214_v58 = vld [vmem:[#allocation2 + $0xc0] sm:$0xff] }
 0x1db   :  { %2457 = vst.msk [vmem:[#allocation2 + $0xf1] sm:$0xff] %vm354_vm1, %v2440_v13  ;;  %v2426_v9 = vadd.f32 %v12413_v14, %v14045_v38  ;;  %11155 = vmatmul.mubr.msk.f32.gmra.mrb[8].mxu0 %vm354_vm1, %v14129_v6  ;;  %v14210_v57 = vld [vmem:[#allocation2 + $0xb0] sm:$0xff]  ;;  %v14278_v8 = vld [vmem:[#allocation2 + $0xa2] sm:$0xff] }
 0x1dc   :  { %v2443_v46 = vmax.f32 %v2427_v5, 0.0  ;;  %11157 = vmatprep.mubr.msk.f32.mxu0 %vm354_vm1, %v14135_v20  ;;  %v14286_v11 = vld [vmem:[#allocation2 + $0xb2] sm:$0xff]  ;;  %v14290_v63 = vld [vmem:[#allocation2 + $0xc2] sm:$0xff] }
 0x1dd   :  { %v2442_v24 = vmax.f32 %v2426_v9, 0.0  ;;  %v14145_v38 = vld [vmem:[#allocation2 + $0xe1] sm:$0xff] }
 0x1de   :  { %2460 = vst.msk [vmem:[#allocation2 + $0x121] sm:$0xff] %vm354_vm1, %v2443_v46  ;;  %v14140_v49 = vld [vmem:[#allocation2 + $0xd1] sm:$0xff]  ;;  %v14222_v1 = vld [vmem:[#allocation2 + $0xe0] sm:$0xff] }
 0x1df   :  { %2459 = vst.msk [vmem:[#allocation2 + $0x111] sm:$0xff] %vm354_vm1, %v2442_v24  ;;  %11158 = vmatmul.mubr.msk.f32.gmra.mrb[10].mxu0 %vm354_vm1, %v14140_v49  ;;  %v14294_v28 = vld [vmem:[#allocation2 + $0xd2] sm:$0xff]  ;;  %v14298_v13 = vld [vmem:[#allocation2 + $0xe2] sm:$0xff] }
 0x1e0   :  { %11160 = vmatprep.mubr.msk.f32.mxu0 %vm354_vm1, %v14145_v38  ;;  %v3363_v46 = vld [vmem:[%s15888_s5 + $0x90] sm:$0xff]  ;;  %v3364_v24 = vld [vmem:[%s15888_s5 + $0x98] sm:$0xff] }
 0x1e1   :  { %v14153_v55 = vld [vmem:[#allocation2 + $0x101] sm:$0xff]  ;;  %v12166_v25 = vpack.c.bf16 %v3364_v24, %v3363_v46 }
 0x1e2   :  { %v14149_v50 = vld [vmem:[#allocation2 + $0xf1] sm:$0xff]  ;;  %v14230_v0 = vld [vmem:[#allocation2 + $0x100] sm:$0xff]  ;;  %v4597_v24 = vld [vmem:[%s15889_s6 + $0x28] sm:$0xff] }
 0x1e3   :  { %11161 = vmatmul.mubr.msk.f32.gmra.mrb[12].mxu0 %vm354_vm1, %v14149_v50  ;;  %v14226_v12 = vld [vmem:[#allocation2 + $0xf0] sm:$0xff]  ;;  %v14306_v5 = vld [vmem:[#allocation2 + $0x102] sm:$0xff] }
 0x1e4   :  { %11163 = vmatprep.mubr.msk.f32.mxu0 %vm354_vm1, %v14153_v55  ;;  %v14302_v14 = vld [vmem:[#allocation2 + $0xf2] sm:$0xff]  ;;  %v4596_v46 = vld [vmem:[%s15889_s6 + $0x20] sm:$0xff] }
 0x1e5   :  { %v14358_v56 = vld [vmem:[#allocation2 + $0x120] sm:$0xff] }
 0x1e6   :  { %v14159_v35 = vld [vmem:[#allocation2 + $0x111] sm:$0xff]  ;;  %v14406_v21 = vld [vmem:[#allocation2 + $0x121] sm:$0xff] }
 0x1e7   :  { %11164 = vmatmul.mubr.msk.f32.gmra.mrb[14].mxu0 %vm354_vm1, %v14159_v35  ;;  %v14236_v34 = vld [vmem:[#allocation2 + $0x110] sm:$0xff] }
 0x1e8   :  { %11174 = vmatprep.mubr.msk.f32.mxu0 %vm354_vm1, %v14157_v4  ;;  %v14310_v9 = vld [vmem:[#allocation2 + $0x112] sm:$0xff] }
 0x1eb   :  { %11175 = vmatmul.mubr.msk.f32.vlgmr.msra.gmra.mrb[0].mxu0 %vm354_vm1, %v14171_v18 }
 0x1ec   :  { %11177 = vmatprep.mubr.msk.f32.mxu0 %vm354_vm1, %v14181_v59  ;;  %12149 = vmatpush3.bf16.msra.mxu0 %v14082_v45  ;;  %v14218_v45 = vld [vmem:[#allocation2 + $0xd0] sm:$0xff] }
 0x1ed   :  { %12151 = vmatprep.subr.bf16.mxu0 %v12150_v54 }
 0x1ef   :  { %11178 = vmatmul.mubr.msk.f32.gmra.mrb[2].mxu0 %vm354_vm1, %v14186_v26 }
 0x1f0   :  { %11180 = vmatprep.mubr.msk.f32.mxu0 %vm354_vm1, %v14190_v27  ;;  %12153 = vmatpush3.bf16.msra.mxu0 %v12150_v54  ;;  %v3591_v54 = vld [vmem:[%s15888_s5 + $0xa8] sm:$0xff] }
 0x1f1   :  { %12155 = vmatprep.subr.bf16.mxu0 %v12154_v17  ;;  %v12170_v30 = vpack.c.bf16 %v3591_v54, %v3590_v31  ;;  %v4049_v54 = vld [vmem:[%s15888_s5 + $0xe0] sm:$0xff] }
 0x1f3   :  { %11181 = vmatmul.mubr.msk.f32.gmra.mrb[4].mxu0 %vm354_vm1, %v14194_v36 }
 0x1f4   :  { %11183 = vmatprep.mubr.msk.f32.mxu0 %vm354_vm1, %v14198_v61 }
 0x1f7   :  { %11184 = vmatmul.mubr.msk.f32.gmra.mrb[6].mxu0 %vm354_vm1, %v14204_v3 }
 0x1f8   :  { %11186 = vmatprep.mubr.msk.f32.mxu0 %vm354_vm1, %v14202_v2 }
 0x1fb   :  { %11187 = vmatmul.mubr.msk.f32.gmra.mrb[8].mxu0 %vm354_vm1, %v14210_v57 }
 0x1fc   :  { %11189 = vmatprep.mubr.msk.f32.mxu0 %vm354_vm1, %v14214_v58 }
 0x1ff   :  { %11190 = vmatmul.mubr.msk.f32.gmra.mrb[10].mxu0 %vm354_vm1, %v14218_v45 }
 0x200   :  { %11192 = vmatprep.mubr.msk.f32.mxu0 %vm354_vm1, %v14222_v1 }
 0x203   :  { %11193 = vmatmul.mubr.msk.f32.gmra.mrb[12].mxu0 %vm354_vm1, %v14226_v12 }
 0x204   :  { %11195 = vmatprep.mubr.msk.f32.mxu0 %vm354_vm1, %v14230_v0 }
 0x207   :  { %11196 = vmatmul.mubr.msk.f32.gmra.mrb[14].mxu0 %vm354_vm1, %v14236_v34 }
 0x208   :  { %11206 = vmatprep.mubr.msk.f32.mxu0 %vm354_vm1, %v14234_v33 }
 0x20b   :  { %11207 = vmatmul.mubr.msk.f32.vlgmr.msra.gmra.mrb[0].mxu0 %vm354_vm1, %v14248_v16 }
 0x20c   :  { %11209 = vmatprep.mubr.msk.f32.mxu0 %vm354_vm1, %v14258_v47  ;;  %12157 = vmatpush3.bf16.msra.mxu0 %v12154_v17  ;;  %v3592_v17 = vld [vmem:[%s15888_s5 + $0xb0] sm:$0xff] }
 0x20d   :  { %12159 = vmatprep.subr.bf16.mxu0 %v12158_v23 }
 0x20f   :  { %11210 = vmatmul.mubr.msk.f32.gmra.mrb[2].mxu0 %vm354_vm1, %v14262_v51 }
 0x210   :  { %11212 = vmatprep.mubr.msk.f32.mxu0 %vm354_vm1, %v14266_v48  ;;  %12161 = vmatpush3.bf16.msra.mxu0 %v12158_v23  ;;  %v3821_v23 = vld [vmem:[%s15888_s5 + $0xc8] sm:$0xff] }
 0x211   :  { %12163 = vmatprep.subr.bf16.mxu0 %v12162_v39  ;;  %v12178_v32 = vpack.c.bf16 %v3821_v23, %v3820_v22  ;;  %v4278_v23 = vld [vmem:[%s15888_s5 + $0x100] sm:$0xff] }
 0x213   :  { %11213 = vmatmul.mubr.msk.f32.gmra.mrb[4].mxu0 %vm354_vm1, %v14270_v52 }
 0x214   :  { %11215 = vmatprep.mubr.msk.f32.mxu0 %vm354_vm1, %v14274_v42 }
 0x217   :  { %11216 = vmatmul.mubr.msk.f32.gmra.mrb[6].mxu0 %vm354_vm1, %v14280_v60 }
 0x218   :  { %11218 = vmatprep.mubr.msk.f32.mxu0 %vm354_vm1, %v14278_v8 }
 0x21b   :  { %11219 = vmatmul.mubr.msk.f32.gmra.mrb[8].mxu0 %vm354_vm1, %v14286_v11 }
 0x21c   :  { %11221 = vmatprep.mubr.msk.f32.mxu0 %vm354_vm1, %v14290_v63 }
 0x21f   :  { %11222 = vmatmul.mubr.msk.f32.gmra.mrb[10].mxu0 %vm354_vm1, %v14294_v28 }
 0x220   :  { %11224 = vmatprep.mubr.msk.f32.mxu0 %vm354_vm1, %v14298_v13 }
 0x223   :  { %11225 = vmatmul.mubr.msk.f32.gmra.mrb[12].mxu0 %vm354_vm1, %v14302_v14 }
 0x224   :  { %11227 = vmatprep.mubr.msk.f32.mxu0 %vm354_vm1, %v14306_v5 }
 0x227   :  { %11228 = vmatmul.mubr.msk.f32.gmra.mrb[14].mxu0 %vm354_vm1, %v14310_v9 }
 0x228   :  { %11238 = vmatprep.mubr.msk.f32.mxu0 %vm354_vm1, %v14171_v18  ;;  %v14340_v18 = vld [vmem:[#allocation2 + $0x80] sm:$0xff] }
 0x22b   :  { %11239 = vmatmul.mubr.msk.f32.vlgmr.msra.gmra.mrb[0].mxu0 %vm354_vm1, %v14181_v59 }
 0x22c   :  { %11241 = vmatprep.mubr.msk.f32.mxu0 %vm354_vm1, %v14186_v26  ;;  %12165 = vmatpush3.bf16.msra.mxu0 %v12162_v39  ;;  %v3823_v39 = vld [vmem:[%s15888_s5 + $0xd8] sm:$0xff] }
 0x22d   :  { %12167 = vmatprep.subr.bf16.mxu0 %v12166_v25 }
 0x22f   :  { %11242 = vmatmul.mubr.msk.f32.gmra.mrb[2].mxu0 %vm354_vm1, %v14190_v27 }
 0x230   :  { %11244 = vmatprep.mubr.msk.f32.mxu0 %vm354_vm1, %v14194_v36  ;;  %12169 = vmatpush3.bf16.msra.mxu0 %v12166_v25  ;;  %v12202_v25 = vpack.c.bf16 %v4597_v24, %v4596_v46 }
 0x231   :  { %12171 = vmatprep.subr.bf16.mxu0 %v12170_v30 }
 0x232   :  { %12203 = vmatprep.subr.bf16.mxu1 %v12202_v25 }
 0x233   :  { %11245 = vmatmul.mubr.msk.f32.gmra.mrb[4].mxu0 %vm354_vm1, %v14198_v61  ;;  %12205 = vmatpush3.bf16.msra.mxu1 %v12202_v25 }
 0x234   :  { %11247 = vmatprep.mubr.msk.f32.mxu0 %vm354_vm1, %v14204_v3 }
 0x237   :  { %11248 = vmatmul.mubr.msk.f32.gmra.mrb[6].mxu0 %vm354_vm1, %v14340_v18 }
 0x238   :  { %11250 = vmatprep.mubr.msk.f32.mxu0 %vm354_vm1, %v14210_v57  ;;  %v3593_v57 = vld [vmem:[%s15888_s5 + $0xb8] sm:$0xff] }
 0x239   :  { %v12174_v29 = vpack.c.bf16 %v3593_v57, %v3592_v17  ;;  %v14442_v17 = vld [vmem:[#allocation2 + $0x82] sm:$0xff] }
 0x23a   :  { %v14460_v57 = vld [vmem:[#allocation2 + $0x122] sm:$0xff] }
 0x23b   :  { %11251 = vmatmul.mubr.msk.f32.gmra.mrb[8].mxu0 %vm354_vm1, %v14214_v58 }
 0x23c   :  { %11253 = vmatprep.mubr.msk.f32.mxu0 %vm354_vm1, %v14218_v45 }
 0x23f   :  { %11254 = vmatmul.mubr.msk.f32.gmra.mrb[10].mxu0 %vm354_vm1, %v14222_v1 }
 0x240   :  { %11256 = vmatprep.mubr.msk.f32.mxu0 %vm354_vm1, %v14226_v12 }
 0x243   :  { %11257 = vmatmul.mubr.msk.f32.gmra.mrb[12].mxu0 %vm354_vm1, %v14230_v0 }
 0x244   :  { %11259 = vmatprep.mubr.msk.f32.mxu0 %vm354_vm1, %v14236_v34 }
 0x247   :  { %11260 = vmatmul.mubr.msk.f32.gmra.mrb[14].mxu0 %vm354_vm1, %v14358_v56 }
 0x248   :  { %11270 = vmatprep.mubr.msk.f32.mxu0 %vm354_vm1, %v14065_v10  ;;  %v14388_v10 = vld [vmem:[#allocation2 + $0x81] sm:$0xff] }
 0x24b   :  { %11271 = vmatmul.mubr.msk.f32.vlgmr.msra.gmra.mrb[0].mxu0 %vm354_vm1, %v14077_v44 }
 0x24c   :  { %11273 = vmatprep.mubr.msk.f32.mxu0 %vm354_vm1, %v14086_v53  ;;  %12173 = vmatpush3.bf16.msra.mxu0 %v12170_v30  ;;  %v4050_v30 = vld [vmem:[%s15888_s5 + $0xe8] sm:$0xff] }
 0x24d   :  { %12175 = vmatprep.subr.bf16.mxu0 %v12174_v29 }
 0x24f   :  { %11274 = vmatmul.mubr.msk.f32.gmra.mrb[2].mxu0 %vm354_vm1, %v14092_v37 }
 0x250   :  { %11276 = vmatprep.mubr.msk.f32.mxu0 %vm354_vm1, %v14101_v40  ;;  %12177 = vmatpush3.bf16.msra.mxu0 %v12174_v29  ;;  %v4052_v29 = vld [vmem:[%s15888_s5 + $0xf8] sm:$0xff] }
 0x251   :  { %12179 = vmatprep.subr.bf16.mxu0 %v12178_v32 }
 0x253   :  { %11277 = vmatmul.mubr.msk.f32.gmra.mrb[4].mxu0 %vm354_vm1, %v14107_v41 }
 0x254   :  { %11279 = vmatprep.mubr.msk.f32.mxu0 %vm354_vm1, %v14117_v7 }
 0x257   :  { %11280 = vmatmul.mubr.msk.f32.gmra.mrb[6].mxu0 %vm354_vm1, %v14388_v10 }
 0x258   :  { %11282 = vmatprep.mubr.msk.f32.mxu0 %vm354_vm1, %v14129_v6  ;;  %v3822_v6 = vld [vmem:[%s15888_s5 + $0xd0] sm:$0xff] }
 0x259   :  { %v12182_v31 = vpack.c.bf16 %v3823_v39, %v3822_v6 }
 0x25b   :  { %11283 = vmatmul.mubr.msk.f32.gmra.mrb[8].mxu0 %vm354_vm1, %v14135_v20 }
 0x25c   :  { %11285 = vmatprep.mubr.msk.f32.mxu0 %vm354_vm1, %v14140_v49 }
 0x25f   :  { %11286 = vmatmul.mubr.msk.f32.gmra.mrb[10].mxu0 %vm354_vm1, %v14145_v38 }
 0x260   :  { %11288 = vmatprep.mubr.msk.f32.mxu0 %vm354_vm1, %v14149_v50 }
 0x263   :  { %11289 = vmatmul.mubr.msk.f32.gmra.mrb[12].mxu0 %vm354_vm1, %v14153_v55 }
 0x264   :  { %11291 = vmatprep.mubr.msk.f32.mxu0 %vm354_vm1, %v14159_v35 }
 0x267   :  { %11292 = vmatmul.mubr.msk.f32.gmra.mrb[14].mxu0 %vm354_vm1, %v14406_v21 }
 0x268   :  { %11302 = vmatprep.mubr.msk.f32.mxu0 %vm354_vm1, %v14248_v16  ;;  %v12186_v16 = vpack.c.bf16 %v4050_v30, %v4049_v54 }
 0x26b   :  { %11303 = vmatmul.mubr.msk.f32.vlgmr.msra.gmra.mrb[0].mxu0 %vm354_vm1, %v14258_v47 }
 0x26c   :  { %11305 = vmatprep.mubr.msk.f32.mxu0 %vm354_vm1, %v14262_v51  ;;  %12181 = vmatpush3.bf16.msra.mxu0 %v12178_v32  ;;  %v4279_v32 = vld [vmem:[%s15888_s5 + $0x108] sm:$0xff] }
 0x26d   :  { %12183 = vmatprep.subr.bf16.mxu0 %v12182_v31  ;;  %v12194_v6 = vpack.c.bf16 %v4279_v32, %v4278_v23 }
 0x26f   :  { %11306 = vmatmul.mubr.msk.f32.gmra.mrb[2].mxu0 %vm354_vm1, %v14266_v48 }
 0x270   :  { %11308 = vmatprep.mubr.msk.f32.mxu0 %vm354_vm1, %v14270_v52  ;;  %12185 = vmatpush3.bf16.msra.mxu0 %v12182_v31 }
 0x271   :  { %12187 = vmatprep.subr.bf16.mxu0 %v12186_v16 }
 0x273   :  { %11309 = vmatmul.mubr.msk.f32.gmra.mrb[4].mxu0 %vm354_vm1, %v14274_v42 }
 0x274   :  { %11311 = vmatprep.mubr.msk.f32.mxu0 %vm354_vm1, %v14280_v60 }
 0x277   :  { %11312 = vmatmul.mubr.msk.f32.gmra.mrb[6].mxu0 %vm354_vm1, %v14442_v17 }
 0x278   :  { %11314 = vmatprep.mubr.msk.f32.mxu0 %vm354_vm1, %v14286_v11  ;;  %v4051_v11 = vld [vmem:[%s15888_s5 + $0xf0] sm:$0xff] }
 0x279   :  { %v12190_v22 = vpack.c.bf16 %v4052_v29, %v4051_v11  ;;  %v5002_v11 = vld [vmem:[%s15889_s6 + $0x40] sm:$0xff]  ;;  %v5003_v29 = vld [vmem:[%s15889_s6 + $0x48] sm:$0xff] }
 0x27b   :  { %11315 = vmatmul.mubr.msk.f32.gmra.mrb[8].mxu0 %vm354_vm1, %v14290_v63 }
 0x27c   :  { %11317 = vmatprep.mubr.msk.f32.mxu0 %vm354_vm1, %v14294_v28 }
 0x27f   :  { %11318 = vmatmul.mubr.msk.f32.gmra.mrb[10].mxu0 %vm354_vm1, %v14298_v13 }
 0x280   :  { %11320 = vmatprep.mubr.msk.f32.mxu0 %vm354_vm1, %v14302_v14 }
 0x283   :  { %11321 = vmatmul.mubr.msk.f32.gmra.mrb[12].mxu0 %vm354_vm1, %v14306_v5 }
 0x284   :  { %11323 = vmatprep.mubr.msk.f32.mxu0 %vm354_vm1, %v14310_v9 }
 0x287   :  { %11324 = vmatmul.mubr.msk.f32.gmra.mrb[14].mxu0 %vm354_vm1, %v14460_v57 }
 0x288   :  { %11334 = vmatprep.mubr.msk.f32.mxu0 %vm354_vm1, %v14181_v59  ;;  %v14490_v59 = vld [vmem:[#allocation2 + $0x90] sm:$0xff] }
 0x28b   :  { %11335 = vmatmul.mubr.msk.f32.vlgmr.msra.gmra.mrb[0].mxu0 %vm354_vm1, %v14186_v26  ;;  %v14508_v26 = vld [vmem:[#allocation2 + $0x130] sm:$0xff] }
 0x28c   :  { %11337 = vmatprep.mubr.msk.f32.mxu0 %vm354_vm1, %v14190_v27  ;;  %12189 = vmatpush3.bf16.msra.mxu0 %v12186_v16  ;;  %v4280_v27 = vld [vmem:[%s15888_s5 + $0x110] sm:$0xff] }
 0x28d   :  { %12191 = vmatprep.subr.bf16.mxu0 %v12190_v22 }
 0x28f   :  { %11338 = vmatmul.mubr.msk.f32.gmra.mrb[2].mxu0 %vm354_vm1, %v14194_v36  ;;  %v4281_v36 = vld [vmem:[%s15888_s5 + $0x118] sm:$0xff] }
 0x290   :  { %11340 = vmatprep.mubr.msk.f32.mxu0 %vm354_vm1, %v14198_v61  ;;  %12193 = vmatpush3.bf16.msra.mxu0 %v12190_v22  ;;  %v12198_v61 = vpack.c.bf16 %v4281_v36, %v4280_v27 }
 0x291   :  { %12195 = vmatprep.subr.bf16.mxu0 %v12194_v6 }
 0x293   :  { %11341 = vmatmul.mubr.msk.f32.gmra.mrb[4].mxu0 %vm354_vm1, %v14204_v3  ;;  %v14610_v3 = vld [vmem:[%s15893_s10 + $0x1] ss:$0 sm:$0xff] }
 0x294   :  { %11343 = vmatprep.mubr.msk.f32.mxu0 %vm354_vm1, %v14340_v18 }
 0x297   :  { %11344 = vmatmul.mubr.msk.f32.gmra.mrb[6].mxu0 %vm354_vm1, %v14490_v59 }
 0x298   :  { %11346 = vmatprep.mubr.msk.f32.mxu0 %vm354_vm1, %v14214_v58 }
 0x29b   :  { %11347 = vmatmul.mubr.msk.f32.gmra.mrb[8].mxu0 %vm354_vm1, %v14218_v45 }
 0x29c   :  { %11349 = vmatprep.mubr.msk.f32.mxu0 %vm354_vm1, %v14222_v1 }
 0x29f   :  { %11350 = vmatmul.mubr.msk.f32.gmra.mrb[10].mxu0 %vm354_vm1, %v14226_v12 }
 0x2a0   :  { %11352 = vmatprep.mubr.msk.f32.mxu0 %vm354_vm1, %v14230_v0 }
 0x2a3   :  { %11353 = vmatmul.mubr.msk.f32.gmra.mrb[12].mxu0 %vm354_vm1, %v14236_v34 }
 0x2a4   :  { %11355 = vmatprep.mubr.msk.f32.mxu0 %vm354_vm1, %v14358_v56 }
 0x2a7   :  { %11356 = vmatmul.mubr.msk.f32.gmra.mrb[14].mxu0 %vm354_vm1, %v14508_v26 }
 0x2a8   :  { %11366 = vmatprep.mubr.msk.f32.mxu0 %vm354_vm1, %v14077_v44  ;;  %v14532_v44 = vld [vmem:[#allocation2 + $0x91] sm:$0xff] }
 0x2ab   :  { %11367 = vmatmul.mubr.msk.f32.vlgmr.msra.gmra.mrb[0].mxu0 %vm354_vm1, %v14086_v53  ;;  %v14550_v53 = vld [vmem:[#allocation2 + $0x131] sm:$0xff] }
 0x2ac   :  { %11369 = vmatprep.mubr.msk.f32.mxu0 %vm354_vm1, %v14092_v37  ;;  %12197 = vmatpush3.bf16.msra.mxu0 %v12194_v6  ;;  %v14568_v37 = vld [vmem:[#allocation2 + $0x92] sm:$0xff] }
 0x2ad   :  { %12199 = vmatprep.subr.bf16.mxu0 %v12198_v61 }
 0x2af   :  { %11370 = vmatmul.mubr.msk.f32.gmra.mrb[2].mxu0 %vm354_vm1, %v14101_v40  ;;  %v14586_v40 = vld [vmem:[#allocation2 + $0x132] sm:$0xff] }
 0x2b0   :  { %11372 = vmatprep.mubr.msk.f32.mxu0 %vm354_vm1, %v14107_v41  ;;  %12201 = vmatpush3.bf16.msra.mxu0 %v12198_v61  ;;  %v4598_v41 = vld [vmem:[%s15889_s6 + $0x30] sm:$0xff] }
 0x2b3   :  { %11373 = vmatmul.mubr.msk.f32.gmra.mrb[4].mxu0 %vm354_vm1, %v14117_v7  ;;  %v4599_v7 = vld [vmem:[%s15889_s6 + $0x38] sm:$0xff] }
 0x2b4   :  { %11375 = vmatprep.mubr.msk.f32.mxu0 %vm354_vm1, %v14388_v10  ;;  %v4578_v10 = vld [vmem:[%s15889_s6 + $0x10] sm:$0xff] }
 0x2b7   :  { %11376 = vmatmul.mubr.msk.f32.gmra.mrb[6].mxu0 %vm354_vm1, %v14532_v44 }
 0x2b8   :  { %11378 = vmatprep.mubr.msk.f32.mxu0 %vm354_vm1, %v14135_v20  ;;  %v12206_v20 = vpack.c.bf16 %v4599_v7, %v4598_v41  ;;  %v14678_v7 = vpack.c.bf16 %v5003_v29, %v5002_v11 }
 0x2ba   :  { %12207 = vmatprep.subr.bf16.mxu1 %v12206_v20 }
 0x2bb   :  { %11379 = vmatmul.mubr.msk.f32.gmra.mrb[8].mxu0 %vm354_vm1, %v14140_v49  ;;  %12209 = vmatpush3.bf16.msra.mxu1 %v12206_v20  ;;  %v4576_v49 = vld [vmem:[%s15889_s6] sm:$0xff] }
 0x2bc   :  { %11381 = vmatprep.mubr.msk.f32.mxu0 %vm354_vm1, %v14145_v38  ;;  %v4577_v38 = vld [vmem:[%s15889_s6 + $0x8] sm:$0xff] }
 0x2bf   :  { %11382 = vmatmul.mubr.msk.f32.gmra.mrb[10].mxu0 %vm354_vm1, %v14149_v50  ;;  %v12210_v50 = vpack.c.bf16 %v4577_v38, %v4576_v49 }
 0x2c0   :  { %11384 = vmatprep.mubr.msk.f32.mxu0 %vm354_vm1, %v14153_v55  ;;  %v14605_v55 = vld [vmem:[%s15893_s10 + $0x4] ss:$0 sm:$0xff] }
 0x2c1   :  { %12211 = vmatprep.subr.bf16.mxu1 %v12210_v50 }
 0x2c3   :  { %11385 = vmatmul.mubr.msk.f32.gmra.mrb[12].mxu0 %vm354_vm1, %v14159_v35 }
 0x2c4   :  { %11387 = vmatprep.mubr.msk.f32.mxu0 %vm354_vm1, %v14406_v21  ;;  %v4579_v21 = vld [vmem:[%s15889_s6 + $0x18] sm:$0xff] }
 0x2c5   :  { %v12214_v16 = vpack.c.bf16 %v4579_v21, %v4578_v10 }
 0x2c7   :  { %11388 = vmatmul.mubr.msk.f32.gmra.mrb[14].mxu0 %vm354_vm1, %v14550_v53 }
 0x2c8   :  { %11398 = vmatprep.mubr.msk.f32.mxu0 %vm354_vm1, %v14258_v47 }
 0x2cb   :  { %11399 = vmatmul.mubr.msk.f32.vlgmr.msra.gmra.mrb[0].mxu0 %vm354_vm1, %v14262_v51 }
 0x2cc   :  { %11401 = vmatprep.mubr.msk.f32.mxu0 %vm354_vm1, %v14266_v48 }
 0x2cf   :  { %11402 = vmatmul.mubr.msk.f32.gmra.mrb[2].mxu0 %vm354_vm1, %v14270_v52 }
 0x2d0   :  { %11404 = vmatprep.mubr.msk.f32.mxu0 %vm354_vm1, %v14274_v42 }
 0x2d3   :  { %11405 = vmatmul.mubr.msk.f32.gmra.mrb[4].mxu0 %vm354_vm1, %v14280_v60 }
 0x2d4   :  { %11407 = vmatprep.mubr.msk.f32.mxu0 %vm354_vm1, %v14442_v17 }
 0x2d7   :  { %11408 = vmatmul.mubr.msk.f32.gmra.mrb[6].mxu0 %vm354_vm1, %v14568_v37 }
 0x2d8   :  { %11410 = vmatprep.mubr.msk.f32.mxu0 %vm354_vm1, %v14290_v63 }
 0x2db   :  { %11411 = vmatmul.mubr.msk.f32.gmra.mrb[8].mxu0 %vm354_vm1, %v14294_v28 }
 0x2dc   :  { %11413 = vmatprep.mubr.msk.f32.mxu0 %vm354_vm1, %v14298_v13 }
 0x2df   :  { %11414 = vmatmul.mubr.msk.f32.gmra.mrb[10].mxu0 %vm354_vm1, %v14302_v14 }
 0x2e0   :  { %11416 = vmatprep.mubr.msk.f32.mxu0 %vm354_vm1, %v14306_v5 }
 0x2e3   :  { %11417 = vmatmul.mubr.msk.f32.gmra.mrb[12].mxu0 %vm354_vm1, %v14310_v9 }
 0x2e4   :  { %11419 = vmatprep.mubr.msk.f32.mxu0 %vm354_vm1, %v14460_v57 }
 0x2e7   :  { %11420 = vmatmul.mubr.msk.f32.gmra.mrb[14].mxu0 %vm354_vm1, %v14586_v40 }
 0x39e   :  { %v11400_v35 = vpop.f32.mrb[0].mxu0 }
 0x39f   :  { %v12366_v58 = vadd.f32 %v11400_v35, %v14605_v55  ;;  %v4396_v45 = vpop.f32.mrb[1].mxu0 }
 0x3a0   :  { %v12368_v1 = vadd.f32 %v14605_v55, %v4396_v45 }
 0x3a1   :  { %v12367_v12 = vadd.f32 %v12366_v58, %v14610_v3 }
 0x3a2   :  { %v12369_v0 = vadd.f32 %v12368_v1, %v14610_v3  ;;  %v11403_v34 = vpop.f32.mrb[2].mxu0 }
 0x3a3   :  { %v14616_v47 = vmax.f32 %v12367_v12, 0.0  ;;  %v12370_v51 = vadd.f32 %v11403_v34, %v14605_v55  ;;  %v4406_v48 = vpop.f32.mrb[3].mxu0 }
 0x3a4   :  { %v14619_v52 = vmax.f32 %v12369_v0, 0.0  ;;  %v12372_v42 = vadd.f32 %v14605_v55, %v4406_v48 }
 0x3a5   :  { %4545 = vst.msk [vmem:[#allocation2 + $0x21] sm:$0xff] %vm354_vm1, %v14616_v47  ;;  %v12371_v60 = vadd.f32 %v12370_v51, %v14610_v3 }
 0x3a6   :  { %4544 = vst.msk [vmem:[#allocation2 + $0x11] sm:$0xff] %vm354_vm1, %v14619_v52  ;;  %v12373_v63 = vadd.f32 %v12372_v42, %v14610_v3  ;;  %v11406_v28 = vpop.f32.mrb[4].mxu0 }
 0x3a7   :  { %v14628_v13 = vmax.f32 %v12371_v60, 0.0  ;;  %v12374_v14 = vadd.f32 %v11406_v28, %v14605_v55  ;;  %v4416_v5 = vpop.f32.mrb[5].mxu0 }
 0x3a8   :  { %v14631_v9 = vmax.f32 %v12373_v63, 0.0  ;;  %v12376_v18 = vadd.f32 %v14605_v55, %v4416_v5 }
 0x3a9   :  { %4547 = vst.msk [vmem:[#allocation2 + $0x41] sm:$0xff] %vm354_vm1, %v14628_v13  ;;  %v12375_v56 = vadd.f32 %v12374_v14, %v14610_v3 }
 0x3aa   :  { %4546 = vst.msk [vmem:[#allocation2 + $0x31] sm:$0xff] %vm354_vm1, %v14631_v9  ;;  %v12377_v39 = vadd.f32 %v12376_v18, %v14610_v3  ;;  %v11409_v46 = vpop.f32.mrb[6].mxu0 }
 0x3ab   :  { %v14646_v24 = vmax.f32 %v12375_v56, 0.0  ;;  %v12378_v25 = vadd.f32 %v11409_v46, %v14605_v55  ;;  %v4426_v31 = vpop.f32.mrb[7].mxu0 }
 0x3ac   :  { %v14649_v54 = vmax.f32 %v12377_v39, 0.0  ;;  %v12380_v30 = vadd.f32 %v14605_v55, %v4426_v31  ;;  %v14668_v32 = vld [vmem:[#allocation2 + $0x21] sm:$0xff] }
 0x3ad   :  { %16026 = vst [vmem:[#allocation6_spill] sm:$0xff] %v14646_v24  ;;  %4549 = vst.msk [vmem:[#allocation2 + $0x61] sm:$0xff] %vm354_vm1, %v14646_v24  ;;  %v12379_v17 = vadd.f32 %v12378_v25, %v14610_v3  ;;  %v14655_v57 = vld [vmem:[#allocation2 + $0x11] sm:$0xff]  ;;  %v6376_v24 = vld [vmem:[%s15889_s6 + $0x100] sm:$0xff] }
 0x3ae   :  { %16027 = vst [vmem:[#allocation7_spill] sm:$0xff] %v14649_v54  ;;  %4548 = vst.msk [vmem:[#allocation2 + $0x51] sm:$0xff] %vm354_vm1, %v14649_v54  ;;  %v12381_v22 = vadd.f32 %v12380_v30, %v14610_v3  ;;  %v11412_v23 = vpop.f32.mrb[8].mxu0  ;;  %11431 = vmatmul.mubr.msk.f32.vlgmr.msra.gmra.mrb[16].mxu1 %vm354_vm1, %v14655_v57  ;;  %v6377_v54 = vld [vmem:[%s15889_s6 + $0x108] sm:$0xff] }
 0x3af   :  { %v14670_v6 = vmax.f32 %v12379_v17, 0.0  ;;  %v12382_v27 = vadd.f32 %v11412_v23, %v14605_v55  ;;  %v4436_v36 = vpop.f32.mrb[9].mxu0  ;;  %11433 = vmatprep.mubr.msk.f32.mxu1 %vm354_vm1, %v14668_v32  ;;  %12213 = vmatpush3.bf16.msra.mxu1 %v12210_v50 }
 0x3b0   :  { %v14675_v61 = vmax.f32 %v12381_v22, 0.0  ;;  %v12384_v41 = vadd.f32 %v14605_v55, %v4436_v36  ;;  %12215 = vmatprep.subr.bf16.mxu1 %v12214_v16  ;;  %v14690_v35 = vld [vmem:[#allocation2 + $0x41] sm:$0xff] }
 0x3b1   :  { %16028 = vst [vmem:[#allocation8_spill] sm:$0xff] %v14670_v6  ;;  %4551 = vst.msk [vmem:[#allocation2 + $0x81] sm:$0xff] %vm354_vm1, %v14670_v6  ;;  %v12383_v20 = vadd.f32 %v12382_v27, %v14610_v3  ;;  %v14683_v49 = vld [vmem:[#allocation2 + $0x31] sm:$0xff] }
 0x3b2   :  { %16029 = vst [vmem:[#allocation9_spill] sm:$0xff] %v14675_v61  ;;  %4550 = vst.msk [vmem:[#allocation2 + $0x71] sm:$0xff] %vm354_vm1, %v14675_v61  ;;  %v12385_v38 = vadd.f32 %v12384_v41, %v14610_v3  ;;  %v11415_v50 = vpop.f32.mrb[10].mxu0  ;;  %11434 = vmatmul.mubr.msk.f32.gmra.mrb[18].mxu1 %vm354_vm1, %v14683_v49 }
 0x3b3   :  { %v14692_v58 = vmax.f32 %v12383_v20, 0.0  ;;  %v12386_v45 = vadd.f32 %v11415_v50, %v14605_v55  ;;  %v4446_v1 = vpop.f32.mrb[11].mxu0  ;;  %11436 = vmatprep.mubr.msk.f32.mxu1 %vm354_vm1, %v14690_v35  ;;  %12217 = vmatpush3.bf16.msra.mxu1 %v12214_v16  ;;  %v5004_v20 = vld [vmem:[%s15889_s6 + $0x50] sm:$0xff] }
 0x3b4   :  { %v14697_v12 = vmax.f32 %v12385_v38, 0.0  ;;  %v12388_v0 = vadd.f32 %v14605_v55, %v4446_v1  ;;  %12219 = vmatprep.subr.bf16.mxu1 %v14678_v7  ;;  %v14711_v60 = vld [vmem:[#allocation2 + $0x61] sm:$0xff]  ;;  %v5005_v38 = vld [vmem:[%s15889_s6 + $0x58] sm:$0xff] }
 0x3b5   :  { %16030 = vst [vmem:[#allocation10_spill] sm:$0xff] %v14692_v58  ;;  %4553 = vst.msk [vmem:[#allocation2 + $0xc1] sm:$0xff] %vm354_vm1, %v14692_v58  ;;  %v12387_v34 = vadd.f32 %v12386_v45, %v14610_v3  ;;  %v14704_v51 = vld [vmem:[#allocation2 + $0x51] sm:$0xff]  ;;  %v12222_v50 = vpack.c.bf16 %v5005_v38, %v5004_v20  ;;  %v5231_v1 = vld [vmem:[%s15889_s6 + $0x60] sm:$0xff] }
 0x3b6   :  { %16031 = vst [vmem:[#allocation11_spill] sm:$0xff] %v14697_v12  ;;  %4552 = vst.msk [vmem:[#allocation2 + $0xb1] sm:$0xff] %vm354_vm1, %v14697_v12  ;;  %v12389_v48 = vadd.f32 %v12388_v0, %v14610_v3  ;;  %v11418_v42 = vpop.f32.mrb[12].mxu0  ;;  %11437 = vmatmul.mubr.msk.f32.gmra.mrb[20].mxu1 %vm354_vm1, %v14704_v51  ;;  %v14789_v45 = vld [vmem:[#allocation2 + $0x10] sm:$0xff]  ;;  %v5232_v0 = vld [vmem:[%s15889_s6 + $0x68] sm:$0xff] }
 0x3b7   :  { %v14713_v63 = vmax.f32 %v12387_v34, 0.0  ;;  %v12390_v28 = vadd.f32 %v11418_v42, %v14605_v55  ;;  %v4456_v14 = vpop.f32.mrb[13].mxu0  ;;  %11439 = vmatprep.mubr.msk.f32.mxu1 %vm354_vm1, %v14711_v60  ;;  %v14799_v34 = vld [vmem:[#allocation2 + $0x20] sm:$0xff]  ;;  %v14862_v20 = vld [vmem:[#allocation2 + $0x12] sm:$0xff] }
 0x3b8   :  { %v14718_v5 = vmax.f32 %v12389_v48, 0.0  ;;  %v12392_v18 = vadd.f32 %v14605_v55, %v4456_v14  ;;  %v14804_v48 = vld [vmem:[#allocation2 + $0x30] sm:$0xff]  ;;  %v14808_v42 = vld [vmem:[#allocation2 + $0x40] sm:$0xff]  ;;  %v6681_v12 = vld [vmem:[%s15890_s7 + $0x38] sm:$0xff] }
 0x3b9   :  { %16032 = vst [vmem:[#allocation12_spill] sm:$0xff] %v14713_v63  ;;  %4555 = vst.msk [vmem:[#allocation2 + $0xe1] sm:$0xff] %vm354_vm1, %v14713_v63  ;;  %v12391_v56 = vadd.f32 %v12390_v28, %v14610_v3  ;;  %v14724_v10 = vld [vmem:[#allocation2 + $0x71] sm:$0xff]  ;;  %v5460_v38 = vld [vmem:[%s15889_s6 + $0x80] sm:$0xff] }
 0x3ba   :  { %16033 = vst [vmem:[#allocation13_spill] sm:$0xff] %v14718_v5  ;;  %4554 = vst.msk [vmem:[#allocation2 + $0xd1] sm:$0xff] %vm354_vm1, %v14718_v5  ;;  %v12393_v21 = vadd.f32 %v12392_v18, %v14610_v3  ;;  %v11421_v39 = vpop.f32.mrb[14].mxu0  ;;  %11440 = vmatmul.mubr.msk.f32.gmra.mrb[22].mxu1 %vm354_vm1, %v14724_v10  ;;  %v14812_v28 = vld [vmem:[#allocation2 + $0x50] sm:$0xff]  ;;  %v5689_v63 = vld [vmem:[%s15889_s6 + $0xa0] sm:$0xff] }
 0x3bb   :  { %v14731_v46 = vmax.f32 %v12391_v56, 0.0  ;;  %v12394_v25 = vadd.f32 %v11421_v39, %v14605_v55  ;;  %v4466_v31 = vpop.f32.mrb[15].mxu0  ;;  %11442 = vmatprep.mubr.msk.f32.mxu1 %vm354_vm1, %v14113_v62  ;;  %v14820_v14 = vld [vmem:[#allocation2 + $0x70] sm:$0xff]  ;;  %v5690_v5 = vld [vmem:[%s15889_s6 + $0xa8] sm:$0xff] }
 0x3bc   :  { %v14736_v30 = vmax.f32 %v12393_v21, 0.0  ;;  %v12396_v16 = vadd.f32 %v14605_v55, %v4466_v31  ;;  %v14749_v62 = vld [vmem:[#allocation2 + $0xc1] sm:$0xff]  ;;  %v12242_v58 = vpack.c.bf16 %v5690_v5, %v5689_v63  ;;  %v5691_v5 = vld [vmem:[%s15889_s6 + $0xb0] sm:$0xff] }
 0x3bd   :  { %16034 = vst [vmem:[#allocation14_spill] sm:$0xff] %v14731_v46  ;;  %4557 = vst.msk [vmem:[#allocation2 + $0x101] sm:$0xff] %vm354_vm1, %v14731_v46  ;;  %v12395_v17 = vadd.f32 %v12394_v25, %v14610_v3  ;;  %v14742_v11 = vld [vmem:[#allocation2 + $0xb1] sm:$0xff]  ;;  %v14830_v56 = vld [vmem:[#allocation2 + $0xc0] sm:$0xff] }
 0x3be   :  { %16035 = vst [vmem:[#allocation35_spill] sm:$0xff] %v14736_v30  ;;  %4556 = vst.msk [vmem:[#allocation2 + $0xf1] sm:$0xff] %vm354_vm1, %v14736_v30  ;;  %v12397_v29 = vadd.f32 %v12396_v16, %v14610_v3  ;;  %11443 = vmatmul.mubr.msk.f32.gmra.mrb[24].mxu1 %vm354_vm1, %v14742_v11  ;;  %v14826_v18 = vld [vmem:[#allocation2 + $0xb0] sm:$0xff]  ;;  %v5463_v46 = vld [vmem:[%s15889_s6 + $0x98] sm:$0xff] }
 0x3bf   :  { %v14751_v22 = vmax.f32 %v12395_v17, 0.0  ;;  %11445 = vmatprep.mubr.msk.f32.mxu1 %vm354_vm1, %v14749_v62  ;;  %v5233_v16 = vld [vmem:[%s15889_s6 + $0x70] sm:$0xff]  ;;  %v5234_v17 = vld [vmem:[%s15889_s6 + $0x78] sm:$0xff] }
 0x3c0   :  { %v14755_v55 = vmax.f32 %v12397_v29, 0.0  ;;  %v14765_v3 = vld [vmem:[#allocation2 + $0xe1] sm:$0xff]  ;;  %v12230_v29 = vpack.c.bf16 %v5234_v17, %v5233_v16  ;;  %v14884_v17 = vld [vmem:[#allocation2 + $0x52] sm:$0xff] }
 0x3c1   :  { %16036 = vst [vmem:[#allocation15_spill] sm:$0xff] %v14751_v22  ;;  %4559 = vst.msk [vmem:[#allocation2 + $0x121] sm:$0xff] %vm354_vm1, %v14751_v22  ;;  %v14759_v23 = vld [vmem:[#allocation2 + $0xd1] sm:$0xff]  ;;  %v14838_v39 = vld [vmem:[#allocation2 + $0xe0] sm:$0xff] }
 0x3c2   :  { %16037 = vst [vmem:[#allocation16_spill] sm:$0xff] %v14755_v55  ;;  %4558 = vst.msk [vmem:[#allocation2 + $0x111] sm:$0xff] %vm354_vm1, %v14755_v55  ;;  %11446 = vmatmul.mubr.msk.f32.gmra.mrb[26].mxu1 %vm354_vm1, %v14759_v23  ;;  %v14834_v21 = vld [vmem:[#allocation2 + $0xd0] sm:$0xff]  ;;  %v14880_v16 = vld [vmem:[#allocation2 + $0x42] sm:$0xff] }
 0x3c3   :  { %11448 = vmatprep.mubr.msk.f32.mxu1 %vm354_vm1, %v14765_v3  ;;  %v14906_v15 = vld [vmem:[#allocation2 + $0xd2] sm:$0xff]  ;;  %v14910_v43 = vld [vmem:[#allocation2 + $0xe2] sm:$0xff] }
 0x3c4   :  { %v14773_v36 = vld [vmem:[#allocation2 + $0x101] sm:$0xff]  ;;  %v5462_v55 = vld [vmem:[%s15889_s6 + $0x90] sm:$0xff] }
 0x3c5   :  { %v14769_v27 = vld [vmem:[#allocation2 + $0xf1] sm:$0xff]  ;;  %v14846_v25 = vld [vmem:[#allocation2 + $0x100] sm:$0xff]  ;;  %v12238_v30 = vpack.c.bf16 %v5463_v46, %v5462_v55 }
 0x3c6   :  { %11449 = vmatmul.mubr.msk.f32.gmra.mrb[28].mxu1 %vm354_vm1, %v14769_v27  ;;  %v14918_v19 = vld [vmem:[#allocation2 + $0x102] sm:$0xff] }
 0x3c7   :  { %11451 = vmatprep.mubr.msk.f32.mxu1 %vm354_vm1, %v14773_v36  ;;  %v14952_v46 = vld [vmem:[#allocation2 + $0x80] sm:$0xff] }
 0x3c8   :  { %v14970_v63 = vld [vmem:[#allocation2 + $0x120] sm:$0xff] }
 0x3c9   :  { %v14777_v41 = vld [vmem:[#allocation2 + $0x111] sm:$0xff] }
 0x3ca   :  { %11452 = vmatmul.mubr.msk.f32.gmra.mrb[30].mxu1 %vm354_vm1, %v14777_v41  ;;  %v14850_v31 = vld [vmem:[#allocation2 + $0x110] sm:$0xff] }
 0x3cb   :  { %11462 = vmatprep.mubr.msk.f32.mxu1 %vm354_vm1, %v14157_v4  ;;  %v12226_v4 = vpack.c.bf16 %v5232_v0, %v5231_v1  ;;  %v14872_v1 = vld [vmem:[#allocation2 + $0x22] sm:$0xff]  ;;  %v14876_v0 = vld [vmem:[#allocation2 + $0x32] sm:$0xff] }
 0x3cc   :  { %v14922_v22 = vld [vmem:[#allocation2 + $0x112] sm:$0xff] }
 0x3ce   :  { %11463 = vmatmul.mubr.msk.f32.vlgmr.msra.gmra.mrb[16].mxu1 %vm354_vm1, %v14789_v45 }
 0x3cf   :  { %11465 = vmatprep.mubr.msk.f32.mxu1 %vm354_vm1, %v14799_v34  ;;  %12221 = vmatpush3.bf16.msra.mxu1 %v14678_v7  ;;  %v14816_v7 = vld [vmem:[#allocation2 + $0x60] sm:$0xff] }
 0x3d0   :  { %12223 = vmatprep.subr.bf16.mxu1 %v12222_v50 }
 0x3d2   :  { %11466 = vmatmul.mubr.msk.f32.gmra.mrb[18].mxu1 %vm354_vm1, %v14804_v48 }
 0x3d3   :  { %11468 = vmatprep.mubr.msk.f32.mxu1 %vm354_vm1, %v14808_v42  ;;  %12225 = vmatpush3.bf16.msra.mxu1 %v12222_v50  ;;  %v5461_v50 = vld [vmem:[%s15889_s6 + $0x88] sm:$0xff] }
 0x3d4   :  { %12227 = vmatprep.subr.bf16.mxu1 %v12226_v4 }
 0x3d6   :  { %11469 = vmatmul.mubr.msk.f32.gmra.mrb[20].mxu1 %vm354_vm1, %v14812_v28 }
 0x3d7   :  { %11471 = vmatprep.mubr.msk.f32.mxu1 %vm354_vm1, %v14816_v7 }
 0x3da   :  { %11472 = vmatmul.mubr.msk.f32.gmra.mrb[22].mxu1 %vm354_vm1, %v14820_v14 }
 0x3db   :  { %11474 = vmatprep.mubr.msk.f32.mxu1 %vm354_vm1, %v14202_v2  ;;  %v14842_v2 = vld [vmem:[#allocation2 + $0xf0] sm:$0xff] }
 0x3de   :  { %11475 = vmatmul.mubr.msk.f32.gmra.mrb[24].mxu1 %vm354_vm1, %v14826_v18 }
 0x3df   :  { %11477 = vmatprep.mubr.msk.f32.mxu1 %vm354_vm1, %v14830_v56 }
 0x3e2   :  { %11478 = vmatmul.mubr.msk.f32.gmra.mrb[26].mxu1 %vm354_vm1, %v14834_v21 }
 0x3e3   :  { %11480 = vmatprep.mubr.msk.f32.mxu1 %vm354_vm1, %v14838_v39 }
 0x3e6   :  { %11481 = vmatmul.mubr.msk.f32.gmra.mrb[28].mxu1 %vm354_vm1, %v14842_v2 }
 0x3e7   :  { %11483 = vmatprep.mubr.msk.f32.mxu1 %vm354_vm1, %v14846_v25 }
 0x3ea   :  { %11484 = vmatmul.mubr.msk.f32.gmra.mrb[30].mxu1 %vm354_vm1, %v14850_v31 }
 0x3eb   :  { %11494 = vmatprep.mubr.msk.f32.mxu1 %vm354_vm1, %v14234_v33  ;;  %v12234_v33 = vpack.c.bf16 %v5461_v50, %v5460_v38  ;;  %v14892_v38 = vld [vmem:[#allocation2 + $0x72] sm:$0xff]  ;;  %v14902_v50 = vld [vmem:[#allocation2 + $0xc2] sm:$0xff] }
 0x3ee   :  { %11495 = vmatmul.mubr.msk.f32.vlgmr.msra.gmra.mrb[16].mxu1 %vm354_vm1, %v14862_v20 }
 0x3ef   :  { %11497 = vmatprep.mubr.msk.f32.mxu1 %vm354_vm1, %v14872_v1  ;;  %12229 = vmatpush3.bf16.msra.mxu1 %v12226_v4  ;;  %v14888_v4 = vld [vmem:[#allocation2 + $0x62] sm:$0xff] }
 0x3f0   :  { %12231 = vmatprep.subr.bf16.mxu1 %v12230_v29 }
 0x3f2   :  { %11498 = vmatmul.mubr.msk.f32.gmra.mrb[18].mxu1 %vm354_vm1, %v14876_v0 }
 0x3f3   :  { %11500 = vmatprep.mubr.msk.f32.mxu1 %vm354_vm1, %v14880_v16  ;;  %12233 = vmatpush3.bf16.msra.mxu1 %v12230_v29  ;;  %v14898_v29 = vld [vmem:[#allocation2 + $0xb2] sm:$0xff] }
 0x3f4   :  { %12235 = vmatprep.subr.bf16.mxu1 %v12234_v33 }
 0x3f6   :  { %11501 = vmatmul.mubr.msk.f32.gmra.mrb[20].mxu1 %vm354_vm1, %v14884_v17 }
 0x3f7   :  { %11503 = vmatprep.mubr.msk.f32.mxu1 %vm354_vm1, %v14888_v4 }
 0x3fa   :  { %11504 = vmatmul.mubr.msk.f32.gmra.mrb[22].mxu1 %vm354_vm1, %v14892_v38 }
 0x3fb   :  { %11506 = vmatprep.mubr.msk.f32.mxu1 %vm354_vm1, %v14278_v8  ;;  %v14914_v8 = vld [vmem:[#allocation2 + $0xf2] sm:$0xff] }
 0x3fe   :  { %11507 = vmatmul.mubr.msk.f32.gmra.mrb[24].mxu1 %vm354_vm1, %v14898_v29 }
 0x3ff   :  { %11509 = vmatprep.mubr.msk.f32.mxu1 %vm354_vm1, %v14902_v50 }
 0x402   :  { %11510 = vmatmul.mubr.msk.f32.gmra.mrb[26].mxu1 %vm354_vm1, %v14906_v15 }
 0x403   :  { %11512 = vmatprep.mubr.msk.f32.mxu1 %vm354_vm1, %v14910_v43 }
 0x406   :  { %11513 = vmatmul.mubr.msk.f32.gmra.mrb[28].mxu1 %vm354_vm1, %v14914_v8 }
 0x407   :  { %11515 = vmatprep.mubr.msk.f32.mxu1 %vm354_vm1, %v14918_v19 }
 0x40a   :  { %11516 = vmatmul.mubr.msk.f32.gmra.mrb[30].mxu1 %vm354_vm1, %v14922_v22 }
 0x40b   :  { %11526 = vmatprep.mubr.msk.f32.mxu1 %vm354_vm1, %v14789_v45  ;;  %v5918_v45 = vld [vmem:[%s15889_s6 + $0xc0] sm:$0xff] }
 0x40e   :  { %11527 = vmatmul.mubr.msk.f32.vlgmr.msra.gmra.mrb[16].mxu1 %vm354_vm1, %v14799_v34 }
 0x40f   :  { %11529 = vmatprep.mubr.msk.f32.mxu1 %vm354_vm1, %v14804_v48  ;;  %12237 = vmatpush3.bf16.msra.mxu1 %v12234_v33 }
 0x410   :  { %12239 = vmatprep.subr.bf16.mxu1 %v12238_v30 }
 0x412   :  { %11530 = vmatmul.mubr.msk.f32.gmra.mrb[18].mxu1 %vm354_vm1, %v14808_v42 }
 0x413   :  { %11532 = vmatprep.mubr.msk.f32.mxu1 %vm354_vm1, %v14812_v28  ;;  %12241 = vmatpush3.bf16.msra.mxu1 %v12238_v30  ;;  %v5692_v30 = vld [vmem:[%s15889_s6 + $0xb8] sm:$0xff] }
 0x414   :  { %12243 = vmatprep.subr.bf16.mxu1 %v12242_v58  ;;  %v12246_v55 = vpack.c.bf16 %v5692_v30, %v5691_v5  ;;  %v5921_v5 = vld [vmem:[%s15889_s6 + $0xd8] sm:$0xff] }
 0x416   :  { %11533 = vmatmul.mubr.msk.f32.gmra.mrb[20].mxu1 %vm354_vm1, %v14816_v7 }
 0x417   :  { %11535 = vmatprep.mubr.msk.f32.mxu1 %vm354_vm1, %v14820_v14 }
 0x41a   :  { %11536 = vmatmul.mubr.msk.f32.gmra.mrb[22].mxu1 %vm354_vm1, %v14952_v46 }
 0x41b   :  { %11538 = vmatprep.mubr.msk.f32.mxu1 %vm354_vm1, %v14826_v18  ;;  %v5919_v18 = vld [vmem:[%s15889_s6 + $0xc8] sm:$0xff] }
 0x41c   :  { %v12250_v33 = vpack.c.bf16 %v5919_v18, %v5918_v45  ;;  %v6148_v45 = vld [vmem:[%s15889_s6 + $0xe8] sm:$0xff] }
 0x41e   :  { %11539 = vmatmul.mubr.msk.f32.gmra.mrb[24].mxu1 %vm354_vm1, %v14830_v56 }
 0x41f   :  { %11541 = vmatprep.mubr.msk.f32.mxu1 %vm354_vm1, %v14834_v21 }
 0x422   :  { %11542 = vmatmul.mubr.msk.f32.gmra.mrb[26].mxu1 %vm354_vm1, %v14838_v39 }
 0x423   :  { %11544 = vmatprep.mubr.msk.f32.mxu1 %vm354_vm1, %v14842_v2 }
 0x426   :  { %11545 = vmatmul.mubr.msk.f32.gmra.mrb[28].mxu1 %vm354_vm1, %v14846_v25 }
 0x427   :  { %11547 = vmatprep.mubr.msk.f32.mxu1 %vm354_vm1, %v14850_v31 }
 0x42a   :  { %11548 = vmatmul.mubr.msk.f32.gmra.mrb[30].mxu1 %vm354_vm1, %v14970_v63 }
 0x42b   :  { %11558 = vmatprep.mubr.msk.f32.mxu1 %vm354_vm1, %v14655_v57  ;;  %v15000_v57 = vld [vmem:[#allocation2 + $0x81] sm:$0xff] }
 0x42e   :  { %11559 = vmatmul.mubr.msk.f32.vlgmr.msra.gmra.mrb[16].mxu1 %vm354_vm1, %v14668_v32 }
 0x42f   :  { %11561 = vmatprep.mubr.msk.f32.mxu1 %vm354_vm1, %v14683_v49  ;;  %12245 = vmatpush3.bf16.msra.mxu1 %v12242_v58  ;;  %v15018_v58 = vld [vmem:[#allocation2 + $0x121] sm:$0xff] }
 0x430   :  { %12247 = vmatprep.subr.bf16.mxu1 %v12246_v55 }
 0x432   :  { %11562 = vmatmul.mubr.msk.f32.gmra.mrb[18].mxu1 %vm354_vm1, %v14690_v35 }
 0x433   :  { %11564 = vmatprep.mubr.msk.f32.mxu1 %vm354_vm1, %v14704_v51  ;;  %12249 = vmatpush3.bf16.msra.mxu1 %v12246_v55  ;;  %v6147_v55 = vld [vmem:[%s15889_s6 + $0xe0] sm:$0xff] }
 0x434   :  { %12251 = vmatprep.subr.bf16.mxu1 %v12250_v33  ;;  %v12258_v18 = vpack.c.bf16 %v6148_v45, %v6147_v55  ;;  %v6680_v55 = vld [vmem:[%s15890_s7 + $0x30] sm:$0xff] }
 0x435   :  { %v12278_v61 = vpack.c.bf16 %v6681_v12, %v6680_v55  ;;  %v16045_v12 = vld [vmem:[#allocation12_spill] sm:$0xff] }
 0x436   :  { %11565 = vmatmul.mubr.msk.f32.gmra.mrb[20].mxu1 %vm354_vm1, %v14711_v60 }
 0x437   :  { %11567 = vmatprep.mubr.msk.f32.mxu1 %vm354_vm1, %v14724_v10 }
 0x43a   :  { %11568 = vmatmul.mubr.msk.f32.gmra.mrb[22].mxu1 %vm354_vm1, %v15000_v57 }
 0x43b   :  { %11570 = vmatprep.mubr.msk.f32.mxu1 %vm354_vm1, %v14742_v11  ;;  %v5920_v11 = vld [vmem:[%s15889_s6 + $0xd0] sm:$0xff] }
 0x43c   :  { %v12254_v30 = vpack.c.bf16 %v5921_v5, %v5920_v11  ;;  %v6150_v11 = vld [vmem:[%s15889_s6 + $0xf8] sm:$0xff]  ;;  %v6678_v5 = vld [vmem:[%s15890_s7 + $0x20] sm:$0xff] }
 0x43e   :  { %11571 = vmatmul.mubr.msk.f32.gmra.mrb[24].mxu1 %vm354_vm1, %v14749_v62 }
 0x43f   :  { %11573 = vmatprep.mubr.msk.f32.mxu1 %vm354_vm1, %v14759_v23 }
 0x442   :  { %11574 = vmatmul.mubr.msk.f32.gmra.mrb[26].mxu1 %vm354_vm1, %v14765_v3 }
 0x443   :  { %11576 = vmatprep.mubr.msk.f32.mxu1 %vm354_vm1, %v14769_v27 }
 0x446   :  { %11577 = vmatmul.mubr.msk.f32.gmra.mrb[28].mxu1 %vm354_vm1, %v14773_v36 }
 0x447   :  { %11579 = vmatprep.mubr.msk.f32.mxu1 %vm354_vm1, %v14777_v41 }
 0x44a   :  { %11580 = vmatmul.mubr.msk.f32.gmra.mrb[30].mxu1 %vm354_vm1, %v15018_v58 }
 0x44b   :  { %11590 = vmatprep.mubr.msk.f32.mxu1 %vm354_vm1, %v14862_v20  ;;  %v15048_v20 = vld [vmem:[#allocation2 + $0x82] sm:$0xff] }
 0x44e   :  { %11591 = vmatmul.mubr.msk.f32.vlgmr.msra.gmra.mrb[16].mxu1 %vm354_vm1, %v14872_v1 }
 0x44f   :  { %11593 = vmatprep.mubr.msk.f32.mxu1 %vm354_vm1, %v14876_v0  ;;  %12253 = vmatpush3.bf16.msra.mxu1 %v12250_v33  ;;  %v15066_v33 = vld [vmem:[#allocation2 + $0x122] sm:$0xff] }
 0x450   :  { %12255 = vmatprep.subr.bf16.mxu1 %v12254_v30 }
 0x452   :  { %11594 = vmatmul.mubr.msk.f32.gmra.mrb[18].mxu1 %vm354_vm1, %v14880_v16 }
 0x453   :  { %11596 = vmatprep.mubr.msk.f32.mxu1 %vm354_vm1, %v14884_v17  ;;  %12257 = vmatpush3.bf16.msra.mxu1 %v12254_v30  ;;  %v6679_v30 = vld [vmem:[%s15890_s7 + $0x28] sm:$0xff] }
 0x454   :  { %12259 = vmatprep.subr.bf16.mxu1 %v12258_v18  ;;  %v12274_v45 = vpack.c.bf16 %v6679_v30, %v6678_v5 }
 0x456   :  { %11597 = vmatmul.mubr.msk.f32.gmra.mrb[20].mxu1 %vm354_vm1, %v14888_v4  ;;  %12275 = vmatprep.subr.bf16.mxu0 %v12274_v45 }
 0x457   :  { %11599 = vmatprep.mubr.msk.f32.mxu1 %vm354_vm1, %v14892_v38  ;;  %12277 = vmatpush3.bf16.msra.mxu0 %v12274_v45 }
 0x458   :  { %12279 = vmatprep.subr.bf16.mxu0 %v12278_v61 }
 0x45a   :  { %11600 = vmatmul.mubr.msk.f32.gmra.mrb[22].mxu1 %vm354_vm1, %v15048_v20 }
 0x45b   :  { %11602 = vmatprep.mubr.msk.f32.mxu1 %vm354_vm1, %v14898_v29  ;;  %v6149_v29 = vld [vmem:[%s15889_s6 + $0xf0] sm:$0xff]  ;;  %12281 = vmatpush3.bf16.msra.mxu0 %v12278_v61  ;;  %v8729_v61 = vld [vmem:[%s15892_s9 + $0x28] sm:$0xff] }
 0x45c   :  { %v12262_v6 = vpack.c.bf16 %v6150_v11, %v6149_v29 }
 0x45e   :  { %11603 = vmatmul.mubr.msk.f32.gmra.mrb[24].mxu1 %vm354_vm1, %v14902_v50 }
 0x45f   :  { %11605 = vmatprep.mubr.msk.f32.mxu1 %vm354_vm1, %v14906_v15 }
 0x462   :  { %11606 = vmatmul.mubr.msk.f32.gmra.mrb[26].mxu1 %vm354_vm1, %v14910_v43 }
 0x463   :  { %11608 = vmatprep.mubr.msk.f32.mxu1 %vm354_vm1, %v14914_v8 }
 0x466   :  { %11609 = vmatmul.mubr.msk.f32.gmra.mrb[28].mxu1 %vm354_vm1, %v14918_v19 }
 0x467   :  { %11611 = vmatprep.mubr.msk.f32.mxu1 %vm354_vm1, %v14922_v22 }
 0x46a   :  { %11612 = vmatmul.mubr.msk.f32.gmra.mrb[30].mxu1 %vm354_vm1, %v15066_v33 }
 0x46b   :  { %11622 = vmatprep.mubr.msk.f32.mxu1 %vm354_vm1, %v14799_v34  ;;  %v12266_v34 = vpack.c.bf16 %v6377_v54, %v6376_v24  ;;  %v6379_v24 = vld [vmem:[%s15889_s6 + $0x118] sm:$0xff] }
 0x46e   :  { %11623 = vmatmul.mubr.msk.f32.vlgmr.msra.gmra.mrb[16].mxu1 %vm354_vm1, %v14804_v48 }
 0x46f   :  { %11625 = vmatprep.mubr.msk.f32.mxu1 %vm354_vm1, %v14808_v42  ;;  %12261 = vmatpush3.bf16.msra.mxu1 %v12258_v18 }
 0x470   :  { %12263 = vmatprep.subr.bf16.mxu1 %v12262_v6 }
 0x472   :  { %11626 = vmatmul.mubr.msk.f32.gmra.mrb[18].mxu1 %vm354_vm1, %v14812_v28 }
 0x473   :  { %11628 = vmatprep.mubr.msk.f32.mxu1 %vm354_vm1, %v14816_v7  ;;  %12265 = vmatpush3.bf16.msra.mxu1 %v12262_v6  ;;  %v8728_v6 = vld [vmem:[%s15892_s9 + $0x20] sm:$0xff] }
 0x474   :  { %12267 = vmatprep.subr.bf16.mxu1 %v12266_v34 }
 0x476   :  { %11629 = vmatmul.mubr.msk.f32.gmra.mrb[20].mxu1 %vm354_vm1, %v14820_v14 }
 0x477   :  { %11631 = vmatprep.mubr.msk.f32.mxu1 %vm354_vm1, %v14952_v46 }
 0x47a   :  { %11632 = vmatmul.mubr.msk.f32.gmra.mrb[22].mxu1 %vm354_vm1, %v14490_v59  ;;  %v6378_v59 = vld [vmem:[%s15889_s6 + $0x110] sm:$0xff] }
 0x47b   :  { %11634 = vmatprep.mubr.msk.f32.mxu1 %vm354_vm1, %v14830_v56  ;;  %v12270_v54 = vpack.c.bf16 %v6379_v24, %v6378_v59 }
 0x47e   :  { %11635 = vmatmul.mubr.msk.f32.gmra.mrb[24].mxu1 %vm354_vm1, %v14834_v21 }
 0x47f   :  { %11637 = vmatprep.mubr.msk.f32.mxu1 %vm354_vm1, %v14838_v39 }
 0x482   :  { %11638 = vmatmul.mubr.msk.f32.gmra.mrb[26].mxu1 %vm354_vm1, %v14842_v2 }
 0x483   :  { %11640 = vmatprep.mubr.msk.f32.mxu1 %vm354_vm1, %v14846_v25 }
 0x486   :  { %11641 = vmatmul.mubr.msk.f32.gmra.mrb[28].mxu1 %vm354_vm1, %v14850_v31 }
 0x487   :  { %11643 = vmatprep.mubr.msk.f32.mxu1 %vm354_vm1, %v14970_v63 }
 0x48a   :  { %11644 = vmatmul.mubr.msk.f32.gmra.mrb[30].mxu1 %vm354_vm1, %v14508_v26  ;;  %v12346_v26 = vpack.c.bf16 %v8729_v61, %v8728_v6 }
 0x48b   :  { %11654 = vmatprep.mubr.msk.f32.mxu1 %vm354_vm1, %v14668_v32  ;;  %v8731_v32 = vld [vmem:[%s15892_s9 + $0x38] sm:$0xff] }
 0x48e   :  { %11655 = vmatmul.mubr.msk.f32.vlgmr.msra.gmra.mrb[16].mxu1 %vm354_vm1, %v14683_v49 }
 0x48f   :  { %11657 = vmatprep.mubr.msk.f32.mxu1 %vm354_vm1, %v14690_v35  ;;  %12269 = vmatpush3.bf16.msra.mxu1 %v12266_v34  ;;  %v16044_v35 = vld [vmem:[#allocation13_spill] sm:$0xff] }
 0x490   :  { %12271 = vmatprep.subr.bf16.mxu1 %v12270_v54 }
 0x492   :  { %11658 = vmatmul.mubr.msk.f32.gmra.mrb[18].mxu1 %vm354_vm1, %v14704_v51  ;;  %v16046_v51 = vld [vmem:[#allocation35_spill] sm:$0xff] }
 0x493   :  { %11660 = vmatprep.mubr.msk.f32.mxu1 %vm354_vm1, %v14711_v60  ;;  %12273 = vmatpush3.bf16.msra.mxu1 %v12270_v54  ;;  %v16047_v60 = vld [vmem:[#allocation14_spill] sm:$0xff] }
 0x494   :  { %12347 = vmatprep.subr.bf16.mxu1 %v12346_v26 }
 0x496   :  { %11661 = vmatmul.mubr.msk.f32.gmra.mrb[20].mxu1 %vm354_vm1, %v14724_v10  ;;  %v16048_v10 = vld [vmem:[#allocation16_spill] sm:$0xff] }
 0x497   :  { %11663 = vmatprep.mubr.msk.f32.mxu1 %vm354_vm1, %v15000_v57 }
 0x49a   :  { %11664 = vmatmul.mubr.msk.f32.gmra.mrb[22].mxu1 %vm354_vm1, %v14532_v44  ;;  %v8730_v44 = vld [vmem:[%s15892_s9 + $0x30] sm:$0xff] }
 0x49b   :  { %11666 = vmatprep.mubr.msk.f32.mxu1 %vm354_vm1, %v14749_v62  ;;  %v12350_v49 = vpack.c.bf16 %v8731_v32, %v8730_v44  ;;  %v16049_v62 = vld [vmem:[#allocation15_spill] sm:$0xff] }
 0x49e   :  { %11667 = vmatmul.mubr.msk.f32.gmra.mrb[24].mxu1 %vm354_vm1, %v14759_v23  ;;  %v6658_v23 = vld [vmem:[%s15890_s7] sm:$0xff] }
 0x49f   :  { %11669 = vmatprep.mubr.msk.f32.mxu1 %vm354_vm1, %v14765_v3  ;;  %v6659_v3 = vld [vmem:[%s15890_s7 + $0x8] sm:$0xff] }
 0x4a2   :  { %11670 = vmatmul.mubr.msk.f32.gmra.mrb[26].mxu1 %vm354_vm1, %v14769_v27  ;;  %v12282_v27 = vpack.c.bf16 %v6659_v3, %v6658_v23 }
 0x4a3   :  { %11672 = vmatprep.mubr.msk.f32.mxu1 %vm354_vm1, %v14773_v36  ;;  %v15250_v36 = vld [vmem:[%s15893_s10 + $0x2] ss:$0 sm:$0xff] }
 0x4a4   :  { %12283 = vmatprep.subr.bf16.mxu0 %v12282_v27 }
 0x4a6   :  { %11673 = vmatmul.mubr.msk.f32.gmra.mrb[28].mxu1 %vm354_vm1, %v14777_v41 }
 0x4a7   :  { %11675 = vmatprep.mubr.msk.f32.mxu1 %vm354_vm1, %v15018_v58 }
 0x4aa   :  { %11676 = vmatmul.mubr.msk.f32.gmra.mrb[30].mxu1 %vm354_vm1, %v14550_v53  ;;  %v16041_v53 = vld [vmem:[#allocation8_spill] sm:$0xff] }
 0x4ab   :  { %11686 = vmatprep.mubr.msk.f32.mxu1 %vm354_vm1, %v14872_v1 }
 0x4ae   :  { %11687 = vmatmul.mubr.msk.f32.vlgmr.msra.gmra.mrb[16].mxu1 %vm354_vm1, %v14876_v0 }
 0x4af   :  { %11689 = vmatprep.mubr.msk.f32.mxu1 %vm354_vm1, %v14880_v16  ;;  %12349 = vmatpush3.bf16.msra.mxu1 %v12346_v26 }
 0x4b0   :  { %12351 = vmatprep.subr.bf16.mxu1 %v12350_v49 }
 0x4b2   :  { %11690 = vmatmul.mubr.msk.f32.gmra.mrb[18].mxu1 %vm354_vm1, %v14884_v17  ;;  %v6660_v17 = vld [vmem:[%s15890_s7 + $0x10] sm:$0xff] }
 0x4b3   :  { %11692 = vmatprep.mubr.msk.f32.mxu1 %vm354_vm1, %v14888_v4  ;;  %12353 = vmatpush3.bf16.msra.mxu1 %v12350_v49  ;;  %v6661_v4 = vld [vmem:[%s15890_s7 + $0x18] sm:$0xff] }
 0x4b4   :  { %v12286_v63 = vpack.c.bf16 %v6661_v4, %v6660_v17 }
 0x4b6   :  { %11693 = vmatmul.mubr.msk.f32.gmra.mrb[20].mxu1 %vm354_vm1, %v14892_v38 }
 0x4b7   :  { %11695 = vmatprep.mubr.msk.f32.mxu1 %vm354_vm1, %v15048_v20  ;;  %v7084_v20 = vld [vmem:[%s15890_s7 + $0x40] sm:$0xff] }
 0x4ba   :  { %11696 = vmatmul.mubr.msk.f32.gmra.mrb[22].mxu1 %vm354_vm1, %v14568_v37  ;;  %v16042_v37 = vld [vmem:[#allocation11_spill] sm:$0xff] }
 0x4bb   :  { %11698 = vmatprep.mubr.msk.f32.mxu1 %vm354_vm1, %v14902_v50 }
 0x4be   :  { %11699 = vmatmul.mubr.msk.f32.gmra.mrb[24].mxu1 %vm354_vm1, %v14906_v15  ;;  %v16038_v15 = vld [vmem:[#allocation7_spill] sm:$0xff] }
 0x4bf   :  { %11701 = vmatprep.mubr.msk.f32.mxu1 %vm354_vm1, %v14910_v43  ;;  %v16040_v43 = vld [vmem:[#allocation9_spill] sm:$0xff] }
 0x4c2   :  { %11702 = vmatmul.mubr.msk.f32.gmra.mrb[26].mxu1 %vm354_vm1, %v14914_v8 }
 0x4c3   :  { %11704 = vmatprep.mubr.msk.f32.mxu1 %vm354_vm1, %v14918_v19  ;;  %v16039_v19 = vld [vmem:[#allocation6_spill] sm:$0xff] }
 0x4c6   :  { %11705 = vmatmul.mubr.msk.f32.gmra.mrb[28].mxu1 %vm354_vm1, %v14922_v22  ;;  %v6662_v22 = vld [vmem:[#allocation2 + $0x1] sm:$0xff] }
 0x4c7   :  { %11707 = vmatprep.mubr.msk.f32.mxu1 %vm354_vm1, %v15066_v33  ;;  %11718 = vmatprep.mubr.msk.f32.mxu0 %vm354_vm1, %v6662_v22  ;;  %v7085_v33 = vld [vmem:[%s15890_s7 + $0x48] sm:$0xff] }
 0x4c8   :  { %v15286_v45 = vpack.c.bf16 %v7085_v33, %v7084_v20 }
 0x4ca   :  { %11708 = vmatmul.mubr.msk.f32.gmra.mrb[30].mxu1 %vm354_vm1, %v14586_v40  ;;  %v16043_v40 = vld [vmem:[#allocation10_spill] sm:$0xff] }
 0x4cb   :  { %12006 = vmatprep.mubr.msk.f32.mxu1 %vm354_vm1, %v14619_v52 }
 0x4ce   :  { %12007 = vmatmul.mubr.msk.f32.vlgmr.msra.gmra.mrb[32].mxu1 %vm354_vm1, %v14616_v47 }
 0x4cf   :  { %12009 = vmatprep.mubr.msk.f32.mxu1 %vm354_vm1, %v14631_v9 }
 0x4d2   :  { %12010 = vmatmul.mubr.msk.f32.gmra.mrb[34].mxu1 %vm354_vm1, %v14628_v13 }
 0x4d3   :  { %12012 = vmatprep.mubr.msk.f32.mxu1 %vm354_vm1, %v16038_v15 }
 0x4d6   :  { %12013 = vmatmul.mubr.msk.f32.gmra.mrb[36].mxu1 %vm354_vm1, %v16039_v19 }
 0x4d7   :  { %12015 = vmatprep.mubr.msk.f32.mxu1 %vm354_vm1, %v16040_v43 }
 0x4da   :  { %12016 = vmatmul.mubr.msk.f32.gmra.mrb[38].mxu1 %vm354_vm1, %v16041_v53 }
 0x4db   :  { %12018 = vmatprep.mubr.msk.f32.mxu1 %vm354_vm1, %v16042_v37 }
 0x4de   :  { %12019 = vmatmul.mubr.msk.f32.gmra.mrb[40].mxu1 %vm354_vm1, %v16043_v40 }
 0x4df   :  { %12021 = vmatprep.mubr.msk.f32.mxu1 %vm354_vm1, %v16044_v35  ;;  %v8229_v35 = vld [vmem:[%s15890_s7 + $0xe0] sm:$0xff] }
 0x4e2   :  { %12022 = vmatmul.mubr.msk.f32.gmra.mrb[42].mxu1 %vm354_vm1, %v16045_v12  ;;  %v8230_v12 = vld [vmem:[%s15890_s7 + $0xe8] sm:$0xff] }
 0x4e3   :  { %12024 = vmatprep.mubr.msk.f32.mxu1 %vm354_vm1, %v16046_v51 }
 0x4e6   :  { %12025 = vmatmul.mubr.msk.f32.gmra.mrb[44].mxu1 %vm354_vm1, %v16047_v60 }
 0x4e7   :  { %12027 = vmatprep.mubr.msk.f32.mxu1 %vm354_vm1, %v16048_v10 }
 0x4ea   :  { %12028 = vmatmul.mubr.msk.f32.gmra.mrb[46].mxu1 %vm354_vm1, %v16049_v62  ;;  %v8727_v62 = vld [vmem:[%s15892_s9 + $0x18] sm:$0xff] }
 0x581   :  { %v11688_v41 = vpop.f32.mrb[16].mxu1 }
 0x582   :  { %v6595_v48 = vadd.f32 %v11688_v41, %v15250_v36  ;;  %v6494_v42 = vpop.f32.mrb[17].mxu1 }
 0x583   :  { %v6594_v28 = vadd.f32 %v15250_v36, %v6494_v42  ;;  %v6670_v42 = vld [vmem:[#allocation2 + $0xa1] sm:$0xff] }
 0x584   :  { %v6611_v7 = vmax.f32 %v6595_v48, 0.0 }
 0x585   :  { %v6610_v14 = vmax.f32 %v6594_v28, 0.0  ;;  %v11691_v56 = vpop.f32.mrb[18].mxu1 }
 0x586   :  { %6627 = vst.msk [vmem:[#allocation2 + $0x21] sm:$0xff] %vm354_vm1, %v6611_v7  ;;  %v6597_v21 = vadd.f32 %v11691_v56, %v15250_v36  ;;  %v6504_v39 = vpop.f32.mrb[19].mxu1 }
 0x587   :  { %6626 = vst.msk [vmem:[#allocation2 + $0x11] sm:$0xff] %vm354_vm1, %v6610_v14  ;;  %v6596_v2 = vadd.f32 %v15250_v36, %v6504_v39 }
 0x588   :  { %v6613_v25 = vmax.f32 %v6597_v21, 0.0 }
 0x589   :  { %v6612_v31 = vmax.f32 %v6596_v2, 0.0  ;;  %v11694_v1 = vpop.f32.mrb[20].mxu1 }
 0x58a   :  { %6629 = vst.msk [vmem:[#allocation2 + $0x41] sm:$0xff] %vm354_vm1, %v6613_v25  ;;  %v6599_v0 = vadd.f32 %v11694_v1, %v15250_v36  ;;  %v6514_v16 = vpop.f32.mrb[21].mxu1 }
 0x58b   :  { %6628 = vst.msk [vmem:[#allocation2 + $0x31] sm:$0xff] %vm354_vm1, %v6612_v31  ;;  %v6598_v38 = vadd.f32 %v15250_v36, %v6514_v16 }
 0x58c   :  { %v6615_v50 = vmax.f32 %v6599_v0, 0.0 }
 0x58d   :  { %v6614_v8 = vmax.f32 %v6598_v38, 0.0  ;;  %v11697_v46 = vpop.f32.mrb[22].mxu1  ;;  %v15282_v11 = vld [vmem:[#allocation2 + $0x21] sm:$0xff] }
 0x58e   :  { %6631 = vst.msk [vmem:[#allocation2 + $0x61] sm:$0xff] %vm354_vm1, %v6615_v50  ;;  %v6601_v57 = vadd.f32 %v11697_v46, %v15250_v36  ;;  %v6524_v58 = vpop.f32.mrb[23].mxu1  ;;  %v15270_v18 = vld [vmem:[#allocation2 + $0x11] sm:$0xff]  ;;  %v6642_v46 = vld [vmem:[#allocation2] sm:$0xff] }
 0x58f   :  { %6630 = vst.msk [vmem:[#allocation2 + $0x51] sm:$0xff] %vm354_vm1, %v6614_v8  ;;  %v6600_v29 = vadd.f32 %v15250_v36, %v6524_v58  ;;  %11719 = vmatmul.mubr.msk.f32.vlgmr.msra.gmra.mrb[32].mxu0 %vm354_vm1, %v15270_v18  ;;  %v7087_v58 = vld [vmem:[%s15890_s7 + $0x58] sm:$0xff]  ;;  %v15363_v33 = vld [vmem:[#allocation2 + $0x10] sm:$0xff] }
 0x590   :  { %v6617_v5 = vmax.f32 %v6601_v57, 0.0  ;;  %11721 = vmatprep.mubr.msk.f32.mxu0 %vm354_vm1, %v15282_v11  ;;  %12285 = vmatpush3.bf16.msra.mxu0 %v12282_v27  ;;  %v7086_v57 = vld [vmem:[%s15890_s7 + $0x50] sm:$0xff] }
 0x591   :  { %v6616_v30 = vmax.f32 %v6600_v29, 0.0  ;;  %v11700_v55 = vpop.f32.mrb[24].mxu1  ;;  %12287 = vmatprep.subr.bf16.mxu0 %v12286_v63  ;;  %v15296_v6 = vld [vmem:[#allocation2 + $0x41] sm:$0xff]  ;;  %v12294_v20 = vpack.c.bf16 %v7087_v58, %v7086_v57 }
 0x592   :  { %6633 = vst.msk [vmem:[#allocation2 + $0x81] sm:$0xff] %vm354_vm1, %v6617_v5  ;;  %v6603_v34 = vadd.f32 %v11700_v55, %v15250_v36  ;;  %v6534_v59 = vpop.f32.mrb[25].mxu1  ;;  %v15290_v24 = vld [vmem:[#allocation2 + $0x31] sm:$0xff]  ;;  %v7313_v29 = vld [vmem:[%s15890_s7 + $0x60] sm:$0xff]  ;;  %v7314_v5 = vld [vmem:[%s15890_s7 + $0x68] sm:$0xff] }
 0x593   :  { %6632 = vst.msk [vmem:[#allocation2 + $0x71] sm:$0xff] %vm354_vm1, %v6616_v30  ;;  %v6602_v54 = vadd.f32 %v15250_v36, %v6534_v59  ;;  %11722 = vmatmul.mubr.msk.f32.gmra.mrb[34].mxu0 %vm354_vm1, %v15290_v24  ;;  %v15373_v30 = vld [vmem:[#allocation2 + $0x20] sm:$0xff]  ;;  %v12298_v55 = vpack.c.bf16 %v7314_v5, %v7313_v29 }
 0x594   :  { %v6619_v61 = vmax.f32 %v6603_v34, 0.0  ;;  %11724 = vmatprep.mubr.msk.f32.mxu0 %vm354_vm1, %v15296_v6  ;;  %12289 = vmatpush3.bf16.msra.mxu0 %v12286_v63  ;;  %v15378_v34 = vld [vmem:[#allocation2 + $0x30] sm:$0xff]  ;;  %v15382_v59 = vld [vmem:[#allocation2 + $0x40] sm:$0xff] }
 0x595   :  { %v6618_v26 = vmax.f32 %v6602_v54, 0.0  ;;  %v11703_v44 = vpop.f32.mrb[26].mxu1  ;;  %12291 = vmatprep.subr.bf16.mxu0 %v15286_v45  ;;  %v15309_v3 = vld [vmem:[#allocation2 + $0x61] sm:$0xff] }
 0x596   :  { %6635 = vst.msk [vmem:[#allocation2 + $0xc1] sm:$0xff] %vm354_vm1, %v6619_v61  ;;  %v6605_v32 = vadd.f32 %v11703_v44, %v15250_v36  ;;  %v6544_v49 = vpop.f32.mrb[27].mxu1  ;;  %v15303_v22 = vld [vmem:[#allocation2 + $0x51] sm:$0xff]  ;;  %v6650_v61 = vld [vmem:[#allocation2 + $0xa0] sm:$0xff] }
 0x597   :  { %6634 = vst.msk [vmem:[#allocation2 + $0xb1] sm:$0xff] %vm354_vm1, %v6618_v26  ;;  %v6604_v23 = vadd.f32 %v15250_v36, %v6544_v49  ;;  %11725 = vmatmul.mubr.msk.f32.gmra.mrb[36].mxu0 %vm354_vm1, %v15303_v22  ;;  %v15386_v54 = vld [vmem:[#allocation2 + $0x50] sm:$0xff]  ;;  %v7076_v57 = vld [vmem:[#allocation2 + $0xa2] sm:$0xff] }
 0x598   :  { %v6621_v27 = vmax.f32 %v6605_v32, 0.0  ;;  %11727 = vmatprep.mubr.msk.f32.mxu0 %vm354_vm1, %v15309_v3 }
 0x599   :  { %v6620_v41 = vmax.f32 %v6604_v23, 0.0  ;;  %v11706_v48 = vpop.f32.mrb[28].mxu1 }
 0x59a   :  { %6637 = vst.msk [vmem:[#allocation2 + $0xe1] sm:$0xff] %vm354_vm1, %v6621_v27  ;;  %v6607_v28 = vadd.f32 %v11706_v48, %v15250_v36  ;;  %v6554_v7 = vpop.f32.mrb[29].mxu1  ;;  %v15315_v14 = vld [vmem:[#allocation2 + $0x71] sm:$0xff]  ;;  %v7068_v48 = vld [vmem:[#allocation2 + $0x2] sm:$0xff] }
 0x59b   :  { %6636 = vst.msk [vmem:[#allocation2 + $0xd1] sm:$0xff] %vm354_vm1, %v6620_v41  ;;  %v6606_v56 = vadd.f32 %v15250_v36, %v6554_v7  ;;  %11728 = vmatmul.mubr.msk.f32.gmra.mrb[38].mxu0 %vm354_vm1, %v15315_v14  ;;  %v15394_v26 = vld [vmem:[#allocation2 + $0x70] sm:$0xff]  ;;  %v7316_v7 = vld [vmem:[%s15890_s7 + $0x78] sm:$0xff] }
 0x59c   :  { %v6623_v21 = vmax.f32 %v6607_v28, 0.0  ;;  %11730 = vmatprep.mubr.msk.f32.mxu0 %vm354_vm1, %v6670_v42  ;;  %v7315_v28 = vld [vmem:[%s15890_s7 + $0x70] sm:$0xff] }
 0x59d   :  { %v6622_v39 = vmax.f32 %v6606_v56, 0.0  ;;  %v11709_v2 = vpop.f32.mrb[30].mxu1  ;;  %v15330_v16 = vld [vmem:[#allocation2 + $0xc1] sm:$0xff]  ;;  %v12302_v56 = vpack.c.bf16 %v7316_v7, %v7315_v28  ;;  %v15464_v58 = vld [vmem:[#allocation2 + $0x72] sm:$0xff] }
 0x59e   :  { %6639 = vst.msk [vmem:[#allocation2 + $0x101] sm:$0xff] %vm354_vm1, %v6623_v21  ;;  %v6609_v25 = vadd.f32 %v11709_v2, %v15250_v36  ;;  %v6564_v31 = vpop.f32.mrb[31].mxu1  ;;  %v15324_v1 = vld [vmem:[#allocation2 + $0xb1] sm:$0xff]  ;;  %v15403_v32 = vld [vmem:[#allocation2 + $0xc0] sm:$0xff]  ;;  %v7543_v2 = vld [vmem:[%s15890_s7 + $0x88] sm:$0xff] }
 0x59f   :  { %6638 = vst.msk [vmem:[#allocation2 + $0xf1] sm:$0xff] %vm354_vm1, %v6622_v39  ;;  %v6608_v0 = vadd.f32 %v15250_v36, %v6564_v31  ;;  %11731 = vmatmul.mubr.msk.f32.gmra.mrb[40].mxu0 %vm354_vm1, %v15324_v1  ;;  %v15399_v44 = vld [vmem:[#allocation2 + $0xb0] sm:$0xff]  ;;  %v7542_v39 = vld [vmem:[%s15890_s7 + $0x80] sm:$0xff] }
 0x5a0   :  { %v6625_v17 = vmax.f32 %v6609_v25, 0.0  ;;  %11733 = vmatprep.mubr.msk.f32.mxu0 %vm354_vm1, %v15330_v16  ;;  %v15434_v21 = vld [vmem:[#allocation2 + $0x12] sm:$0xff]  ;;  %v15444_v25 = vld [vmem:[#allocation2 + $0x22] sm:$0xff]  ;;  %v12306_v31 = vpack.c.bf16 %v7543_v2, %v7542_v39 }
 0x5a1   :  { %v6624_v4 = vmax.f32 %v6608_v0, 0.0  ;;  %v15340_v36 = vld [vmem:[#allocation2 + $0xe1] sm:$0xff]  ;;  %v15448_v0 = vld [vmem:[#allocation2 + $0x32] sm:$0xff] }
 0x5a2   :  { %6641 = vst.msk [vmem:[#allocation2 + $0x121] sm:$0xff] %vm354_vm1, %v6625_v17  ;;  %v15335_v38 = vld [vmem:[#allocation2 + $0xd1] sm:$0xff]  ;;  %v15411_v23 = vld [vmem:[#allocation2 + $0xe0] sm:$0xff] }
 0x5a3   :  { %6640 = vst.msk [vmem:[#allocation2 + $0x111] sm:$0xff] %vm354_vm1, %v6624_v4  ;;  %11734 = vmatmul.mubr.msk.f32.gmra.mrb[42].mxu0 %vm354_vm1, %v15335_v38  ;;  %v15407_v49 = vld [vmem:[#allocation2 + $0xd0] sm:$0xff]  ;;  %v15452_v17 = vld [vmem:[#allocation2 + $0x42] sm:$0xff] }
 0x5a4   :  { %11736 = vmatprep.mubr.msk.f32.mxu0 %vm354_vm1, %v15340_v36  ;;  %v15456_v4 = vld [vmem:[#allocation2 + $0x52] sm:$0xff]  ;;  %v15473_v29 = vld [vmem:[#allocation2 + $0xc2] sm:$0xff] }
 0x5a5   :  { %v15348_v8 = vld [vmem:[#allocation2 + $0x101] sm:$0xff]  ;;  %v15477_v5 = vld [vmem:[#allocation2 + $0xd2] sm:$0xff] }
 0x5a6   :  { %v15344_v50 = vld [vmem:[#allocation2 + $0xf1] sm:$0xff]  ;;  %v15419_v41 = vld [vmem:[#allocation2 + $0x100] sm:$0xff] }
 0x5a7   :  { %11737 = vmatmul.mubr.msk.f32.gmra.mrb[44].mxu0 %vm354_vm1, %v15344_v50  ;;  %v15415_v27 = vld [vmem:[#allocation2 + $0xf0] sm:$0xff]  ;;  %v7771_v2 = vld [vmem:[%s15890_s7 + $0xa0] sm:$0xff] }
 0x5a8   :  { %11739 = vmatprep.mubr.msk.f32.mxu0 %vm354_vm1, %v15348_v8  ;;  %v7544_v7 = vld [vmem:[%s15890_s7 + $0x90] sm:$0xff] }
 0x5aa   :  { %v15352_v63 = vld [vmem:[#allocation2 + $0x111] sm:$0xff] }
 0x5ab   :  { %11740 = vmatmul.mubr.msk.f32.gmra.mrb[46].mxu0 %vm354_vm1, %v15352_v63  ;;  %v15423_v42 = vld [vmem:[#allocation2 + $0x110] sm:$0xff] }
 0x5ac   :  { %11750 = vmatprep.mubr.msk.f32.mxu0 %vm354_vm1, %v6642_v46  ;;  %v15460_v46 = vld [vmem:[#allocation2 + $0x62] sm:$0xff]  ;;  %v15493_v28 = vld [vmem:[#allocation2 + $0x112] sm:$0xff] }
 0x5af   :  { %11751 = vmatmul.mubr.msk.f32.vlgmr.msra.gmra.mrb[32].mxu0 %vm354_vm1, %v15363_v33 }
 0x5b0   :  { %11753 = vmatprep.mubr.msk.f32.mxu0 %vm354_vm1, %v15373_v30  ;;  %12293 = vmatpush3.bf16.msra.mxu0 %v15286_v45  ;;  %v15390_v45 = vld [vmem:[#allocation2 + $0x60] sm:$0xff] }
 0x5b1   :  { %12295 = vmatprep.subr.bf16.mxu0 %v12294_v20 }
 0x5b3   :  { %11754 = vmatmul.mubr.msk.f32.gmra.mrb[34].mxu0 %vm354_vm1, %v15378_v34 }
 0x5b4   :  { %11756 = vmatprep.mubr.msk.f32.mxu0 %vm354_vm1, %v15382_v59  ;;  %12297 = vmatpush3.bf16.msra.mxu0 %v12294_v20  ;;  %v15469_v20 = vld [vmem:[#allocation2 + $0xb2] sm:$0xff] }
 0x5b5   :  { %12299 = vmatprep.subr.bf16.mxu0 %v12298_v55 }
 0x5b7   :  { %11757 = vmatmul.mubr.msk.f32.gmra.mrb[36].mxu0 %vm354_vm1, %v15386_v54 }
 0x5b8   :  { %11759 = vmatprep.mubr.msk.f32.mxu0 %vm354_vm1, %v15390_v45 }
 0x5bb   :  { %11760 = vmatmul.mubr.msk.f32.gmra.mrb[38].mxu0 %vm354_vm1, %v15394_v26 }
 0x5bc   :  { %11762 = vmatprep.mubr.msk.f32.mxu0 %vm354_vm1, %v6650_v61  ;;  %v15485_v61 = vld [vmem:[#allocation2 + $0xf2] sm:$0xff] }
 0x5bf   :  { %11763 = vmatmul.mubr.msk.f32.gmra.mrb[40].mxu0 %vm354_vm1, %v15399_v44 }
 0x5c0   :  { %11765 = vmatprep.mubr.msk.f32.mxu0 %vm354_vm1, %v15403_v32 }
 0x5c3   :  { %11766 = vmatmul.mubr.msk.f32.gmra.mrb[42].mxu0 %vm354_vm1, %v15407_v49 }
 0x5c4   :  { %11768 = vmatprep.mubr.msk.f32.mxu0 %vm354_vm1, %v15411_v23 }
 0x5c7   :  { %11769 = vmatmul.mubr.msk.f32.gmra.mrb[44].mxu0 %vm354_vm1, %v15415_v27 }
 0x5c8   :  { %11771 = vmatprep.mubr.msk.f32.mxu0 %vm354_vm1, %v15419_v41 }
 0x5cb   :  { %11772 = vmatmul.mubr.msk.f32.gmra.mrb[46].mxu0 %vm354_vm1, %v15423_v42 }
 0x5cc   :  { %11782 = vmatprep.mubr.msk.f32.mxu0 %vm354_vm1, %v7068_v48  ;;  %v15489_v48 = vld [vmem:[#allocation2 + $0x102] sm:$0xff] }
 0x5cf   :  { %11783 = vmatmul.mubr.msk.f32.vlgmr.msra.gmra.mrb[32].mxu0 %vm354_vm1, %v15434_v21 }
 0x5d0   :  { %11785 = vmatprep.mubr.msk.f32.mxu0 %vm354_vm1, %v15444_v25  ;;  %12301 = vmatpush3.bf16.msra.mxu0 %v12298_v55  ;;  %v15481_v55 = vld [vmem:[#allocation2 + $0xe2] sm:$0xff] }
 0x5d1   :  { %12303 = vmatprep.subr.bf16.mxu0 %v12302_v56 }
 0x5d3   :  { %11786 = vmatmul.mubr.msk.f32.gmra.mrb[34].mxu0 %vm354_vm1, %v15448_v0 }
 0x5d4   :  { %11788 = vmatprep.mubr.msk.f32.mxu0 %vm354_vm1, %v15452_v17  ;;  %12305 = vmatpush3.bf16.msra.mxu0 %v12302_v56  ;;  %v7545_v56 = vld [vmem:[%s15890_s7 + $0x98] sm:$0xff] }
 0x5d5   :  { %12307 = vmatprep.subr.bf16.mxu0 %v12306_v31  ;;  %v12310_v39 = vpack.c.bf16 %v7545_v56, %v7544_v7  ;;  %v7774_v7 = vld [vmem:[%s15890_s7 + $0xb8] sm:$0xff] }
 0x5d7   :  { %11789 = vmatmul.mubr.msk.f32.gmra.mrb[36].mxu0 %vm354_vm1, %v15456_v4 }
 0x5d8   :  { %11791 = vmatprep.mubr.msk.f32.mxu0 %vm354_vm1, %v15460_v46 }
 0x5db   :  { %11792 = vmatmul.mubr.msk.f32.gmra.mrb[38].mxu0 %vm354_vm1, %v15464_v58 }
 0x5dc   :  { %11794 = vmatprep.mubr.msk.f32.mxu0 %vm354_vm1, %v7076_v57  ;;  %v7772_v57 = vld [vmem:[%s15890_s7 + $0xa8] sm:$0xff] }
 0x5dd   :  { %v12314_v10 = vpack.c.bf16 %v7772_v57, %v7771_v2  ;;  %v8001_v2 = vld [vmem:[%s15890_s7 + $0xc8] sm:$0xff] }
 0x5df   :  { %11795 = vmatmul.mubr.msk.f32.gmra.mrb[40].mxu0 %vm354_vm1, %v15469_v20 }
 0x5e0   :  { %11797 = vmatprep.mubr.msk.f32.mxu0 %vm354_vm1, %v15473_v29 }
 0x5e3   :  { %11798 = vmatmul.mubr.msk.f32.gmra.mrb[42].mxu0 %vm354_vm1, %v15477_v5 }
 0x5e4   :  { %11800 = vmatprep.mubr.msk.f32.mxu0 %vm354_vm1, %v15481_v55 }
 0x5e7   :  { %11801 = vmatmul.mubr.msk.f32.gmra.mrb[44].mxu0 %vm354_vm1, %v15485_v61 }
 0x5e8   :  { %11803 = vmatprep.mubr.msk.f32.mxu0 %vm354_vm1, %v15489_v48 }
 0x5eb   :  { %11804 = vmatmul.mubr.msk.f32.gmra.mrb[46].mxu0 %vm354_vm1, %v15493_v28 }
 0x5ec   :  { %11814 = vmatprep.mubr.msk.f32.mxu0 %vm354_vm1, %v15363_v33  ;;  %v15523_v33 = vld [vmem:[#allocation2 + $0x80] sm:$0xff] }
 0x5ef   :  { %11815 = vmatmul.mubr.msk.f32.vlgmr.msra.gmra.mrb[32].mxu0 %vm354_vm1, %v15373_v30 }
 0x5f0   :  { %11817 = vmatprep.mubr.msk.f32.mxu0 %vm354_vm1, %v15378_v34  ;;  %12309 = vmatpush3.bf16.msra.mxu0 %v12306_v31  ;;  %v15541_v31 = vld [vmem:[#allocation2 + $0x120] sm:$0xff] }
 0x5f1   :  { %12311 = vmatprep.subr.bf16.mxu0 %v12310_v39 }
 0x5f3   :  { %11818 = vmatmul.mubr.msk.f32.gmra.mrb[34].mxu0 %vm354_vm1, %v15382_v59 }
 0x5f4   :  { %11820 = vmatprep.mubr.msk.f32.mxu0 %vm354_vm1, %v15386_v54  ;;  %12313 = vmatpush3.bf16.msra.mxu0 %v12310_v39  ;;  %v8000_v39 = vld [vmem:[%s15890_s7 + $0xc0] sm:$0xff] }
 0x5f5   :  { %12315 = vmatprep.subr.bf16.mxu0 %v12314_v10  ;;  %v12322_v57 = vpack.c.bf16 %v8001_v2, %v8000_v39  ;;  %v8726_v39 = vld [vmem:[%s15892_s9 + $0x10] sm:$0xff] }
 0x5f6   :  { %v12358_v60 = vpack.c.bf16 %v8727_v62, %v8726_v39  ;;  %v15631_v62 = vld [vmem:[#allocation2 + $0x82] sm:$0xff] }
 0x5f7   :  { %11821 = vmatmul.mubr.msk.f32.gmra.mrb[36].mxu0 %vm354_vm1, %v15390_v45 }
 0x5f8   :  { %11823 = vmatprep.mubr.msk.f32.mxu0 %vm354_vm1, %v15394_v26 }
 0x5fb   :  { %11824 = vmatmul.mubr.msk.f32.gmra.mrb[38].mxu0 %vm354_vm1, %v15523_v33 }
 0x5fc   :  { %11826 = vmatprep.mubr.msk.f32.mxu0 %vm354_vm1, %v15399_v44  ;;  %v7773_v44 = vld [vmem:[%s15890_s7 + $0xb0] sm:$0xff] }
 0x5fd   :  { %v12318_v56 = vpack.c.bf16 %v7774_v7, %v7773_v44  ;;  %v8003_v44 = vld [vmem:[%s15890_s7 + $0xd8] sm:$0xff]  ;;  %v8724_v7 = vld [vmem:[%s15892_s9] sm:$0xff] }
 0x5ff   :  { %11827 = vmatmul.mubr.msk.f32.gmra.mrb[40].mxu0 %vm354_vm1, %v15403_v32 }
 0x600   :  { %11829 = vmatprep.mubr.msk.f32.mxu0 %vm354_vm1, %v15407_v49 }
 0x603   :  { %11830 = vmatmul.mubr.msk.f32.gmra.mrb[42].mxu0 %vm354_vm1, %v15411_v23 }
 0x604   :  { %11832 = vmatprep.mubr.msk.f32.mxu0 %vm354_vm1, %v15415_v27 }
 0x607   :  { %11833 = vmatmul.mubr.msk.f32.gmra.mrb[44].mxu0 %vm354_vm1, %v15419_v41 }
 0x608   :  { %11835 = vmatprep.mubr.msk.f32.mxu0 %vm354_vm1, %v15423_v42 }
 0x60b   :  { %11836 = vmatmul.mubr.msk.f32.gmra.mrb[46].mxu0 %vm354_vm1, %v15541_v31 }
 0x60c   :  { %11846 = vmatprep.mubr.msk.f32.mxu0 %vm354_vm1, %v15270_v18  ;;  %v15571_v18 = vld [vmem:[#allocation2 + $0x81] sm:$0xff] }
 0x60f   :  { %11847 = vmatmul.mubr.msk.f32.vlgmr.msra.gmra.mrb[32].mxu0 %vm354_vm1, %v15282_v11 }
 0x610   :  { %11849 = vmatprep.mubr.msk.f32.mxu0 %vm354_vm1, %v15290_v24  ;;  %12317 = vmatpush3.bf16.msra.mxu0 %v12314_v10  ;;  %v15589_v10 = vld [vmem:[#allocation2 + $0x121] sm:$0xff] }
 0x611   :  { %12319 = vmatprep.subr.bf16.mxu0 %v12318_v56 }
 0x613   :  { %11850 = vmatmul.mubr.msk.f32.gmra.mrb[34].mxu0 %vm354_vm1, %v15296_v6 }
 0x614   :  { %11852 = vmatprep.mubr.msk.f32.mxu0 %vm354_vm1, %v15303_v22  ;;  %12321 = vmatpush3.bf16.msra.mxu0 %v12318_v56  ;;  %v8725_v56 = vld [vmem:[%s15892_s9 + $0x8] sm:$0xff] }
 0x615   :  { %12323 = vmatprep.subr.bf16.mxu0 %v12322_v57  ;;  %v12354_v2 = vpack.c.bf16 %v8725_v56, %v8724_v7 }
 0x617   :  { %11853 = vmatmul.mubr.msk.f32.gmra.mrb[36].mxu0 %vm354_vm1, %v15309_v3  ;;  %12355 = vmatprep.subr.bf16.mxu1 %v12354_v2 }
 0x618   :  { %11855 = vmatprep.mubr.msk.f32.mxu0 %vm354_vm1, %v15315_v14  ;;  %12357 = vmatpush3.bf16.msra.mxu1 %v12354_v2 }
 0x619   :  { %12359 = vmatprep.subr.bf16.mxu1 %v12358_v60 }
 0x61b   :  { %11856 = vmatmul.mubr.msk.f32.gmra.mrb[38].mxu0 %vm354_vm1, %v15571_v18 }
 0x61c   :  { %11858 = vmatprep.mubr.msk.f32.mxu0 %vm354_vm1, %v15324_v1  ;;  %v8002_v1 = vld [vmem:[%s15890_s7 + $0xd0] sm:$0xff]  ;;  %12361 = vmatpush3.bf16.msra.mxu1 %v12358_v60 }
 0x61d   :  { %v12326_v51 = vpack.c.bf16 %v8003_v44, %v8002_v1 }
 0x61f   :  { %11859 = vmatmul.mubr.msk.f32.gmra.mrb[40].mxu0 %vm354_vm1, %v15330_v16 }
 0x620   :  { %11861 = vmatprep.mubr.msk.f32.mxu0 %vm354_vm1, %v15335_v38 }
 0x623   :  { %11862 = vmatmul.mubr.msk.f32.gmra.mrb[42].mxu0 %vm354_vm1, %v15340_v36 }
 0x624   :  { %11864 = vmatprep.mubr.msk.f32.mxu0 %vm354_vm1, %v15344_v50 }
 0x627   :  { %11865 = vmatmul.mubr.msk.f32.gmra.mrb[44].mxu0 %vm354_vm1, %v15348_v8 }
 0x628   :  { %11867 = vmatprep.mubr.msk.f32.mxu0 %vm354_vm1, %v15352_v63 }
 0x62b   :  { %11868 = vmatmul.mubr.msk.f32.gmra.mrb[46].mxu0 %vm354_vm1, %v15589_v10 }
 0x62c   :  { %11878 = vmatprep.mubr.msk.f32.mxu0 %vm354_vm1, %v15434_v21  ;;  %v12330_v21 = vpack.c.bf16 %v8230_v12, %v8229_v35  ;;  %v15649_v35 = vld [vmem:[#allocation2 + $0x122] sm:$0xff]  ;;  %v8231_v12 = vld [vmem:[%s15890_s7 + $0xf0] sm:$0xff] }
 0x62f   :  { %11879 = vmatmul.mubr.msk.f32.vlgmr.msra.gmra.mrb[32].mxu0 %vm354_vm1, %v15444_v25 }
 0x630   :  { %11881 = vmatprep.mubr.msk.f32.mxu0 %vm354_vm1, %v15448_v0  ;;  %12325 = vmatpush3.bf16.msra.mxu0 %v12322_v57  ;;  %v8459_v57 = vld [vmem:[%s15890_s7 + $0x108] sm:$0xff] }
 0x631   :  { %12327 = vmatprep.subr.bf16.mxu0 %v12326_v51 }
 0x633   :  { %11882 = vmatmul.mubr.msk.f32.gmra.mrb[34].mxu0 %vm354_vm1, %v15452_v17 }
 0x634   :  { %11884 = vmatprep.mubr.msk.f32.mxu0 %vm354_vm1, %v15456_v4  ;;  %12329 = vmatpush3.bf16.msra.mxu0 %v12326_v51  ;;  %v8232_v51 = vld [vmem:[%s15890_s7 + $0xf8] sm:$0xff] }
 0x635   :  { %12331 = vmatprep.subr.bf16.mxu0 %v12330_v21  ;;  %v12334_v60 = vpack.c.bf16 %v8232_v51, %v8231_v12  ;;  %v16050_v51 = vld [vmem:[#allocation12_spill] sm:$0xff] }
 0x637   :  { %11885 = vmatmul.mubr.msk.f32.gmra.mrb[36].mxu0 %vm354_vm1, %v15460_v46 }
 0x638   :  { %11887 = vmatprep.mubr.msk.f32.mxu0 %vm354_vm1, %v15464_v58 }
 0x63b   :  { %11888 = vmatmul.mubr.msk.f32.gmra.mrb[38].mxu0 %vm354_vm1, %v15631_v62 }
 0x63c   :  { %11890 = vmatprep.mubr.msk.f32.mxu0 %vm354_vm1, %v15469_v20  ;;  %v8458_v20 = vld [vmem:[%s15890_s7 + $0x100] sm:$0xff] }
 0x63d   :  { %v12338_v1 = vpack.c.bf16 %v8459_v57, %v8458_v20  ;;  %v16051_v20 = vld [vmem:[#allocation13_spill] sm:$0xff] }
 0x63f   :  { %11891 = vmatmul.mubr.msk.f32.gmra.mrb[40].mxu0 %vm354_vm1, %v15473_v29 }
 0x640   :  { %11893 = vmatprep.mubr.msk.f32.mxu0 %vm354_vm1, %v15477_v5 }
 0x643   :  { %11894 = vmatmul.mubr.msk.f32.gmra.mrb[42].mxu0 %vm354_vm1, %v15481_v55 }
 0x644   :  { %11896 = vmatprep.mubr.msk.f32.mxu0 %vm354_vm1, %v15485_v61 }
 0x647   :  { %11897 = vmatmul.mubr.msk.f32.gmra.mrb[44].mxu0 %vm354_vm1, %v15489_v48 }
 0x648   :  { %11899 = vmatprep.mubr.msk.f32.mxu0 %vm354_vm1, %v15493_v28 }
 0x64b   :  { %11900 = vmatmul.mubr.msk.f32.gmra.mrb[46].mxu0 %vm354_vm1, %v15649_v35 }
 0x64c   :  { %11910 = vmatprep.mubr.msk.f32.mxu0 %vm354_vm1, %v15373_v30  ;;  %v7991_v30 = vld [vmem:[#allocation2 + $0x90] sm:$0xff] }
 0x64f   :  { %11911 = vmatmul.mubr.msk.f32.vlgmr.msra.gmra.mrb[32].mxu0 %vm354_vm1, %v15378_v34  ;;  %v7999_v34 = vld [vmem:[#allocation2 + $0x130] sm:$0xff] }
 0x650   :  { %11913 = vmatprep.mubr.msk.f32.mxu0 %vm354_vm1, %v15382_v59  ;;  %12333 = vmatpush3.bf16.msra.mxu0 %v12330_v21  ;;  %v8460_v59 = vld [vmem:[%s15890_s7 + $0x110] sm:$0xff] }
 0x651   :  { %12335 = vmatprep.subr.bf16.mxu0 %v12334_v60 }
 0x653   :  { %11914 = vmatmul.mubr.msk.f32.gmra.mrb[34].mxu0 %vm354_vm1, %v15386_v54  ;;  %v8461_v54 = vld [vmem:[%s15890_s7 + $0x118] sm:$0xff] }
 0x654   :  { %11916 = vmatprep.mubr.msk.f32.mxu0 %vm354_vm1, %v15390_v45  ;;  %12337 = vmatpush3.bf16.msra.mxu0 %v12334_v60  ;;  %v12342_v45 = vpack.c.bf16 %v8461_v54, %v8460_v59  ;;  %v16052_v54 = vld [vmem:[#allocation14_spill] sm:$0xff] }
 0x655   :  { %12339 = vmatprep.subr.bf16.mxu0 %v12338_v1 }
 0x657   :  { %11917 = vmatmul.mubr.msk.f32.gmra.mrb[36].mxu0 %vm354_vm1, %v15394_v26 }
 0x658   :  { %11919 = vmatprep.mubr.msk.f32.mxu0 %vm354_vm1, %v15523_v33 }
 0x65b   :  { %11920 = vmatmul.mubr.msk.f32.gmra.mrb[38].mxu0 %vm354_vm1, %v7991_v30 }
 0x65c   :  { %11922 = vmatprep.mubr.msk.f32.mxu0 %vm354_vm1, %v15403_v32 }
 0x65f   :  { %11923 = vmatmul.mubr.msk.f32.gmra.mrb[40].mxu0 %vm354_vm1, %v15407_v49 }
 0x660   :  { %11925 = vmatprep.mubr.msk.f32.mxu0 %vm354_vm1, %v15411_v23 }
 0x663   :  { %11926 = vmatmul.mubr.msk.f32.gmra.mrb[42].mxu0 %vm354_vm1, %v15415_v27 }
 0x664   :  { %11928 = vmatprep.mubr.msk.f32.mxu0 %vm354_vm1, %v15419_v41 }
 0x667   :  { %11929 = vmatmul.mubr.msk.f32.gmra.mrb[44].mxu0 %vm354_vm1, %v15423_v42 }
 0x668   :  { %11931 = vmatprep.mubr.msk.f32.mxu0 %vm354_vm1, %v15541_v31 }
 0x66b   :  { %11932 = vmatmul.mubr.msk.f32.gmra.mrb[46].mxu0 %vm354_vm1, %v7999_v34 }
 0x66c   :  { %11942 = vmatprep.mubr.msk.f32.mxu0 %vm354_vm1, %v15282_v11  ;;  %v8220_v11 = vld [vmem:[#allocation2 + $0x91] sm:$0xff] }
 0x66f   :  { %11943 = vmatmul.mubr.msk.f32.vlgmr.msra.gmra.mrb[32].mxu0 %vm354_vm1, %v15290_v24  ;;  %v8228_v24 = vld [vmem:[#allocation2 + $0x131] sm:$0xff] }
 0x670   :  { %11945 = vmatprep.mubr.msk.f32.mxu0 %vm354_vm1, %v15296_v6  ;;  %12341 = vmatpush3.bf16.msra.mxu0 %v12338_v1  ;;  %v8449_v6 = vld [vmem:[#allocation2 + $0x92] sm:$0xff] }
 0x671   :  { %12343 = vmatprep.subr.bf16.mxu0 %v12342_v45 }
 0x673   :  { %11946 = vmatmul.mubr.msk.f32.gmra.mrb[34].mxu0 %vm354_vm1, %v15303_v22  ;;  %v8457_v22 = vld [vmem:[#allocation2 + $0x132] sm:$0xff] }
 0x674   :  { %11948 = vmatprep.mubr.msk.f32.mxu0 %vm354_vm1, %v15309_v3  ;;  %12345 = vmatpush3.bf16.msra.mxu0 %v12342_v45  ;;  %v9118_v3 = vld [vmem:[%s15892_s9 + $0x40] sm:$0xff] }
 0x677   :  { %11949 = vmatmul.mubr.msk.f32.gmra.mrb[36].mxu0 %vm354_vm1, %v15315_v14  ;;  %v9119_v14 = vld [vmem:[%s15892_s9 + $0x48] sm:$0xff] }
 0x678   :  { %11951 = vmatprep.mubr.msk.f32.mxu0 %vm354_vm1, %v15571_v18 }
 0x67b   :  { %11952 = vmatmul.mubr.msk.f32.gmra.mrb[38].mxu0 %vm354_vm1, %v8220_v11  ;;  %v16053_v11 = vld [vmem:[#allocation35_spill] sm:$0xff] }
 0x67c   :  { %11954 = vmatprep.mubr.msk.f32.mxu0 %vm354_vm1, %v15330_v16  ;;  %v12362_v16 = vpack.c.bf16 %v9119_v14, %v9118_v3 }
 0x67e   :  { %12363 = vmatprep.subr.bf16.mxu1 %v12362_v16 }
 0x67f   :  { %11955 = vmatmul.mubr.msk.f32.gmra.mrb[40].mxu0 %vm354_vm1, %v15335_v38  ;;  %v15770_v38 = vld [vmem:[%s15893_s10 + $0x3] ss:$0 sm:$0xff] }
 0x680   :  { %11957 = vmatprep.mubr.msk.f32.mxu0 %vm354_vm1, %v15340_v36 }
 0x683   :  { %11958 = vmatmul.mubr.msk.f32.gmra.mrb[42].mxu0 %vm354_vm1, %v15344_v50 }
 0x684   :  { %11960 = vmatprep.mubr.msk.f32.mxu0 %vm354_vm1, %v15348_v8 }
 0x687   :  { %11961 = vmatmul.mubr.msk.f32.gmra.mrb[44].mxu0 %vm354_vm1, %v15352_v63 }
 0x688   :  { %11963 = vmatprep.mubr.msk.f32.mxu0 %vm354_vm1, %v15589_v10 }
 0x68b   :  { %11964 = vmatmul.mubr.msk.f32.gmra.mrb[46].mxu0 %vm354_vm1, %v8228_v24 }
 0x68c   :  { %11974 = vmatprep.mubr.msk.f32.mxu0 %vm354_vm1, %v15444_v25 }
 0x68f   :  { %11975 = vmatmul.mubr.msk.f32.vlgmr.msra.gmra.mrb[32].mxu0 %vm354_vm1, %v15448_v0 }
 0x690   :  { %11977 = vmatprep.mubr.msk.f32.mxu0 %vm354_vm1, %v15452_v17 }
 0x693   :  { %11978 = vmatmul.mubr.msk.f32.gmra.mrb[34].mxu0 %vm354_vm1, %v15456_v4 }
 0x694   :  { %11980 = vmatprep.mubr.msk.f32.mxu0 %vm354_vm1, %v15460_v46 }
 0x697   :  { %11981 = vmatmul.mubr.msk.f32.gmra.mrb[36].mxu0 %vm354_vm1, %v15464_v58 }
 0x698   :  { %11983 = vmatprep.mubr.msk.f32.mxu0 %vm354_vm1, %v15631_v62 }
 0x69b   :  { %11984 = vmatmul.mubr.msk.f32.gmra.mrb[38].mxu0 %vm354_vm1, %v8449_v6 }
 0x69c   :  { %11986 = vmatprep.mubr.msk.f32.mxu0 %vm354_vm1, %v15473_v29 }
 0x69f   :  { %11987 = vmatmul.mubr.msk.f32.gmra.mrb[40].mxu0 %vm354_vm1, %v15477_v5 }
 0x6a0   :  { %11989 = vmatprep.mubr.msk.f32.mxu0 %vm354_vm1, %v15481_v55 }
 0x6a3   :  { %11990 = vmatmul.mubr.msk.f32.gmra.mrb[42].mxu0 %vm354_vm1, %v15485_v61 }
 0x6a4   :  { %11992 = vmatprep.mubr.msk.f32.mxu0 %vm354_vm1, %v15489_v48 }
 0x6a7   :  { %11993 = vmatmul.mubr.msk.f32.gmra.mrb[44].mxu0 %vm354_vm1, %v15493_v28 }
 0x6a8   :  { %11995 = vmatprep.mubr.msk.f32.mxu0 %vm354_vm1, %v15649_v35 }
 0x6ab   :  { %11996 = vmatmul.mubr.msk.f32.gmra.mrb[46].mxu0 %vm354_vm1, %v8457_v22 }
 0x762   :  { %v11976_v36 = vpop.f32.mrb[32].mxu0 }
 0x763   :  { %v8677_v50 = vadd.f32 %v11976_v36, %v15770_v38  ;;  %v8576_v8 = vpop.f32.mrb[33].mxu0 }
 0x764   :  { %v8676_v63 = vadd.f32 %v15770_v38, %v8576_v8 }
 0x765   :  { %v8693_v26 = vadd.f32 %v8677_v50, %v14616_v47  ;;  %v16054_v50 = vld [vmem:[#allocation15_spill] sm:$0xff] }
 0x766   :  { %v8692_v32 = vadd.f32 %v8676_v63, %v14619_v52  ;;  %v11979_v49 = vpop.f32.mrb[34].mxu0  ;;  %v16055_v63 = vld [vmem:[#allocation16_spill] sm:$0xff] }
 0x767   :  { %v8679_v23 = vadd.f32 %v11979_v49, %v15770_v38  ;;  %v8586_v27 = vpop.f32.mrb[35].mxu0  ;;  %v8709_v25 = vmax.f32 %v8693_v26, 0.0 }
 0x768   :  { %v8708_v41 = vmax.f32 %v8692_v32, 0.0  ;;  %v8678_v42 = vadd.f32 %v15770_v38, %v8586_v27  ;;  %v16057_v27 = vld [vmem:[#allocation30_spill] sm:$0xff] }
 0x769   :  { %v8695_v0 = vadd.f32 %v8679_v23, %v14628_v13  ;;  %v16056_v23 = vld [vmem:[#allocation29_spill] sm:$0xff] }
 0x76a   :  { %v8694_v17 = vadd.f32 %v8678_v42, %v14631_v9  ;;  %v11982_v4 = vpop.f32.mrb[36].mxu0  ;;  %12038 = vmatprep.mubr.msk.f32.mxu1 %vm354_vm1, %v8708_v41  ;;  %v16059_v41 = vld [vmem:[#allocation32_spill] sm:$0xff]  ;;  %v16060_v42 = vld [vmem:[#allocation33_spill] sm:$0xff] }
 0x76b   :  { %v8681_v46 = vadd.f32 %v11982_v4, %v15770_v38  ;;  %v8596_v47 = vpop.f32.mrb[37].mxu0  ;;  %12039 = vmatmul.mubr.msk.f32.vlgmr.msra.gmra.mrb[32].mxu1 %vm354_vm1, %v8709_v25  ;;  %v8711_v29 = vmax.f32 %v8695_v0, 0.0  ;;  %v16061_v25 = vld [vmem:[#allocation34_spill] sm:$0xff]  ;;  %v16062_v0 = vld [vmem:[#allocation37_spill] sm:$0xff]  ;;  %v16064_v4 = vld [vmem:[#allocation39_spill] sm:$0xff] }
 0x76c   :  { %v8710_v52 = vmax.f32 %v8694_v17, 0.0  ;;  %v8680_v58 = vadd.f32 %v15770_v38, %v8596_v47  ;;  %12365 = vmatpush3.bf16.msra.mxu1 %v12362_v16  ;;  %v16063_v17 = vld [vmem:[#allocation38_spill] sm:$0xff]  ;;  %v16066_v47 = vld [vmem:[#allocation41_spill] sm:$0xff] }
 0x76d   :  { %v8697_v5 = vadd.f32 %v8681_v46, %v16039_v19  ;;  %v16065_v46 = vld [vmem:[#allocation40_spill] sm:$0xff] }
 0x76e   :  { %v8696_v55 = vadd.f32 %v8680_v58, %v16038_v15  ;;  %v11985_v13 = vpop.f32.mrb[38].mxu0  ;;  %12041 = vmatprep.mubr.msk.f32.mxu1 %vm354_vm1, %v8710_v52  ;;  %v16067_v52 = vld [vmem:[#allocation42_spill] sm:$0xff]  ;;  %v16068_v58 = vld [vmem:[#allocation43_spill] sm:$0xff] }
 0x76f   :  { %v8683_v9 = vadd.f32 %v11985_v13, %v15770_v38  ;;  %v8606_v61 = vpop.f32.mrb[39].mxu0  ;;  %12042 = vmatmul.mubr.msk.f32.gmra.mrb[34].mxu1 %vm354_vm1, %v8711_v29  ;;  %v8713_v33 = vmax.f32 %v8697_v5, 0.0  ;;  %v16069_v29 = vld [vmem:[#allocation44_spill] sm:$0xff]  ;;  %v16070_v5 = vld [vmem:[#allocation45_spill] sm:$0xff]  ;;  %v10075_v13 = vld [vmem:[%s15893_s10 + $0x5] ss:$0 sm:$0xff] }
 0x770   :  { %v8712_v48 = vmax.f32 %v8696_v55, 0.0  ;;  %v8682_v28 = vadd.f32 %v15770_v38, %v8606_v61  ;;  %v16071_v55 = vld [vmem:[#allocation46_spill] sm:$0xff]  ;;  %s12987_s10 = smov [#allocation3]  }
 0x771   :  { %v8699_v31 = vadd.f32 %v8683_v9, %v16041_v53  ;;  %s9339_s2 = sshll.u32 %s12987_s10, 4  ;;  %s9340_s2 = int_to_ptr.vmem [resolvable:$true] %s9339_s2 }
 0x772   :  { %v8698_v18 = vadd.f32 %v8682_v28, %v16040_v43  ;;  %v11988_v10 = vpop.f32.mrb[40].mxu0  ;;  %12044 = vmatprep.mubr.msk.f32.mxu1 %vm354_vm1, %v8712_v48  ;;  %s12962_s29 = scalar_lea.vmem %s9340_s2, 2048  ;;  %p12967_p1 = scmp.lt.s32.totalorder %s9340_s2, %s9340_s2 }
 0x773   :  { %v8685_v15 = vadd.f32 %v11988_v10, %v15770_v38  ;;  %v8616_v19 = vpop.f32.mrb[41].mxu0  ;;  %12045 = vmatmul.mubr.msk.f32.gmra.mrb[36].mxu1 %vm354_vm1, %v8713_v33  ;;  %v8715_v56 = vmax.f32 %v8699_v31, 0.0  ;;  %p12963_p0 = scmp.ne.s32.totalorder %s9340_s2, %s12962_s29  ;;  %p12968_p2 = scmp.lt.s32.totalorder %s12962_s29, %s12962_s29 }
 0x774   :  { %v8714_v44 = vmax.f32 %v8698_v18, 0.0  ;;  %v8684_v7 = vadd.f32 %v15770_v38, %v8616_v19 }
 0x775   :  { %v8701_v39 = vadd.f32 %v8685_v15, %v16043_v40  ;;  %p12969_p3 = por %p12968_p2, %p12967_p1 }
 0x776   :  { %v8700_v2 = vadd.f32 %v8684_v7, %v16042_v37  ;;  %v11991_v21 = vpop.f32.mrb[42].mxu0  ;;  %12047 = vmatprep.mubr.msk.f32.mxu1 %vm354_vm1, %v8714_v44 }
 0x777   :  { %v8687_v43 = vadd.f32 %v11991_v21, %v15770_v38  ;;  %v8626_v53 = vpop.f32.mrb[43].mxu0  ;;  %12048 = vmatmul.mubr.msk.f32.gmra.mrb[38].mxu1 %vm354_vm1, %v8715_v56  ;;  %v8717_v12 = vmax.f32 %v8701_v39, 0.0  ;;  %p12970_p4 = pnand %p12969_p3, %p12963_p0 }
 0x778   :  { %v8716_v62 = vmax.f32 %v8700_v2, 0.0  ;;  %v8686_v35 = vadd.f32 %v15770_v38, %v8626_v53 }
 0x779   :  { %v8703_v60 = vadd.f32 %v8687_v43, %v16050_v51 }
 0x77a   :  { %v8702_v57 = vadd.f32 %v8686_v35, %v16051_v20  ;;  %v11994_v1 = vpop.f32.mrb[44].mxu0  ;;  %12050 = vmatprep.mubr.msk.f32.mxu1 %vm354_vm1, %v8716_v62 }
 0x77b   :  { %v8689_v37 = vadd.f32 %v11994_v1, %v15770_v38  ;;  %v8636_v40 = vpop.f32.mrb[45].mxu0  ;;  %12051 = vmatmul.mubr.msk.f32.gmra.mrb[40].mxu1 %vm354_vm1, %v8717_v12  ;;  %v8719_v59 = vmax.f32 %v8703_v60, 0.0 }
 0x77c   :  { %v8718_v30 = vmax.f32 %v8702_v57, 0.0  ;;  %v8688_v34 = vadd.f32 %v15770_v38, %v8636_v40 }
 0x77d   :  { %v8705_v45 = vadd.f32 %v8689_v37, %v16052_v54 }
 0x77e   :  { %v8704_v24 = vadd.f32 %v8688_v34, %v16053_v11  ;;  %v11997_v6 = vpop.f32.mrb[46].mxu0  ;;  %12053 = vmatprep.mubr.msk.f32.mxu1 %vm354_vm1, %v8718_v30 }
 0x77f   :  { %v8691_v22 = vadd.f32 %v11997_v6, %v15770_v38  ;;  %v8646_v3 = vpop.f32.mrb[47].mxu0  ;;  %12054 = vmatmul.mubr.msk.f32.gmra.mrb[42].mxu1 %vm354_vm1, %v8719_v59  ;;  %v8721_v36 = vmax.f32 %v8705_v45, 0.0 }
 0x780   :  { %v8720_v14 = vmax.f32 %v8704_v24, 0.0  ;;  %v8690_v16 = vadd.f32 %v15770_v38, %v8646_v3  ;;  %v16058_v38 = vld [vmem:[#allocation31_spill] sm:$0xff] }
 0x781   :  { %v8707_v8 = vadd.f32 %v8691_v22, %v16054_v50 }
 0x782   :  { %v8706_v26 = vadd.f32 %v8690_v16, %v16055_v63  ;;  %12056 = vmatprep.mubr.msk.f32.mxu1 %vm354_vm1, %v8720_v14 }
 0x783   :  { %12057 = vmatmul.mubr.msk.f32.gmra.mrb[44].mxu1 %vm354_vm1, %v8721_v36  ;;  %v8723_v49 = vmax.f32 %v8707_v8, 0.0 }
 0x784   :  { %v8722_v32 = vmax.f32 %v8706_v26, 0.0 }
 0x786   :  { %12059 = vmatprep.mubr.msk.f32.mxu1 %vm354_vm1, %v8722_v32 }
 0x787   :  { %12060 = vmatmul.mubr.msk.f32.gmra.mrb[46].mxu1 %vm354_vm1, %v8723_v49 }
 0x788   :  { %12066 = vmatprep.mubr.msk.f32.mxu1 %vm160_vm0, %v16056_v23 }
 0x78b   :  { %12067 = vmatmul.mubr.msk.f32.vlgmr.msra.gmra.mrb[32].mxu1 %vm160_vm0, %v16057_v27 }
 0x78c   :  { %12069 = vmatprep.mubr.msk.f32.mxu1 %vm160_vm0, %v16058_v38 }
 0x78f   :  { %12070 = vmatmul.mubr.msk.f32.gmra.mrb[34].mxu1 %vm160_vm0, %v16059_v41 }
 0x790   :  { %12072 = vmatprep.mubr.msk.f32.mxu1 %vm160_vm0, %v16060_v42 }
 0x793   :  { %12073 = vmatmul.mubr.msk.f32.gmra.mrb[36].mxu1 %vm160_vm0, %v16061_v25 }
 0x794   :  { %12075 = vmatprep.mubr.msk.f32.mxu1 %vm160_vm0, %v16062_v0 }
 0x797   :  { %12076 = vmatmul.mubr.msk.f32.gmra.mrb[38].mxu1 %vm160_vm0, %v16063_v17 }
 0x798   :  { %12078 = vmatprep.mubr.msk.f32.mxu1 %vm160_vm0, %v16064_v4 }
 0x79b   :  { %12079 = vmatmul.mubr.msk.f32.gmra.mrb[40].mxu1 %vm160_vm0, %v16065_v46 }
 0x79c   :  { %12081 = vmatprep.mubr.msk.f32.mxu1 %vm160_vm0, %v16066_v47 }
 0x79f   :  { %12082 = vmatmul.mubr.msk.f32.gmra.mrb[42].mxu1 %vm160_vm0, %v16067_v52 }
 0x7a0   :  { %12084 = vmatprep.mubr.msk.f32.mxu1 %vm160_vm0, %v16068_v58 }
 0x7a3   :  { %12085 = vmatmul.mubr.msk.f32.gmra.mrb[44].mxu1 %vm160_vm0, %v16069_v29 }
 0x7a4   :  { %12087 = vmatprep.mubr.msk.f32.mxu1 %vm160_vm0, %v16070_v5 }
 0x7a7   :  { %12088 = vmatmul.mubr.msk.f32.gmra.mrb[46].mxu1 %vm160_vm0, %v16071_v55 }
 0x85e   :  { %v12068_v9 = vpop.f32.mrb[32].mxu1 }
 0x85f   :  { %v9287_v61 = vadd.f32 %v12068_v9, %v10075_v13  ;;  %v9186_v48 = vpop.f32.mrb[33].mxu1 }
 0x860   :  { %v9286_v28 = vadd.f32 %v10075_v13, %v9186_v48 }
 0x861   :  { %v9303_v33 = vmax.f32 %v9287_v61, 0.0 }
 0x862   :  { %v9302_v31 = vmax.f32 %v9286_v28, 0.0  ;;  %v12071_v18 = vpop.f32.mrb[34].mxu1 }
 0x863   :  { %9319 = vst.msk [vmem:[#allocation3 + $0x8] sm:$0xff] %vm354_vm1, %v9303_v33  ;;  %v9289_v10 = vadd.f32 %v12071_v18, %v10075_v13  ;;  %v9196_v15 = vpop.f32.mrb[35].mxu1 }
 0x864   :  { %9318 = vst.msk [vmem:[#allocation3] sm:$0xff] %vm354_vm1, %v9302_v31  ;;  %v9288_v19 = vadd.f32 %v10075_v13, %v9196_v15 }
 0x865   :  { %v9305_v44 = vmax.f32 %v9289_v10, 0.0 }
 0x866   :  { %v9304_v7 = vmax.f32 %v9288_v19, 0.0  ;;  %v12074_v56 = vpop.f32.mrb[36].mxu1 }
 0x867   :  { %9321 = vst.msk [vmem:[#allocation3 + $0x18] sm:$0xff] %vm354_vm1, %v9305_v44  ;;  %v9291_v39 = vadd.f32 %v12074_v56, %v10075_v13  ;;  %v9206_v2 = vpop.f32.mrb[37].mxu1 }
 0x868   :  { %9320 = vst.msk [vmem:[#allocation3 + $0x10] sm:$0xff] %vm354_vm1, %v9304_v7  ;;  %v9290_v21 = vadd.f32 %v10075_v13, %v9206_v2 }
 0x869   :  { %v9307_v43 = vmax.f32 %v9291_v39, 0.0 }
 0x86a   :  { %v9306_v53 = vmax.f32 %v9290_v21, 0.0  ;;  %v12077_v62 = vpop.f32.mrb[38].mxu1 }
 0x86b   :  { %9323 = vst.msk [vmem:[#allocation3 + $0x28] sm:$0xff] %vm354_vm1, %v9307_v43  ;;  %v9293_v35 = vadd.f32 %v12077_v62, %v10075_v13  ;;  %v9216_v12 = vpop.f32.mrb[39].mxu1 }
 0x86c   :  { %9322 = vst.msk [vmem:[#allocation3 + $0x20] sm:$0xff] %vm354_vm1, %v9306_v53  ;;  %v9292_v51 = vadd.f32 %v10075_v13, %v9216_v12 }
 0x86d   :  { %v9309_v60 = vmax.f32 %v9293_v35, 0.0 }
 0x86e   :  { %v9308_v20 = vmax.f32 %v9292_v51, 0.0  ;;  %v12080_v57 = vpop.f32.mrb[40].mxu1 }
 0x86f   :  { %9325 = vst.msk [vmem:[#allocation3 + $0x38] sm:$0xff] %vm354_vm1, %v9309_v60  ;;  %v9295_v1 = vadd.f32 %v12080_v57, %v10075_v13  ;;  %v9226_v37 = vpop.f32.mrb[41].mxu1 }
 0x870   :  { %9324 = vst.msk [vmem:[#allocation3 + $0x30] sm:$0xff] %vm354_vm1, %v9308_v20  ;;  %v9294_v40 = vadd.f32 %v10075_v13, %v9226_v37 }
 0x871   :  { %v9311_v30 = vmax.f32 %v9295_v1, 0.0 }
 0x872   :  { %v9310_v34 = vmax.f32 %v9294_v40, 0.0  ;;  %v12083_v59 = vpop.f32.mrb[42].mxu1 }
 0x873   :  { %9327 = vst.msk [vmem:[#allocation3 + $0x48] sm:$0xff] %vm354_vm1, %v9311_v30  ;;  %v9297_v54 = vadd.f32 %v12083_v59, %v10075_v13  ;;  %v9236_v45 = vpop.f32.mrb[43].mxu1 }
 0x874   :  { %9326 = vst.msk [vmem:[#allocation3 + $0x40] sm:$0xff] %vm354_vm1, %v9310_v34  ;;  %v9296_v11 = vadd.f32 %v10075_v13, %v9236_v45 }
 0x875   :  { %v9313_v24 = vmax.f32 %v9297_v54, 0.0 }
 0x876   :  { %v9312_v6 = vmax.f32 %v9296_v11, 0.0  ;;  %v12086_v22 = vpop.f32.mrb[44].mxu1 }
 0x877   :  { %9329 = vst.msk [vmem:[#allocation3 + $0x58] sm:$0xff] %vm354_vm1, %v9313_v24  ;;  %v9299_v3 = vadd.f32 %v12086_v22, %v10075_v13  ;;  %v9246_v14 = vpop.f32.mrb[45].mxu1 }
 0x878   :  { %9328 = vst.msk [vmem:[#allocation3 + $0x50] sm:$0xff] %vm354_vm1, %v9312_v6  ;;  %v9298_v16 = vadd.f32 %v10075_v13, %v9246_v14 }
 0x879   :  { %v9315_v36 = vmax.f32 %v9299_v3, 0.0 }
 0x87a   :  { %v9314_v50 = vmax.f32 %v9298_v16, 0.0  ;;  %v12089_v8 = vpop.f32.mrb[46].mxu1 }
 0x87b   :  { %9331 = vst.msk [vmem:[#allocation3 + $0x68] sm:$0xff] %vm354_vm1, %v9315_v36  ;;  %v9301_v63 = vadd.f32 %v12089_v8, %v10075_v13  ;;  %v9256_v26 = vpop.f32.mrb[47].mxu1 }
 0x87c   :  { %9330 = vst.msk [vmem:[#allocation3 + $0x60] sm:$0xff] %vm354_vm1, %v9314_v50  ;;  %v9300_v32 = vadd.f32 %v10075_v13, %v9256_v26 }
 0x87d   :  { %v9317_v49 = vmax.f32 %v9301_v63, 0.0 }
 0x87e   :  { %v9316_v23 = vmax.f32 %v9300_v32, 0.0 }
 0x87f   :  { %9333 = vst.msk [vmem:[#allocation3 + $0x78] sm:$0xff] %vm354_vm1, %v9317_v49 }
 0x880   :  { %9332 = vst.msk [vmem:[#allocation3 + $0x70] sm:$0xff] %vm354_vm1, %v9316_v23 }
 0x881   :  { %12973 = shalt.err (!%p12970_p4)
}
 0x882   :  { %s12974_s12 = scalar_lea.hbm %s15894_s11, 2048 }
 0x883   :  { %p12975_p5 = scmp.ne.s32.totalorder %s15894_s11, %s12974_s12  ;;  %p12978_p6 = scmp.lt.u32.totalorder %s12974_s12, %s15894_s11 }
 0x885   :  { %p12980_p7 = pnand %p12978_p6, %p12975_p5 }
 0x887   :  { %12983 = shalt.err (!%p12980_p7)
}
 0x888   :  { %s12988_s16 = smov 128   ;;  %s12989_s17 = smov 8  }
 0x889   :  { %9345 = dma.vmem_to_hbm [thread:$0]  %s9340_s2, 2048, %s15894_s11, [#allocation4], %s12988_s16, %s12988_s16, %s12989_s17  }
 0x88a   :  { %12984 = dma.done.wait [#allocation4], 2048  }
 0x88b   :  { %12985 = vsyncadd [#allocation4], 4294965248 }
 0x88c   :  { %9349 = vsyncpa [#allocation4], 1 }

</bundles_post_ra>
